<compile_context>
chip_gen: v6e
topology: v6e:2x2x1
jax: 0.10.0
libtpu: 0.0.40
codegen_flags: <defaults>
</compile_context>

<pallas_src>
import functools
import math

import jax
import jax.numpy as jnp
import numpy as np
from jax.experimental import pallas as pl
from jax.experimental.pallas import tpu as pltpu

# Architecture constants (from the PyTorch module).
_KF = 9                               # fused front window (3/5/7 zero-embedded into 9x9)
_K3 = 5                               # conv3 window
_C_IN = 3
_C1 = 256                             # concat of four 64-ch branches
_C2 = 32
_C_OUT = 3
_PF = (_KF - 1) // 2                  # 4  (front conv SAME pad)
_P3 = (_K3 - 1) // 2                  # 2  (conv3 SAME pad)
_PAD_ROWS = _PF + _P3                 # 6  rows of wrapper padding top/bottom
_HALO = 2 * _PAD_ROWS                 # 12 extra rows carried per row tile
_KC = _KF * _C_IN                     # 27 (width taps folded into channels)


# ---------------------------------------------------------------------------
# The fused kernel: whole forward pass for one (batch, row-tile) grid point.
# ---------------------------------------------------------------------------
def _srcnn_kernel(x_ref, w1_ref, b1_ref, w2_ref, b2_ref, w3_ref, b3_ref, o_ref,
                  *, Ht, W, H):
    """
    x_ref : (1, 1, Ht+12, W, 27) bf16  width-folded, row-haloed input tile
    w1_ref: (243, 256)           bf16  fused front weight (kh*27 + kw*3 + c)
    b1_ref: (1, 256)             f32
    w2_ref: (256, 32)            bf16
    b2_ref: (1, 32)              f32
    w3_ref: (3, 800)             bf16  conv3 weight, transposed (co, kh*160+kw*32+c)
    b3_ref: (3, 1)               f32
    o_ref : (1, 1, 3, Ht*W)      f32   lane-dense, channel-major output tile
    """
    Hx = Ht + _K3 - 1                    # intermediate rows needed (Ht + 4)
    M_ext = Hx * W
    M = Ht * W

    # ---- fused front convs: one deep (M_ext, 243) x (243, 256) MXU dot -----
    # Pack the 243-deep im2col in VMEM from the 27-ch width-folded tile: nine
    # row-shifted views concatenated on the channel axis (lane-offset copies
    # run on otherwise-idle VPU/XLU slots), then a single dot.
    lhs1 = jnp.concatenate(
        [x_ref[0, 0, pl.ds(kh, Hx), :, :] for kh in range(_KF)], axis=-1)
    # (Hx, W, 243) -> (M_ext, 243); copy-free when W % 16 == 0 (bf16 sublane tile).
    lhs1 = lhs1.reshape(M_ext, _KF * _KC)
    h1 = jnp.dot(lhs1, w1_ref[...], preferred_element_type=jnp.float32)
    h1 = jnp.maximum(h1 + b1_ref[...], 0.0)                       # (M_ext, 256) f32

    # ---- fused 1x1 conv2 (256 -> 32) + ReLU ---------------------------------
    h2 = jnp.dot(h1.astype(jnp.bfloat16), w2_ref[...],
                 preferred_element_type=jnp.float32)
    h2 = jnp.maximum(h2 + b2_ref[...], 0.0)                        # (M_ext, 32) f32
    h32 = h2.astype(jnp.bfloat16).reshape(Hx, W, _C2)

    # conv3's SAME padding: intermediate rows outside the image are zeros.
    t = pl.program_id(1)
    rows = t * Ht - _P3 + jax.lax.broadcasted_iota(jnp.int32, (Hx, W, _C2), 0)
    h32 = jnp.where((rows >= 0) & (rows < H), h32, jnp.zeros_like(h32))

    # conv3's SAME padding in width: concatenate zero columns in VMEM.
    zc = jnp.zeros((Hx, _P3, _C2), h32.dtype)
    hp = jnp.concatenate([zc, h32, zc], axis=1)                    # (Hx, W+4, 32)

    # ---- fused conv3 (5x5, 32 -> 3): single 800-deep dot --------------------
    lhs3 = jnp.concatenate(
        [hp[kh:kh + Ht, kw:kw + W, :] for kh in range(_K3) for kw in range(_K3)],
        axis=-1).reshape(M, _K3 * _K3 * _C2)                       # (M, 800) bf16
    # (3, 800) . (M, 800)^T -> (3, M): channel-major result, M on the lane axis.
    out = jax.lax.dot_general(w3_ref[...], lhs3, (((1,), (1,)), ((), ())),
                              preferred_element_type=jnp.float32)
    out = out + b3_ref[...]                                        # (3, M) f32
    o_ref[0, 0, :, :] = out.astype(o_ref.dtype)


# ---------------------------------------------------------------------------
# Wrapper glue: padding, width-tap folding, overlapping row tiles, weight pack
# ---------------------------------------------------------------------------
def _pick_row_tile(H, cap):
    """Largest divisor of H that is <= cap (>=1)."""
    t = max(1, min(H, cap))
    while H % t:
        t -= 1
    return t


def _fold_and_tile(x_nchw, Ht):
    """NCHW f32 -> (N, T, Ht+12, W, 27) bf16: pad rows by 6 / cols by 4, fold
    the 9 width taps and Cin into the channel axis, and cut overlapping row
    tiles that carry the 12 halo rows (8 for the 9x9 front conv + 4 more so
    conv3's row halo on the intermediate can be computed in-kernel)."""
    N, C, H, W = x_nchw.shape
    x = jnp.transpose(x_nchw, (0, 2, 3, 1)).astype(jnp.bfloat16)          # NHWC
    xp = jnp.pad(x, ((0, 0), (_PAD_ROWS, _PAD_ROWS), (_PF, _PF), (0, 0)))
    xkw = jnp.concatenate([xp[:, :, kw:kw + W, :] for kw in range(_KF)],
                          axis=-1)                                        # (N, H+12, W, 27)
    T = H // Ht
    xt = jnp.stack([xkw[:, t * Ht: t * Ht + Ht + _HALO] for t in range(T)], axis=1)
    return xt


_BRANCHES = ("conv_input1", "conv_input2", "conv_input3", "conv_input4")


def _pack_weights(params):
    """Embed the 9/3/5/7 branches into one 9x9x3x256 weight and flatten all
    weights into lane-dense im2col matrices matching the in-kernel LHS layout."""
    w9 = jnp.zeros((_KF, _KF, _C_IN, _C1), jnp.float32)
    biases = []
    for i, name in enumerate(_BRANCHES):
        w, b = params[name]
        k = w.shape[0]
        o = (_KF - k) // 2                      # zero-pad smaller kernels to 9x9
        w9 = w9.at[o:o + k, o:o + k, :, 64 * i:64 * (i + 1)].set(w)
        biases.append(b)
    w1 = w9.reshape(_KF * _KF * _C_IN, _C1).astype(jnp.bfloat16)          # (243, 256)
    b1 = jnp.concatenate(biases).reshape(1, _C1).astype(jnp.float32)
    w2 = params["conv2"][0].reshape(_C1, _C2).astype(jnp.bfloat16)        # (256, 32)
    b2 = params["conv2"][1].reshape(1, _C2).astype(jnp.float32)
    w3 = params["conv3"][0].reshape(_K3 * _K3 * _C2, _C_OUT).T.astype(jnp.bfloat16)  # (3, 800)
    b3 = params["conv3"][1].reshape(_C_OUT, 1).astype(jnp.float32)
    return w1, b1, w2, b2, w3, b3


def srcnn_forward(x_nchw, params, *, ht_cap=32):
    """Full SRCNN_VAR_FILTERS forward (NCHW in, NCHW out) via one Pallas kernel."""
    N, C, H, W = x_nchw.shape
    assert C == _C_IN, "SRCNN_VAR_FILTERS expects 3 input channels"
    Ht = _pick_row_tile(H, ht_cap)
    if N * (H // Ht) < 2:                       # keep both v7x TensorCores busy
        Ht = _pick_row_tile(H, max(1, H // 2))
    T = H // Ht

    xt = _fold_and_tile(x_nchw, Ht)             # (N, T, Ht+12, W, 27) bf16
    w1, b1, w2, b2, w3, b3 = _pack_weights(params)

    kernel = functools.partial(_srcnn_kernel, Ht=Ht, W=W, H=H)
    y = pl.pallas_call(
        kernel,
        out_shape=jax.ShapeDtypeStruct((N, T, _C_OUT, Ht * W), jnp.float32),
        grid=(N, T),
        in_specs=[
            pl.BlockSpec((1, 1, Ht + _HALO, W, _KC), lambda n, t: (n, t, 0, 0, 0)),
            pl.BlockSpec((_KF * _KC, _C1), lambda n, t: (0, 0)),
            pl.BlockSpec((1, _C1), lambda n, t: (0, 0)),
            pl.BlockSpec((_C1, _C2), lambda n, t: (0, 0)),
            pl.BlockSpec((1, _C2), lambda n, t: (0, 0)),
            pl.BlockSpec((_C_OUT, _K3 * _K3 * _C2), lambda n, t: (0, 0)),
            pl.BlockSpec((_C_OUT, 1), lambda n, t: (0, 0)),
        ],
        out_specs=pl.BlockSpec((1, 1, _C_OUT, Ht * W), lambda n, t: (n, t, 0, 0)),
        compiler_params=pltpu.CompilerParams(
            dimension_semantics=("parallel", "parallel"),
            vmem_limit_bytes=48 * 1024 * 1024),
    )(xt, w1, b1, w2, b2, w3, b3)

    # Tile reassembly only; the kernel already emitted channel-major, lane-dense
    # blocks, so there is no NHWC->NCHW relayout of the final activations.
    return (y.reshape(N, T, _C_OUT, Ht, W)
             .transpose(0, 2, 1, 3, 4)
             .reshape(N, _C_OUT, H, W))


# ---------------------------------------------------------------------------
# Parameter init (deterministic, PyTorch-Conv2d-like uniform bounds, HWIO)
# ---------------------------------------------------------------------------
def init_params(key):
    specs = {
        "conv_input1": (9, 3, 64),
        "conv_input2": (3, 3, 64),
        "conv_input3": (5, 3, 64),
        "conv_input4": (7, 3, 64),
        "conv2": (1, 256, 32),
        "conv3": (5, 32, 3),
    }
    params = {}
    for name, (k, cin, cout) in specs.items():
        key, kw_, kb_ = jax.random.split(key, 3)
        fan_in = cin * k * k
        bound = 1.0 / math.sqrt(fan_in)
        w = jax.random.uniform(kw_, (k, k, cin, cout), jnp.float32,
                               minval=-bound, maxval=bound)
        b = jax.random.uniform(kb_, (cout,), jnp.float32,
                               minval=-bound, maxval=bound)
        params[name] = (w, b)
    return params


# ---------------------------------------------------------------------------
# Pure-JAX f32 reference (mirrors the PyTorch forward exactly)
# ---------------------------------------------------------------------------
def _conv_ref(x, w, b, relu):
    out = jax.lax.conv_general_dilated(
        x, w, (1, 1), "SAME",
        dimension_numbers=("NHWC", "HWIO", "NHWC")) + b
    return jnp.maximum(out, 0.0) if relu else out


def srcnn_forward_ref(x_nchw, params):
    x = jnp.transpose(x_nchw, (0, 2, 3, 1))
    o1 = _conv_ref(x, *params["conv_input1"], True)
    o2 = _conv_ref(x, *params["conv_input2"], True)
    o3 = _conv_ref(x, *params["conv_input3"], True)
    o4 = _conv_ref(x, *params["conv_input4"], True)
    cat = jnp.concatenate([o1, o2, o3, o4], axis=-1)
    h = _conv_ref(cat, *params["conv2"], True)
    out = _conv_ref(h, *params["conv3"], False)
    return jnp.transpose(out, (0, 3, 1, 2))


# ---------------------------------------------------------------------------
if __name__ == "__main__":
    key = jax.random.PRNGKey(0)
    key, kx = jax.random.split(key)
    # Small input consistent with the module: N=2, C=3 (required), 16x16 spatial.
    x = jax.random.normal(kx, (2, 3, 16, 16), jnp.float32)

    params = init_params(key)

    out = jax.jit(srcnn_forward)(x, params)
    out = jax.block_until_ready(out)
    assert out.shape == (2, 3, 16, 16), out.shape

    ref = jax.block_until_ready(srcnn_forward_ref(x, params))
    # bf16 MXU operands / bf16 intermediate activations (f32 accumulation)
    # -> loosened tolerance vs the pure-f32 reference.
    np.testing.assert_allclose(np.asarray(out), np.asarray(ref),
                               rtol=2e-2, atol=2e-2)

    print("KERNEL_OK")
</pallas_src>

<mosaic_0001>
module attributes {stable_mosaic.version = 11 : i64} {
  func.func @_srcnn_kernel(%arg0: i32, %arg1: i32, %arg2: memref<1x1x28x16x27xbf16, #tpu.memory_space<vmem>>, %arg3: memref<243x256xbf16, #tpu.memory_space<vmem>>, %arg4: memref<1x256xf32, #tpu.memory_space<vmem>>, %arg5: memref<256x32xbf16, #tpu.memory_space<vmem>>, %arg6: memref<1x32xf32, #tpu.memory_space<vmem>>, %arg7: memref<3x800xbf16, #tpu.memory_space<vmem>>, %arg8: memref<3x1xf32, #tpu.memory_space<vmem>>, %arg9: memref<1x1x3x256xf32, #tpu.memory_space<vmem>>) attributes {dimension_semantics = [#tpu.dimension_semantics<parallel>, #tpu.dimension_semantics<parallel>], iteration_bounds = array<i64: 2, 1>, scalar_prefetch = 0 : i64, scratch_operands = 0 : i64, tpu.core_type = #tpu.core_type<tc>, window_params = [{transform_indices = @transform_0, window_bounds = array<i64: 1, 1, 28, 16, 27>}, {pipeline_mode = #tpu.pipeline_mode<synchronous>, transform_indices = @transform_1, window_bounds = array<i64: 243, 256>}, {pipeline_mode = #tpu.pipeline_mode<synchronous>, transform_indices = @transform_2, window_bounds = array<i64: 1, 256>}, {pipeline_mode = #tpu.pipeline_mode<synchronous>, transform_indices = @transform_3, window_bounds = array<i64: 256, 32>}, {pipeline_mode = #tpu.pipeline_mode<synchronous>, transform_indices = @transform_4, window_bounds = array<i64: 1, 32>}, {pipeline_mode = #tpu.pipeline_mode<synchronous>, transform_indices = @transform_5, window_bounds = array<i64: 3, 800>}, {pipeline_mode = #tpu.pipeline_mode<synchronous>, transform_indices = @transform_6, window_bounds = array<i64: 3, 1>}, {transform_indices = @transform_7, window_bounds = array<i64: 1, 1, 3, 256>}]} {
    %c0 = arith.constant 0 : index
    %c0_0 = arith.constant 0 : index
    %c0_1 = arith.constant 0 : index
    %c0_2 = arith.constant 0 : index
    %c0_3 = arith.constant 0 : index
    %0 = vector.load %arg2[%c0, %c0_0, %c0_1, %c0_2, %c0_3] : memref<1x1x28x16x27xbf16, #tpu.memory_space<vmem>>, vector<1x1x20x16x27xbf16>
    %1 = vector.shape_cast %0 : vector<1x1x20x16x27xbf16> to vector<20x16x27xbf16>
    %c0_4 = arith.constant 0 : index
    %c0_5 = arith.constant 0 : index
    %c1 = arith.constant 1 : index
    %c0_6 = arith.constant 0 : index
    %c0_7 = arith.constant 0 : index
    %2 = vector.load %arg2[%c0_4, %c0_5, %c1, %c0_6, %c0_7] : memref<1x1x28x16x27xbf16, #tpu.memory_space<vmem>>, vector<1x1x20x16x27xbf16>
    %3 = vector.shape_cast %2 : vector<1x1x20x16x27xbf16> to vector<20x16x27xbf16>
    %c0_8 = arith.constant 0 : index
    %c0_9 = arith.constant 0 : index
    %c2 = arith.constant 2 : index
    %c0_10 = arith.constant 0 : index
    %c0_11 = arith.constant 0 : index
    %4 = vector.load %arg2[%c0_8, %c0_9, %c2, %c0_10, %c0_11] : memref<1x1x28x16x27xbf16, #tpu.memory_space<vmem>>, vector<1x1x20x16x27xbf16>
    %5 = vector.shape_cast %4 : vector<1x1x20x16x27xbf16> to vector<20x16x27xbf16>
    %c0_12 = arith.constant 0 : index
    %c0_13 = arith.constant 0 : index
    %c3 = arith.constant 3 : index
    %c0_14 = arith.constant 0 : index
    %c0_15 = arith.constant 0 : index
    %6 = vector.load %arg2[%c0_12, %c0_13, %c3, %c0_14, %c0_15] : memref<1x1x28x16x27xbf16, #tpu.memory_space<vmem>>, vector<1x1x20x16x27xbf16>
    %7 = vector.shape_cast %6 : vector<1x1x20x16x27xbf16> to vector<20x16x27xbf16>
    %c0_16 = arith.constant 0 : index
    %c0_17 = arith.constant 0 : index
    %c4 = arith.constant 4 : index
    %c0_18 = arith.constant 0 : index
    %c0_19 = arith.constant 0 : index
    %8 = vector.load %arg2[%c0_16, %c0_17, %c4, %c0_18, %c0_19] : memref<1x1x28x16x27xbf16, #tpu.memory_space<vmem>>, vector<1x1x20x16x27xbf16>
    %9 = vector.shape_cast %8 : vector<1x1x20x16x27xbf16> to vector<20x16x27xbf16>
    %c0_20 = arith.constant 0 : index
    %c0_21 = arith.constant 0 : index
    %c5 = arith.constant 5 : index
    %c0_22 = arith.constant 0 : index
    %c0_23 = arith.constant 0 : index
    %10 = vector.load %arg2[%c0_20, %c0_21, %c5, %c0_22, %c0_23] : memref<1x1x28x16x27xbf16, #tpu.memory_space<vmem>>, vector<1x1x20x16x27xbf16>
    %11 = vector.shape_cast %10 : vector<1x1x20x16x27xbf16> to vector<20x16x27xbf16>
    %c0_24 = arith.constant 0 : index
    %c0_25 = arith.constant 0 : index
    %c6 = arith.constant 6 : index
    %c0_26 = arith.constant 0 : index
    %c0_27 = arith.constant 0 : index
    %12 = vector.load %arg2[%c0_24, %c0_25, %c6, %c0_26, %c0_27] : memref<1x1x28x16x27xbf16, #tpu.memory_space<vmem>>, vector<1x1x20x16x27xbf16>
    %13 = vector.shape_cast %12 : vector<1x1x20x16x27xbf16> to vector<20x16x27xbf16>
    %c0_28 = arith.constant 0 : index
    %c0_29 = arith.constant 0 : index
    %c7 = arith.constant 7 : index
    %c0_30 = arith.constant 0 : index
    %c0_31 = arith.constant 0 : index
    %14 = vector.load %arg2[%c0_28, %c0_29, %c7, %c0_30, %c0_31] : memref<1x1x28x16x27xbf16, #tpu.memory_space<vmem>>, vector<1x1x20x16x27xbf16>
    %15 = vector.shape_cast %14 : vector<1x1x20x16x27xbf16> to vector<20x16x27xbf16>
    %c0_32 = arith.constant 0 : index
    %c0_33 = arith.constant 0 : index
    %c8 = arith.constant 8 : index
    %c0_34 = arith.constant 0 : index
    %c0_35 = arith.constant 0 : index
    %16 = vector.load %arg2[%c0_32, %c0_33, %c8, %c0_34, %c0_35] : memref<1x1x28x16x27xbf16, #tpu.memory_space<vmem>>, vector<1x1x20x16x27xbf16>
    %17 = vector.shape_cast %16 : vector<1x1x20x16x27xbf16> to vector<20x16x27xbf16>
    %18 = tpu.concatenate %1, %3, %5, %7, %9, %11, %13, %15, %17 in 2 : vector<20x16x27xbf16>, vector<20x16x27xbf16>, vector<20x16x27xbf16>, vector<20x16x27xbf16>, vector<20x16x27xbf16>, vector<20x16x27xbf16>, vector<20x16x27xbf16>, vector<20x16x27xbf16>, vector<20x16x27xbf16> -> vector<20x16x243xbf16>
    %19 = vector.shape_cast %18 : vector<20x16x243xbf16> to vector<320x243xbf16>
    %c0_36 = arith.constant 0 : index
    %c0_37 = arith.constant 0 : index
    %20 = vector.load %arg3[%c0_36, %c0_37] : memref<243x256xbf16, #tpu.memory_space<vmem>>, vector<243x256xbf16>
    %cst = arith.constant dense<0.000000e+00> : vector<320x256xf32>
    %21 = tpu.matmul %19, %20, %cst {dimension_numbers = #tpu.dot_dimension_numbers<[1], [0], [0], [1], [0, 0, 1, 1], [], []>} : vector<320x243xbf16>, vector<243x256xbf16>, vector<320x256xf32> -> vector<320x256xf32>
    %c0_38 = arith.constant 0 : index
    %c0_39 = arith.constant 0 : index
    %22 = vector.load %arg4[%c0_38, %c0_39] : memref<1x256xf32, #tpu.memory_space<vmem>>, vector<1x256xf32>
    %23 = vector.broadcast %22 : vector<1x256xf32> to vector<320x256xf32>
    %24 = arith.addf %21, %23 : vector<320x256xf32>
    %cst_40 = arith.constant 0.000000e+00 : f32
    %25 = vector.broadcast %cst_40 : f32 to vector<320x256xf32>
    %26 = arith.maximumf %24, %25 : vector<320x256xf32>
    %27 = arith.truncf %26 : vector<320x256xf32> to vector<320x256xbf16>
    %c0_41 = arith.constant 0 : index
    %c0_42 = arith.constant 0 : index
    %28 = vector.load %arg5[%c0_41, %c0_42] : memref<256x32xbf16, #tpu.memory_space<vmem>>, vector<256x32xbf16>
    %cst_43 = arith.constant dense<0.000000e+00> : vector<320x32xf32>
    %29 = tpu.matmul %27, %28, %cst_43 {dimension_numbers = #tpu.dot_dimension_numbers<[1], [0], [0], [1], [0, 0, 1, 1], [], []>} : vector<320x256xbf16>, vector<256x32xbf16>, vector<320x32xf32> -> vector<320x32xf32>
    %c0_44 = arith.constant 0 : index
    %c0_45 = arith.constant 0 : index
    %30 = vector.load %arg6[%c0_44, %c0_45] : memref<1x32xf32, #tpu.memory_space<vmem>>, vector<1x32xf32>
    %31 = vector.broadcast %30 : vector<1x32xf32> to vector<320x32xf32>
    %32 = arith.addf %29, %31 : vector<320x32xf32>
    %cst_46 = arith.constant 0.000000e+00 : f32
    %33 = vector.broadcast %cst_46 : f32 to vector<320x32xf32>
    %34 = arith.maximumf %32, %33 : vector<320x32xf32>
    %35 = arith.truncf %34 : vector<320x32xf32> to vector<320x32xbf16>
    %36 = vector.shape_cast %35 : vector<320x32xbf16> to vector<20x16x32xbf16>
    %c16_i32 = arith.constant 16 : i32
    %37 = arith.muli %arg1, %c16_i32 : i32
    %c2_i32 = arith.constant 2 : i32
    %38 = arith.subi %37, %c2_i32 : i32
    %39 = tpu.iota {dimensions = array<i32: 0>} : vector<20x16x32xi32>
    %40 = vector.broadcast %38 : i32 to vector<20x16x32xi32>
    %41 = arith.addi %40, %39 : vector<20x16x32xi32>
    %c0_i32 = arith.constant 0 : i32
    %42 = vector.broadcast %c0_i32 : i32 to vector<20x16x32xi32>
    %43 = arith.cmpi sge, %41, %42 : vector<20x16x32xi32>
    %c16_i32_47 = arith.constant 16 : i32
    %44 = vector.broadcast %c16_i32_47 : i32 to vector<20x16x32xi32>
    %45 = arith.cmpi slt, %41, %44 : vector<20x16x32xi32>
    %46 = arith.andi %43, %45 : vector<20x16x32xi1>
    %cst_48 = arith.constant 0.000000e+00 : bf16
    %47 = vector.broadcast %cst_48 : bf16 to vector<20x16x32xbf16>
    %48 = arith.select %46, %36, %47 : vector<20x16x32xi1>, vector<20x16x32xbf16>
    %cst_49 = arith.constant 0.000000e+00 : bf16
    %49 = vector.broadcast %cst_49 : bf16 to vector<20x2x32xbf16>
    %50 = tpu.concatenate %49, %48, %49 in 1 : vector<20x2x32xbf16>, vector<20x16x32xbf16>, vector<20x2x32xbf16> -> vector<20x20x32xbf16>
    %51 = vector.extract_strided_slice %50 {offsets = [0, 0, 0], sizes = [16, 16, 32], strides = [1, 1, 1]} : vector<20x20x32xbf16> to vector<16x16x32xbf16>
    %52 = vector.extract_strided_slice %50 {offsets = [0, 1, 0], sizes = [16, 16, 32], strides = [1, 1, 1]} : vector<20x20x32xbf16> to vector<16x16x32xbf16>
    %53 = vector.extract_strided_slice %50 {offsets = [0, 2, 0], sizes = [16, 16, 32], strides = [1, 1, 1]} : vector<20x20x32xbf16> to vector<16x16x32xbf16>
    %54 = vector.extract_strided_slice %50 {offsets = [0, 3, 0], sizes = [16, 16, 32], strides = [1, 1, 1]} : vector<20x20x32xbf16> to vector<16x16x32xbf16>
    %55 = vector.extract_strided_slice %50 {offsets = [0, 4, 0], sizes = [16, 16, 32], strides = [1, 1, 1]} : vector<20x20x32xbf16> to vector<16x16x32xbf16>
    %56 = vector.extract_strided_slice %50 {offsets = [1, 0, 0], sizes = [16, 16, 32], strides = [1, 1, 1]} : vector<20x20x32xbf16> to vector<16x16x32xbf16>
    %57 = vector.extract_strided_slice %50 {offsets = [1, 1, 0], sizes = [16, 16, 32], strides = [1, 1, 1]} : vector<20x20x32xbf16> to vector<16x16x32xbf16>
    %58 = vector.extract_strided_slice %50 {offsets = [1, 2, 0], sizes = [16, 16, 32], strides = [1, 1, 1]} : vector<20x20x32xbf16> to vector<16x16x32xbf16>
    %59 = vector.extract_strided_slice %50 {offsets = [1, 3, 0], sizes = [16, 16, 32], strides = [1, 1, 1]} : vector<20x20x32xbf16> to vector<16x16x32xbf16>
    %60 = vector.extract_strided_slice %50 {offsets = [1, 4, 0], sizes = [16, 16, 32], strides = [1, 1, 1]} : vector<20x20x32xbf16> to vector<16x16x32xbf16>
    %61 = vector.extract_strided_slice %50 {offsets = [2, 0, 0], sizes = [16, 16, 32], strides = [1, 1, 1]} : vector<20x20x32xbf16> to vector<16x16x32xbf16>
    %62 = vector.extract_strided_slice %50 {offsets = [2, 1, 0], sizes = [16, 16, 32], strides = [1, 1, 1]} : vector<20x20x32xbf16> to vector<16x16x32xbf16>
    %63 = vector.extract_strided_slice %50 {offsets = [2, 2, 0], sizes = [16, 16, 32], strides = [1, 1, 1]} : vector<20x20x32xbf16> to vector<16x16x32xbf16>
    %64 = vector.extract_strided_slice %50 {offsets = [2, 3, 0], sizes = [16, 16, 32], strides = [1, 1, 1]} : vector<20x20x32xbf16> to vector<16x16x32xbf16>
    %65 = vector.extract_strided_slice %50 {offsets = [2, 4, 0], sizes = [16, 16, 32], strides = [1, 1, 1]} : vector<20x20x32xbf16> to vector<16x16x32xbf16>
    %66 = vector.extract_strided_slice %50 {offsets = [3, 0, 0], sizes = [16, 16, 32], strides = [1, 1, 1]} : vector<20x20x32xbf16> to vector<16x16x32xbf16>
    %67 = vector.extract_strided_slice %50 {offsets = [3, 1, 0], sizes = [16, 16, 32], strides = [1, 1, 1]} : vector<20x20x32xbf16> to vector<16x16x32xbf16>
    %68 = vector.extract_strided_slice %50 {offsets = [3, 2, 0], sizes = [16, 16, 32], strides = [1, 1, 1]} : vector<20x20x32xbf16> to vector<16x16x32xbf16>
    %69 = vector.extract_strided_slice %50 {offsets = [3, 3, 0], sizes = [16, 16, 32], strides = [1, 1, 1]} : vector<20x20x32xbf16> to vector<16x16x32xbf16>
    %70 = vector.extract_strided_slice %50 {offsets = [3, 4, 0], sizes = [16, 16, 32], strides = [1, 1, 1]} : vector<20x20x32xbf16> to vector<16x16x32xbf16>
    %71 = vector.extract_strided_slice %50 {offsets = [4, 0, 0], sizes = [16, 16, 32], strides = [1, 1, 1]} : vector<20x20x32xbf16> to vector<16x16x32xbf16>
    %72 = vector.extract_strided_slice %50 {offsets = [4, 1, 0], sizes = [16, 16, 32], strides = [1, 1, 1]} : vector<20x20x32xbf16> to vector<16x16x32xbf16>
    %73 = vector.extract_strided_slice %50 {offsets = [4, 2, 0], sizes = [16, 16, 32], strides = [1, 1, 1]} : vector<20x20x32xbf16> to vector<16x16x32xbf16>
    %74 = vector.extract_strided_slice %50 {offsets = [4, 3, 0], sizes = [16, 16, 32], strides = [1, 1, 1]} : vector<20x20x32xbf16> to vector<16x16x32xbf16>
    %75 = vector.extract_strided_slice %50 {offsets = [4, 4, 0], sizes = [16, 16, 32], strides = [1, 1, 1]} : vector<20x20x32xbf16> to vector<16x16x32xbf16>
    %76 = tpu.concatenate %51, %52, %53, %54, %55, %56, %57, %58, %59, %60, %61, %62, %63, %64, %65, %66 in 2 : vector<16x16x32xbf16>, vector<16x16x32xbf16>, vector<16x16x32xbf16>, vector<16x16x32xbf16>, vector<16x16x32xbf16>, vector<16x16x32xbf16>, vector<16x16x32xbf16>, vector<16x16x32xbf16>, vector<16x16x32xbf16>, vector<16x16x32xbf16>, vector<16x16x32xbf16>, vector<16x16x32xbf16>, vector<16x16x32xbf16>, vector<16x16x32xbf16>, vector<16x16x32xbf16>, vector<16x16x32xbf16> -> vector<16x16x512xbf16>
    %77 = tpu.concatenate %67, %68, %69, %70, %71, %72, %73, %74, %75 in 2 : vector<16x16x32xbf16>, vector<16x16x32xbf16>, vector<16x16x32xbf16>, vector<16x16x32xbf16>, vector<16x16x32xbf16>, vector<16x16x32xbf16>, vector<16x16x32xbf16>, vector<16x16x32xbf16>, vector<16x16x32xbf16> -> vector<16x16x288xbf16>
    %78 = tpu.concatenate %76, %77 in 2 : vector<16x16x512xbf16>, vector<16x16x288xbf16> -> vector<16x16x800xbf16>
    %79 = vector.shape_cast %78 : vector<16x16x800xbf16> to vector<256x800xbf16>
    %c0_50 = arith.constant 0 : index
    %c0_51 = arith.constant 0 : index
    %80 = vector.load %arg7[%c0_50, %c0_51] : memref<3x800xbf16, #tpu.memory_space<vmem>>, vector<3x800xbf16>
    %cst_52 = arith.constant dense<0.000000e+00> : vector<3x256xf32>
    %81 = tpu.matmul %80, %79, %cst_52 {dimension_numbers = #tpu.dot_dimension_numbers<[1], [1], [0], [0], [0, 0, 1, 0], [], []>} : vector<3x800xbf16>, vector<256x800xbf16>, vector<3x256xf32> -> vector<3x256xf32>
    %c0_53 = arith.constant 0 : index
    %c0_54 = arith.constant 0 : index
    %82 = vector.load %arg8[%c0_53, %c0_54] : memref<3x1xf32, #tpu.memory_space<vmem>>, vector<3x1xf32>
    %83 = vector.broadcast %82 : vector<3x1xf32> to vector<3x256xf32>
    %84 = arith.addf %81, %83 : vector<3x256xf32>
    %c0_55 = arith.constant 0 : index
    %c0_56 = arith.constant 0 : index
    %c0_57 = arith.constant 0 : index
    %c0_58 = arith.constant 0 : index
    %85 = vector.load %arg9[%c0_55, %c0_56, %c0_57, %c0_58] : memref<1x1x3x256xf32, #tpu.memory_space<vmem>>, vector<1x1x3x256xf32>
    %86 = vector.shape_cast %85 : vector<1x1x3x256xf32> to vector<3x256xf32>
    %87 = vector.shape_cast %84 : vector<3x256xf32> to vector<1x1x3x256xf32>
    tpu.vector_store %arg9[%c0_55, %c0_56, %c0_57, %c0_58], %87 {strides = array<i32>} : memref<1x1x3x256xf32, #tpu.memory_space<vmem>>, vector<1x1x3x256xf32>,
    return
  }
  func.func @transform_0(%arg0: i32, %arg1: i32) -> (i32, i32, i32, i32, i32) {
    %c0_i32 = arith.constant 0 : i32
    %c0_i32_0 = arith.constant 0 : i32
    %c0_i32_1 = arith.constant 0 : i32
    %c0_i32_2 = arith.constant 0 : i32
    return %arg0, %arg1, %c0_i32, %c0_i32_0, %c0_i32_1 : i32, i32, i32, i32, i32
  }
  func.func @transform_1(%arg0: i32, %arg1: i32) -> (i32, i32) {
    %c0_i32 = arith.constant 0 : i32
    %c0_i32_0 = arith.constant 0 : i32
    %c0_i32_1 = arith.constant 0 : i32
    return %c0_i32, %c0_i32_0 : i32, i32
  }
  func.func @transform_2(%arg0: i32, %arg1: i32) -> (i32, i32) {
    %c0_i32 = arith.constant 0 : i32
    %c0_i32_0 = arith.constant 0 : i32
    %c0_i32_1 = arith.constant 0 : i32
    return %c0_i32, %c0_i32_0 : i32, i32
  }
  func.func @transform_3(%arg0: i32, %arg1: i32) -> (i32, i32) {
    %c0_i32 = arith.constant 0 : i32
    %c0_i32_0 = arith.constant 0 : i32
    %c0_i32_1 = arith.constant 0 : i32
    return %c0_i32, %c0_i32_0 : i32, i32
  }
  func.func @transform_4(%arg0: i32, %arg1: i32) -> (i32, i32) {
    %c0_i32 = arith.constant 0 : i32
    %c0_i32_0 = arith.constant 0 : i32
    %c0_i32_1 = arith.constant 0 : i32
    return %c0_i32, %c0_i32_0 : i32, i32
  }
  func.func @transform_5(%arg0: i32, %arg1: i32) -> (i32, i32) {
    %c0_i32 = arith.constant 0 : i32
    %c0_i32_0 = arith.constant 0 : i32
    %c0_i32_1 = arith.constant 0 : i32
    return %c0_i32, %c0_i32_0 : i32, i32
  }
  func.func @transform_6(%arg0: i32, %arg1: i32) -> (i32, i32) {
    %c0_i32 = arith.constant 0 : i32
    %c0_i32_0 = arith.constant 0 : i32
    %c0_i32_1 = arith.constant 0 : i32
    return %c0_i32, %c0_i32_0 : i32, i32
  }
  func.func @transform_7(%arg0: i32, %arg1: i32) -> (i32, i32, i32, i32) {
    %c0_i32 = arith.constant 0 : i32
    %c0_i32_0 = arith.constant 0 : i32
    %c0_i32_1 = arith.constant 0 : i32
    return %arg0, %arg1, %c0_i32, %c0_i32_0 : i32, i32, i32, i32
  }
}

</mosaic_0001>

<bundles_post_ra>
// kernel: srcnn_forward.1
= control target key start
LH: loop header
LB: loop body
LE: loop exit
PB: predicated region body
PF: predicated region fallthrough
CT: control target
= control target key end

     0   :  { %s7348_s24 = smov 0   ;;  %s7350_s25 = smov 0   ;;  %s10880_s0 = inlined_call_operand.vmem [shape: bf16[2,1,28,16,27], index: 0, kind: input, shape index: {}]   ;;  %s10881_s1 = inlined_call_operand.vmem [shape: bf16[243,256], index: 1, kind: input, shape index: {}]   ;;  %s10882_s2 = inlined_call_operand.vmem [shape: f32[1,256], index: 2, kind: input, shape index: {}]   ;;  %s10883_s3 = inlined_call_operand.vmem [shape: bf16[256,32], index: 3, kind: input, shape index: {}]   ;;  %s10884_s4 = inlined_call_operand.vmem [shape: f32[1,32], index: 4, kind: input, shape index: {}]   ;;  %s10885_s5 = inlined_call_operand.vmem [shape: bf16[3,800], index: 5, kind: input, shape index: {}]   ;;  %s10886_s6 = inlined_call_operand.vmem [shape: f32[3,1], index: 6, kind: input, shape index: {}]   ;;  %s10887_s7 = inlined_call_operand.vmem [shape: f32[2,1,3,256], index: 7, kind: output, shape index: {}]  }
   0x1   :  { %s7352_s26 = smov 0  }
   0x2 LB: > { %s29_s27 = sadd.s32 1, %s7288_s25  ;;  %p6341_p0 = scmp.ge.s32.totalorder %s7292_s26, 1  ;;  %s7292_s26 = sphi %s7352_s26, %s17_s26   ;;  %s7288_s25 = sphi %s7350_s25, %s11752_s25   ;;  %s7284_s24 = sphi %s7348_s24, %s11751_s24  }
   0x3   : > { %p31_p1 = scmp.ge.s32.totalorder %s29_s27, 2  ;;  %p257_p2 = scmp.lt.s32.totalorder %s7292_s26, 3 }
   0x5   : > { %s11754_s27 = smov (%p31_p1, %s29_s27), 0  ;;  %p258_p3 = pnand %p6341_p0, %p257_p2 }
   0x7   : > { %261 = sbr.rel (%p258_p3) target bundleno = 1501 (0x5dd), region = 48 }
   0xc   : > { %p297_p4 = scmp.lt.s32.totalorder %s7284_s24, 1  ;;  %v7058_v0 = vld [vmem:[%s10881_s1 + $0x74] ss:$8 sps:$4 sm:$0xff]   ;;  %v7060_v1 = vld [vmem:[%s10881_s1 + $0x70] ss:$8 sps:$4 sm:$0xff]   ;;  %s7294_s23 = smov 108  }
   0xd   : > { %2521 = vmatprep.subr.bf16.mxu0 %v7058_v0  ;;  %v7063_v2 = vld [vmem:[%s10881_s1 + $0x64] ss:$8 sps:$4 sm:$0xff]   ;;  %v7065_v3 = vld [vmem:[%s10881_s1 + $0x60] ss:$8 sps:$4 sm:$0xff]   ;;  %v7068_v4 = vld [vmem:[%s10881_s1 + $0x54] ss:$8 sps:$4 sm:$0xff]  }
   0xe   : > { %s11756_s24 = smov (!%p297_p4, %s7284_s24), 1  ;;  %2522 = vmatpush1.bf16.msra.mxu0 %v7060_v1  ;;  %v7070_v5 = vld [vmem:[%s10881_s1 + $0x50] ss:$8 sps:$4 sm:$0xff]   ;;  %v7073_v6 = vld [vmem:[%s10881_s1 + $0x44] ss:$8 sps:$4 sm:$0xff]   ;;  %s7295_s28 = smov 27  }
   0xf   : > { %s6944_s13 = smul.u32 224, %s11756_s24  ;;  %2523 = vmatprep.subr.bf16.mxu0 %v7063_v2  ;;  %v7075_v11 = vld [vmem:[%s10881_s1 + $0x40] ss:$8 sps:$4 sm:$0xff]   ;;  %v7078_v12 = vld [vmem:[%s10881_s1 + $0x34] ss:$8 sps:$4 sm:$0xff]   ;;  %s7296_s10 = smov 7  }
  0x10   : > { %s7297_s11 = smov 34   ;;  %v7080_v15 = vld [vmem:[%s10881_s1 + $0x30] ss:$8 sps:$4 sm:$0xff]   ;;  %s7298_s14 = smov 54   ;;  %v7083_v34 = vld [vmem:[%s10881_s1 + $0x24] ss:$8 sps:$4 sm:$0xff]  }
  0x11   : > { %s7387_s18 = scalar_lea.vmem %s10880_s0, %s6944_s13  ;;  %s7299_s15 = smov 61   ;;  %v7085_v35 = vld [vmem:[%s10881_s1 + $0x20] ss:$8 sps:$4 sm:$0xff]   ;;  %vm2511_vm0 = vcmask 1040384   ;;  %v7088_v38 = vld [vmem:[%s10881_s1 + $0x14] ss:$8 sps:$4 sm:$0xff]  }
  0x12   : > { %v7024_v7 = vld [vmem:[%s7387_s18 + $0x20] sm:$0xff]   ;;  %2524 = vmatpush1.bf16.msra.mxu0 %v7065_v3  ;;  %v7025_v8 = vld [vmem:[%s7387_s18 + $0x8] sm:$0xff]   ;;  %v7027_v10 = vld [vmem:[%s7387_s18 + $0x30] sm:$0xff]   ;;  %s7300_s16 = smov 81   ;;  %s7301_s17 = smov 88   ;;  %vm2512_vm1 = vcmask 1041408  }
  0x13   : > { %2525 = vmatprep.subr.bf16.mxu0 %v7068_v4  ;;  %1304 = vrot.lane.b32.xlu0 %v7024_v7, %s7294_s23  ;;  %v7026_v9 = vld [vmem:[%s7387_s18 + $0x28] sm:$0xff]   ;;  %v7028_v13 = vld [vmem:[%s7387_s18 + $0x10] sm:$0xff]   ;;  %v7029_v14 = vld [vmem:[%s7387_s18 + $0x38] sm:$0xff]   ;;  %v7302_v42 = vmov 65535   ;;  %vm2108_vm2 = vcmask 56320   ;;  %vm1904_vm3 = vcmask 220160  }
  0x14   : > { %884 = vrot.lane.b32.xlu1 %v7025_v8, %s7295_s28  ;;  %v7030_v16 = vld [vmem:[%s7387_s18 + $0x18] sm:$0xff]   ;;  %v7031_v17 = vld [vmem:[%s7387_s18 + $0x40] sm:$0xff]   ;;  %v7032_v18 = vld [vmem:[%s7387_s18 + $0x28] sm:$0xff]   ;;  %v2513_v43 = vsel %vm2511_vm0, 4294967295, %v7302_v42  ;;  %vm2149_vm4 = vcmask 277504   ;;  %vm1965_vm5 = vcmask 441344  }
  0x15   : > { %v7033_v19 = vld [vmem:[%s7387_s18 + $0x30] sm:$0xff]   ;;  %v7035_v21 = vld [vmem:[%s7387_s18 + $0x38] sm:$0xff]   ;;  %v7037_v23 = vld [vmem:[%s7387_s18 + $0x40] sm:$0xff]   ;;  %v2514_v47 = vsel %vm2512_vm1, %v2513_v43, 0  ;;  %vm2190_vm6 = vcmask 498688   ;;  %vm2006_vm7 = vcmask 662528  }
  0x16   : > { %2526 = vmatpush1.bf16.msra.mxu0 %v7070_v5  ;;  %v7034_v20 = vld [vmem:[%s7387_s18 + $0x10] sm:$0xff]   ;;  %v7036_v22 = vld [vmem:[%s7387_s18 + $0x18] sm:$0xff]   ;;  %v7038_v24 = vld [vmem:[%s7387_s18 + $0x20] sm:$0xff]   ;;  %vm2231_vm8 = vcmask 719872   ;;  %vm2047_vm9 = vcmask 883712   ;;  %vm2470_vm10 = vcmask 941056  }
  0x17   : > { %2527 = vmatprep.subr.bf16.mxu0 %v7073_v6  ;;  %1444 = vrot.lane.b32.xlu0 %v7026_v9, %s7296_s10  ;;  %v7039_v25 = vld [vmem:[%s7387_s18 + $0x48] sm:$0xff]   ;;  %v7040_v26 = vld [vmem:[%s7387_s18 + $0x30] sm:$0xff]   ;;  %v7041_v27 = vld [vmem:[%s7387_s18 + $0x38] sm:$0xff]   ;;  %vm3465_vm11 = vsmask.f32 7424  ;;  %vm3690_vm12 = vcmask 1046528  }
  0x18   : > { %1584 = vrot.lane.b32.xlu1 %v7027_v10, %s7297_s11  ;;  %v7042_v28 = vld [vmem:[%s7387_s18 + $0x18] sm:$0xff]   ;;  %v7043_v29 = vld [vmem:[%s7387_s18 + $0x40] sm:$0xff]   ;;  %v7045_v31 = vld [vmem:[%s7387_s18 + $0x48] sm:$0xff]   ;;  %vm3771_vm13 = vsmask.f32 6400  ;;  %vm3948_vm14 = vcmask 1045504  }
  0x19   : > { %v7044_v30 = vld [vmem:[%s7387_s18 + $0x20] sm:$0xff]   ;;  %v7046_v32 = vld [vmem:[%s7387_s18 + $0x28] sm:$0xff]   ;;  %v7047_v33 = vld [vmem:[%s7387_s18 + $0x50] sm:$0xff]   ;;  %vm4340_vm15 = vcmask 261120   ;;  %vm4373_vm1 = vcmask 523264   ;;  %s6917_s19 = sshll.u32 %s11756_s24, 3 }
  0x1a   : > { %2528 = vmatpush1.bf16.msra.mxu0 %v7075_v11  ;;  %v7048_v36 = vld [vmem:[%s7387_s18 + $0x38] sm:$0xff]   ;;  %v7049_v37 = vld [vmem:[%s7387_s18 + $0x40] sm:$0xff]   ;;  %v7051_v41 = vld [vmem:[%s7387_s18 + $0x48] sm:$0xff]   ;;  %s314_s22 = scalar_lea.vmem %s10887_s7, %s6917_s19 }
  0x1b   : > { %2529 = vmatprep.subr.bf16.mxu0 %v7078_v12  ;;  %1024 = vrot.lane.b32.xlu0 %v7028_v13, %s7298_s14  ;;  %v7090_v39 = vld [vmem:[%s10881_s1 + $0x10] ss:$8 sps:$4 sm:$0xff]   ;;  %v7050_v40 = vld [vmem:[%s7387_s18 + $0x20] sm:$0xff]   ;;  %v7052_v46 = vld [vmem:[%s7387_s18 + $0x28] sm:$0xff]  }
  0x1c   : > { %1724 = vrot.lane.b32.xlu1 %v7029_v14, %s7299_s15  ;;  %v7093_v44 = vld [vmem:[%s10881_s1 + $0x4] ss:$8 sps:$4 sm:$0xff]   ;;  %v7095_v45 = vld [vmem:[%s10881_s1] ss:$8 sps:$4 sm:$0xff]   ;;  %v2302_v48 = vld [vmem:[%s10881_s1 + $0xf0] sm:$0x33] }
  0x1d   : > { %v7053_v49 = vld [vmem:[%s7387_s18 + $0x50] sm:$0xff]   ;;  %v6876_v50 = vcombine.high %v2302_v48, %v2302_v48  ;;  %v6875_v51 = vcombine.low %v2302_v48, %v2302_v48  ;;  %v7102_v54 = vld [vmem:[%s10881_s1 + $0xe4] ss:$8 sps:$4 sm:$0xff]   ;;  %v7055_v56 = vld [vmem:[%s7387_s18 + $0x58] sm:$0xff]  }
  0x1e   : > { %2530 = vmatpush1.bf16.msra.mxu0 %v7080_v15  ;;  %v7054_v55 = vld [vmem:[%s7387_s18 + $0x30] sm:$0xff]   ;;  %v7104_v57 = vld [vmem:[%s10881_s1 + $0xe0] ss:$8 sps:$4 sm:$0xff]   ;;  %v7112_v62 = vld [vmem:[%s10881_s1 + $0xc4] ss:$8 sps:$4 sm:$0xff]  }
  0x1f   : > { %1164 = vrot.lane.b32.xlu0 %v7030_v16, %s7300_s16  ;;  %2531 = vmatprep.subr.bf16.mxu0 %v7083_v34  ;;  %v2519_v52 = vand.u32 %v6876_v50, %v2514_v47  ;;  %v2516_v53 = vand.u32 %v6875_v51, %v2514_v47  ;;  %v7107_v58 = vld [vmem:[%s10881_s1 + $0xd4] ss:$8 sps:$4 sm:$0xff]   ;;  %v7056_v59 = vld [vmem:[%s7387_s18 + $0x40] sm:$0xff]   ;;  %v7057_v60 = vld [vmem:[%s7387_s18 + $0x48] sm:$0xff]  }
  0x20   : > { %1864 = vrot.lane.b32.xlu1 %v7031_v17, %s7301_s17  ;;  %v7109_v61 = vld [vmem:[%s10881_s1 + $0xd0] ss:$8 sps:$4 sm:$0xff]   ;;  %v7061_v63 = vld [vmem:[%s7387_s18 + $0x28] sm:$0xff]   ;;  %v7115_v2 = vld [vmem:[%s10881_s1 + $0xb4] ss:$8 sps:$4 sm:$0xff]  }
  0x21   : > { %v7062_v0 = vld [vmem:[%s7387_s18 + $0x50] sm:$0xff]   ;;  %v7114_v1 = vld [vmem:[%s10881_s1 + $0xc0] ss:$8 sps:$4 sm:$0xff]   ;;  %v7067_v4 = vld [vmem:[%s7387_s18 + $0x58] sm:$0xff]  }
  0x22   : > { %2532 = vmatpush1.bf16.msra.mxu0 %v7085_v35  ;;  %v7066_v3 = vld [vmem:[%s7387_s18 + $0x30] sm:$0xff]   ;;  %v7119_v6 = vld [vmem:[%s10881_s1 + $0xa4] ss:$8 sps:$4 sm:$0xff]   ;;  %v7071_v7 = vld [vmem:[%s7387_s18 + $0x38] sm:$0xff]  }
  0x23   : > { %1306 = vrot.lane.b32.xlu0 %v7032_v18, %s7294_s23  ;;  %2533 = vmatprep.subr.bf16.mxu0 %v7088_v38  ;;  %v7117_v5 = vld [vmem:[%s10881_s1 + $0xb0] ss:$8 sps:$4 sm:$0xff]   ;;  %v7072_v8 = vld [vmem:[%s7387_s18 + $0x60] sm:$0xff]   ;;  %v7124_v10 = vld [vmem:[%s10881_s1 + $0x94] ss:$8 sps:$4 sm:$0xff]  }
  0x24   : > { %1446 = vrot.lane.b32.xlu1 %v7033_v19, %s7296_s10  ;;  %v7121_v9 = vld [vmem:[%s10881_s1 + $0xa0] ss:$8 sps:$4 sm:$0xff]   ;;  %v7077_v12 = vld [vmem:[%s7387_s18 + $0x50] sm:$0xff]   ;;  %v7129_v14 = vld [vmem:[%s10881_s1 + $0x84] ss:$8 sps:$4 sm:$0xff]  }
  0x25   : > { %v7076_v11 = vld [vmem:[%s7387_s18 + $0x48] sm:$0xff]   ;;  %v7126_v13 = vld [vmem:[%s10881_s1 + $0x90] ss:$8 sps:$4 sm:$0xff]   ;;  %v7087_v19 = vld [vmem:[%s7387_s18 + $0x60] sm:$0xff]  }
  0x26   : > { %2534 = vmatpush1.bf16.msra.mxu0 %v7090_v39  ;;  %v7081_v15 = vld [vmem:[%s7387_s18 + $0x30] sm:$0xff]   ;;  %v7082_v16 = vld [vmem:[%s7387_s18 + $0x58] sm:$0xff]   ;;  %v7131_v17 = vld [vmem:[%s10881_s1 + $0x80] ss:$8 sps:$4 sm:$0xff]  }
  0x27   : > { %886 = vrot.lane.b32.xlu0 %v7034_v20, %s7295_s28  ;;  %2535 = vmatprep.subr.bf16.mxu0 %v7093_v44  ;;  %v7086_v18 = vld [vmem:[%s7387_s18 + $0x38] sm:$0xff]   ;;  %v7091_v20 = vld [vmem:[%s7387_s18 + $0x40] sm:$0xff]   ;;  %v7138_v48 = vld [vmem:[%s7387_s18 + $0x68] sm:$0xff]  }
  0x28   : > { %1586 = vrot.lane.b32.xlu1 %v7035_v21, %s7297_s11  ;;  %v7092_v21 = vld [vmem:[%s7387_s18 + $0x68] sm:$0xff]   ;;  %v7118_v39 = vld [vmem:[%s7387_s18] sm:$0xff]   ;;  %v7135_v42 = vld [vmem:[%s7387_s18 + $0x78] sm:$0xff]  }
  0x2a   : > { %2536 = vmatpush1.bf16.msra.mxu0 %v7095_v45 }
  0x2b   : > { %1026 = vrot.lane.b32.xlu0 %v7036_v22, %s7298_s14  ;;  %2537 = vmatprep.subr.bf16.mxu0 %v2519_v52  ;;  %v7096_v22 = vld [vmem:[%s7387_s18 + $0x50] sm:$0xff]  }
  0x2c   : > { %1726 = vrot.lane.b32.xlu1 %v7037_v23, %s7299_s15  ;;  %v7097_v23 = vld [vmem:[%s7387_s18 + $0x58] sm:$0xff]  }
  0x2e   : > { %2538 = vmatpush2.bf16.msra.mxu0 %v2516_v53 }
  0x2f   : > { %1166 = vrot.lane.b32.xlu0 %v7038_v24, %s7300_s16  ;;  %2539 = vmatprep.subr.bf16.mxu0 %v7102_v54  ;;  %v7100_v24 = vld [vmem:[%s7387_s18 + $0x38] sm:$0xff]  }
  0x30   : > { %1866 = vrot.lane.b32.xlu1 %v7039_v25, %s7301_s17  ;;  %v7101_v25 = vld [vmem:[%s7387_s18 + $0x60] sm:$0xff]  }
  0x32   : > { %2540 = vmatpush2.bf16.msra.mxu0 %v7104_v57 }
  0x33   : > { %1308 = vrot.lane.b32.xlu0 %v7040_v26, %s7294_s23  ;;  %2541 = vmatprep.subr.bf16.mxu0 %v7107_v58  ;;  %v7105_v26 = vld [vmem:[%s7387_s18 + $0x40] sm:$0xff]   ;;  %v7140_v58 = vld [vmem:[%s7387_s18 + $0x70] sm:$0xff]  }
  0x34   : > { %1448 = vrot.lane.b32.xlu1 %v7041_v27, %s7296_s10  ;;  %v7106_v27 = vld [vmem:[%s7387_s18 + $0x68] sm:$0xff]  }
  0x36   : > { %2542 = vmatpush2.bf16.msra.mxu0 %v7109_v61  ;;  %v7303_v61 = vmov 0  }
  0x37   : > { %888 = vrot.lane.b32.xlu0 %v7042_v28, %s7295_s28  ;;  %2543 = vmatprep.subr.bf16.mxu0 %v7112_v62  ;;  %v7110_v28 = vld [vmem:[%s7387_s18 + $0x48] sm:$0xff]  }
  0x38   : > { %1588 = vrot.lane.b32.xlu1 %v7043_v29, %s7297_s11  ;;  %v7111_v29 = vld [vmem:[%s7387_s18 + $0x70] sm:$0xff]   ;;  %3009 = vmatprep.subr.bf16.mxu1 %v7303_v61 }
  0x39   : > { %7023 = vset.pattern.permute.xlu0 %v7303_v61 }
  0x3a   : > { %2544 = vmatpush2.bf16.msra.mxu0 %v7114_v1  ;;  %v7143_v1 = vld [vmem:[%s7387_s18 + $0x78] sm:$0xff]  }
  0x3b   : > { %1028 = vrot.lane.b32.xlu0 %v7044_v30, %s7298_s14  ;;  %2545 = vmatprep.subr.bf16.mxu0 %v7115_v2  ;;  %v7122_v30 = vld [vmem:[%s7387_s18 + $0x58] sm:$0xff]  }
  0x3c   : > { %1728 = vrot.lane.b32.xlu1 %v7045_v31, %s7299_s15  ;;  %v7123_v31 = vld [vmem:[%s7387_s18 + $0x60] sm:$0xff]  }
  0x3e   : > { %2546 = vmatpush2.bf16.msra.mxu0 %v7117_v5  ;;  %v7194_v5 = vld [vmem:[%s10883_s3 + $0x28] sm:$0xff]  }
  0x3f   : > { %1168 = vrot.lane.b32.xlu0 %v7046_v32, %s7300_s16  ;;  %2547 = vmatprep.subr.bf16.mxu0 %v7119_v6  ;;  %v7127_v32 = vld [vmem:[%s7387_s18 + $0x40] sm:$0xff]   ;;  %v7144_v6 = vld [vmem:[%s7387_s18 + $0x58] sm:$0xff]  }
  0x40   : > { %1868 = vrot.lane.b32.xlu1 %v7047_v33, %s7301_s17  ;;  %v7128_v33 = vld [vmem:[%s7387_s18 + $0x68] sm:$0xff]  }
  0x42   : > { %2548 = vmatpush2.bf16.msra.mxu0 %v7121_v9 }
  0x43   : > { %1310 = vrot.lane.b32.xlu0 %v7048_v36, %s7294_s23  ;;  %2549 = vmatprep.subr.bf16.mxu0 %v7124_v10  ;;  %v7132_v36 = vld [vmem:[%s7387_s18 + $0x48] sm:$0xff]   ;;  %v7197_v10 = vld [vmem:[%s10883_s3 + $0x20] sm:$0xff]  }
  0x44   : > { %1450 = vrot.lane.b32.xlu1 %v7049_v37, %s7296_s10  ;;  %v7133_v37 = vld [vmem:[%s7387_s18 + $0x70] sm:$0xff]  }
  0x46   : > { %2550 = vmatpush2.bf16.msra.mxu0 %v7126_v13 }
  0x47   : > { %890 = vrot.lane.b32.xlu0 %v7050_v40, %s7295_s28  ;;  %2551 = vmatprep.subr.bf16.mxu0 %v7129_v14  ;;  %v7148_v14 = vld [vmem:[%s7387_s18 + $0x70] sm:$0xff]  }
  0x48   : > { %1590 = vrot.lane.b32.xlu1 %v7051_v41, %s7297_s11  ;;  %v7134_v41 = vld [vmem:[%s7387_s18 + $0x50] sm:$0xff]  }
  0x4a   : > { %2552 = vmatpush2.bf16.msra.mxu0 %v7131_v17 }
  0x4b   : > { %1030 = vrot.lane.b32.xlu0 %v7052_v46, %s7298_s14  ;;  %v7137_v46 = vld [vmem:[%s7387_s18 + $0x60] sm:$0xff]  }
  0x4c   : > { %1730 = vrot.lane.b32.xlu1 %v7053_v49, %s7299_s15 }
  0x4f   : > { %1170 = vrot.lane.b32.xlu0 %v7054_v55, %s7300_s16  ;;  %v7139_v55 = vld [vmem:[%s7387_s18 + $0x48] sm:$0xff]  }
  0x50   : > { %1870 = vrot.lane.b32.xlu1 %v7055_v56, %s7301_s17 }
  0x53   : > { %1312 = vrot.lane.b32.xlu0 %v7056_v59, %s7294_s23  ;;  %v7188_v59 = vld [vmem:[%s10883_s3 + $0x38] sm:$0xff]  }
  0x54   : > { %1452 = vrot.lane.b32.xlu1 %v7057_v60, %s7296_s10  ;;  %3010 = vmatpush1.bf16.msra.mxu1 %v7188_v59  ;;  %v7163_v59 = vld [vmem:[%s7387_s18 + $0x88] sm:$0xff]  }
  0x55   : > { %3011 = vmatprep.subr.bf16.mxu1 %v7303_v61 }
  0x57   : > { %892 = vrot.lane.b32.xlu0 %v7061_v63, %s7295_s28  ;;  %v7142_v63 = vld [vmem:[%s7387_s18 + $0x50] sm:$0xff]  }
  0x58   : > { %1592 = vrot.lane.b32.xlu1 %v7062_v0, %s7297_s11  ;;  %v7191_v0 = vld [vmem:[%s10883_s3 + $0x30] sm:$0xff]  }
  0x59   : > { %3012 = vmatpush1.bf16.msra.mxu1 %v7191_v0  ;;  %v7146_v0 = vld [vmem:[%s7387_s18 + $0x18] sm:$0xff]  }
  0x5a   : > { %3013 = vmatprep.subr.bf16.mxu1 %v7303_v61 }
  0x5b   : > { %1032 = vrot.lane.b32.xlu0 %v7066_v3, %s7298_s14  ;;  %v7136_v3 = vld [vmem:[%s7387_s18 + $0x8] sm:$0xff]  }
  0x5c   : > { %1732 = vrot.lane.b32.xlu1 %v7067_v4, %s7299_s15 }
  0x5d   : > { %3014 = vmatpush1.bf16.msra.mxu1 %v7194_v5  ;;  %v7166_v5 = vld [vmem:[%s7387_s18 + $0x78] sm:$0xff]  }
  0x5e   : > { %3015 = vmatprep.subr.bf16.mxu1 %v7303_v61 }
  0x5f   : > { %1172 = vrot.lane.b32.xlu0 %v7071_v7, %s7300_s16  ;;  %v7145_v7 = vld [vmem:[%s7387_s18 + $0x80] sm:$0xff]  }
  0x60   : > { %1872 = vrot.lane.b32.xlu1 %v7072_v8, %s7301_s17 }
  0x61   : > { %3016 = vmatpush1.bf16.msra.mxu1 %v7197_v10  ;;  %v7221_v10 = vld [vmem:[%s10883_s3 + $0x58] sm:$0xff]  }
  0x62   : > { %3017 = vmatprep.subr.bf16.mxu1 %v7303_v61 }
  0x63   : > { %1314 = vrot.lane.b32.xlu0 %v7076_v11, %s7294_s23  ;;  %v7147_v11 = vld [vmem:[%s7387_s18 + $0x68] sm:$0xff]  }
  0x64   : > { %1454 = vrot.lane.b32.xlu1 %v7077_v12, %s7296_s10 }
  0x67   : > { %894 = vrot.lane.b32.xlu0 %v7081_v15, %s7295_s28 }
  0x68   : > { %1594 = vrot.lane.b32.xlu1 %v7082_v16, %s7297_s11 }
  0x6b   : > { %1034 = vrot.lane.b32.xlu0 %v7086_v18, %s7298_s14 }
  0x6c   : > { %1734 = vrot.lane.b32.xlu1 %v7087_v19, %s7299_s15 }
  0x6f   : > { %1174 = vrot.lane.b32.xlu0 %v7091_v20, %s7300_s16 }
  0x70   : > { %1874 = vrot.lane.b32.xlu1 %v7092_v21, %s7301_s17  ;;  %v7200_v21 = vld [vmem:[%s10883_s3 + $0x18] sm:$0xff]  }
  0x71   : > { %3018 = vmatpush1.bf16.msra.mxu1 %v7200_v21 }
  0x72   : > { %3019 = vmatprep.subr.bf16.mxu1 %v7303_v61 }
  0x73   : > { %1316 = vrot.lane.b32.xlu0 %v7096_v22, %s7294_s23 }
  0x74   : > { %1456 = vrot.lane.b32.xlu1 %v7097_v23, %s7296_s10 }
  0x77   : > { %896 = vrot.lane.b32.xlu0 %v7100_v24, %s7295_s28  ;;  %v7149_v24 = vld [vmem:[%s7387_s18 + $0x50] sm:$0xff]  }
  0x78   : > { %1596 = vrot.lane.b32.xlu1 %v7101_v25, %s7297_s11  ;;  %v7150_v25 = vld [vmem:[%s7387_s18 + $0x78] sm:$0xff]  }
  0x7b   : > { %1036 = vrot.lane.b32.xlu0 %v7105_v26, %s7298_s14 }
  0x7c   : > { %1736 = vrot.lane.b32.xlu1 %v7106_v27, %s7299_s15 }
  0x7f   : > { %1176 = vrot.lane.b32.xlu0 %v7110_v28, %s7300_s16  ;;  %v7203_v28 = vld [vmem:[%s10883_s3 + $0x10] sm:$0xff]  }
  0x80   : > { %1876 = vrot.lane.b32.xlu1 %v7111_v29, %s7301_s17  ;;  %v7152_v29 = vld [vmem:[%s7387_s18 + $0x58] sm:$0xff]   ;;  %3020 = vmatpush1.bf16.msra.mxu1 %v7203_v28 }
  0x81   : > { %3021 = vmatprep.subr.bf16.mxu1 %v7303_v61 }
  0x83   : > { %1318 = vrot.lane.b32.xlu0 %v7122_v30, %s7294_s23  ;;  %v7153_v30 = vld [vmem:[%s7387_s18 + $0x80] sm:$0xff]  }
  0x84   : > { %1458 = vrot.lane.b32.xlu1 %v7123_v31, %s7296_s10 }
  0x85   : > { %v1305_v34 = vpop.permute.xlu0 %1304 }
  0x86   : > { %v885_v35 = vpop.permute.xlu1 %884 }
  0x87   : > { %898 = vrot.lane.b32.xlu0 %v7127_v32, %s7295_s28  ;;  %v1907_v47 = vsel %vm1904_vm3, %v7118_v39, %v885_v35  ;;  %v7141_v32 = vld [vmem:[%s7387_s18 + $0x10] sm:$0xff]   ;;  %v7154_v35 = vld [vmem:[%s7387_s18 + $0x60] sm:$0xff]  }
  0x88   : > { %1598 = vrot.lane.b32.xlu1 %v7128_v33, %s7297_s11  ;;  %v7210_v39 = vld [vmem:[%s10883_s3] sm:$0xff]  }
  0x89   : > { %v1445_v38 = vpop.permute.xlu0 %1444 }
  0x8a   : > { %v1585_v40 = vpop.permute.xlu1 %1584  ;;  %v2110_v44 = vsel %vm2108_vm2, %v1305_v34, %v1445_v38 }
  0x8b   : > { %1038 = vrot.lane.b32.xlu0 %v7132_v36, %s7298_s14  ;;  %v2151_v49 = vsel %vm2149_vm4, %v2110_v44, %v1585_v40  ;;  %v7155_v36 = vld [vmem:[%s7387_s18 + $0x88] sm:$0xff]   ;;  %v7157_v40 = vld [vmem:[%s7387_s18 + $0x70] sm:$0xff]  }
  0x8c   : > { %1738 = vrot.lane.b32.xlu1 %v7133_v37, %s7299_s15 }
  0x8d   : > { %v1025_v43 = vpop.permute.xlu0 %1024 }
  0x8e   : > { %v1725_v45 = vpop.permute.xlu1 %1724  ;;  %v1967_v50 = vsel %vm1965_vm5, %v1907_v47, %v1025_v43  ;;  %v7158_v43 = vld [vmem:[%s7387_s18 + $0x78] sm:$0xff]  }
  0x8f   : > { %1178 = vrot.lane.b32.xlu0 %v7134_v41, %s7300_s16  ;;  %v2192_v52 = vsel %vm2190_vm6, %v2151_v49, %v1725_v45 }
  0x90   : > { %1878 = vrot.lane.b32.xlu1 %v7135_v42, %s7301_s17 }
  0x91   : > { %v1165_v51 = vpop.permute.xlu0 %1164 }
  0x92   : > { %v2008_v53 = vsel %vm2006_vm7, %v1967_v50, %v1165_v51  ;;  %v1865_v54 = vpop.permute.xlu1 %1864  ;;  %v7213_v50 = vld [vmem:[%s10883_s3 + $0x78] sm:$0xff]  }
  0x93   : > { %v2233_v56 = vsel %vm2231_vm8, %v2192_v52, %v1865_v54  ;;  %v2049_v57 = vsel %vm2047_vm9, %v2008_v53, %v1305_v34  ;;  %1320 = vrot.lane.b32.xlu0 %v7137_v46, %s7294_s23  ;;  %v7207_v34 = vld [vmem:[%s10883_s3 + $0x8] sm:$0xff]   ;;  %v7159_v53 = vld [vmem:[%s7387_s18 + $0x58] sm:$0xff]   ;;  %v7160_v54 = vld [vmem:[%s7387_s18 + $0x80] sm:$0xff]  }
  0x94   : > { %6877 = vmatprep.mubr.msk.bf16.mxu0 %vm2470_vm10, %v2233_v56  ;;  %1460 = vrot.lane.b32.xlu1 %v7138_v48, %s7296_s10  ;;  %v7162_v56 = vld [vmem:[%s7387_s18 + $0x60] sm:$0xff]  }
  0x95   : > { %2554 = vmatmul.mubr.bf16.vlgmr.msra.gmra.mxu0 %v2049_v57  ;;  %v1307_v60 = vpop.permute.xlu0 %1306  ;;  %3022 = vmatpush1.bf16.msra.mxu1 %v7207_v34  ;;  %v7216_v57 = vld [vmem:[%s10883_s3 + $0x70] sm:$0xff]   ;;  %v7175_v34 = vld [vmem:[%s7387_s18 + $0x80] sm:$0xff]  }
  0x96   : > { %v1447_v62 = vpop.permute.xlu1 %1446  ;;  %3023 = vmatprep.subr.bf16.mxu1 %v7303_v61 }
  0x97   : > { %900 = vrot.lane.b32.xlu0 %v7139_v55, %s7295_s28  ;;  %v2112_v12 = vsel %vm2108_vm2, %v1307_v60, %v1447_v62 }
  0x98   : > { %1600 = vrot.lane.b32.xlu1 %v7140_v58, %s7297_s11 }
  0x99   : > { %v887_v2 = vpop.permute.xlu0 %886  ;;  %3024 = vmatpush1.bf16.msra.mxu1 %v7210_v39 }
  0x9a   : > { %v1587_v4 = vpop.permute.xlu1 %1586  ;;  %v1910_v13 = vsel %vm1904_vm3, %v7136_v3, %v887_v2  ;;  %3025 = vmatprep.subr.bf16.mxu1 %v7303_v61  ;;  %v7165_v2 = vld [vmem:[%s7387_s18 + $0x90] sm:$0xff]   ;;  %v7220_v3 = vld [vmem:[%s10883_s3 + $0x60] sm:$0xff]  }
  0x9b   : > { %1040 = vrot.lane.b32.xlu0 %v7142_v63, %s7298_s14  ;;  %v2153_v15 = vsel %vm2149_vm4, %v2112_v12, %v1587_v4  ;;  %v7164_v63 = vld [vmem:[%s7387_s18 + $0x68] sm:$0xff]  }
  0x9c   : > { %1740 = vrot.lane.b32.xlu1 %v7143_v1, %s7299_s15 }
  0x9d   : > { %v1027_v8 = vpop.permute.xlu0 %1026  ;;  %3026 = vmatpush2.bf16.msra.mxu1 %v7213_v50  ;;  %v7156_v50 = vld [vmem:[%s7387_s18 + $0x28] sm:$0xff]  }
  0x9e   : > { %v1727_v9 = vpop.permute.xlu1 %1726  ;;  %v1969_v16 = vsel %vm1965_vm5, %v1910_v13, %v1027_v8  ;;  %3027 = vmatprep.subr.bf16.mxu1 %v7303_v61 }
  0x9f   : > { %1180 = vrot.lane.b32.xlu0 %v7144_v6, %s7300_s16  ;;  %v2194_v18 = vsel %vm2190_vm6, %v2153_v15, %v1727_v9 }
  0xa0   : > { %1880 = vrot.lane.b32.xlu1 %v7145_v7, %s7301_s17  ;;  %v7167_v7 = vld [vmem:[%s7387_s18 + $0x80] sm:$0xff]  }
  0xa1   : > { %v1167_v17 = vpop.permute.xlu0 %1166  ;;  %3028 = vmatpush2.bf16.msra.mxu1 %v7216_v57 }
  0xa2   : > { %v2010_v19 = vsel %vm2006_vm7, %v1969_v16, %v1167_v17  ;;  %v1867_v20 = vpop.permute.xlu1 %1866  ;;  %3029 = vmatprep.subr.bf16.mxu1 %v7303_v61 }
  0xa3   : > { %v2235_v22 = vsel %vm2231_vm8, %v2194_v18, %v1867_v20  ;;  %v2052_v23 = vsel %vm2047_vm9, %v2010_v19, %v1307_v60  ;;  %1322 = vrot.lane.b32.xlu0 %v7147_v11, %s7294_s23  ;;  %v7219_v60 = vld [vmem:[%s10883_s3 + $0x68] sm:$0xff]  }
  0xa4   : > { %6878 = vmatprep.mubr.msk.bf16.mxu0 %vm2470_vm10, %v2235_v22  ;;  %1462 = vrot.lane.b32.xlu1 %v7148_v14, %s7296_s10  ;;  %v7168_v14 = vld [vmem:[%s7387_s18 + $0x60] sm:$0xff]   ;;  %v7169_v18 = vld [vmem:[%s7387_s18 + $0x88] sm:$0xff]  }
  0xa5   : > { %2564 = vmatmul.mubr.bf16.gmra.mxu0 %v2052_v23  ;;  %v1309_v26 = vpop.permute.xlu0 %1308  ;;  %3030 = vmatpush2.bf16.msra.mxu1 %v7219_v60  ;;  %v7171_v22 = vld [vmem:[%s7387_s18 + $0x68] sm:$0xff]  }
  0xa6   : > { %v1449_v27 = vpop.permute.xlu1 %1448  ;;  %3031 = vmatprep.subr.bf16.mxu1 %v7303_v61 }
  0xa7   : > { %902 = vrot.lane.b32.xlu0 %v7149_v24, %s7295_s28  ;;  %v2114_v41 = vsel %vm2108_vm2, %v1309_v26, %v1449_v27  ;;  %v7151_v24 = vld [vmem:[%s7387_s18 + $0x20] sm:$0xff]   ;;  %v7173_v27 = vld [vmem:[%s7387_s18 + $0x70] sm:$0xff]  }
  0xa8   : > { %1602 = vrot.lane.b32.xlu1 %v7150_v25, %s7297_s11  ;;  %v7172_v25 = vld [vmem:[%s7387_s18 + $0x90] sm:$0xff]  }
  0xa9   : > { %v889_v31 = vpop.permute.xlu0 %888  ;;  %3032 = vmatpush2.bf16.msra.mxu1 %v7220_v3  ;;  %v7185_v3 = vld [vmem:[%s7387_s18 + $0x90] sm:$0xff]  }
  0xaa   : > { %v1589_v33 = vpop.permute.xlu1 %1588  ;;  %v1913_v42 = vsel %vm1904_vm3, %v7141_v32, %v889_v31  ;;  %3033 = vmatprep.subr.bf16.mxu1 %v7303_v61 }
  0xab   : > { %1042 = vrot.lane.b32.xlu0 %v7152_v29, %s7298_s14  ;;  %v2155_v44 = vsel %vm2149_vm4, %v2114_v41, %v1589_v33 }
  0xac   : > { %1742 = vrot.lane.b32.xlu1 %v7153_v30, %s7299_s15  ;;  %v7174_v30 = vld [vmem:[%s7387_s18 + $0x98] sm:$0xff]  }
  0xad   : > { %v1029_v37 = vpop.permute.xlu0 %1028  ;;  %3034 = vmatpush2.bf16.msra.mxu1 %v7221_v10  ;;  %v7187_v10 = vld [vmem:[%s7387_s18 + $0x98] sm:$0xff]  }
  0xae   : > { %v1729_v38 = vpop.permute.xlu1 %1728  ;;  %v1971_v45 = vsel %vm1965_vm5, %v1913_v42, %v1029_v37  ;;  %3035 = vmatprep.subr.bf16.mxu1 %v7303_v61 }
  0xaf   : > { %1182 = vrot.lane.b32.xlu0 %v7154_v35, %s7300_s16  ;;  %v2196_v47 = vsel %vm2190_vm6, %v2155_v44, %v1729_v38 }
  0xb0   : > { %1882 = vrot.lane.b32.xlu1 %v7155_v36, %s7301_s17  ;;  %v7176_v36 = vld [vmem:[%s7387_s18 + $0x88] sm:$0xff]  }
  0xb1   : > { %v1169_v46 = vpop.permute.xlu0 %1168 }
  0xb2   : > { %v2012_v48 = vsel %vm2006_vm7, %v1971_v45, %v1169_v46  ;;  %v1869_v49 = vpop.permute.xlu1 %1868  ;;  %v7178_v45 = vld [vmem:[%s7387_s18 + $0x90] sm:$0xff]  }
  0xb3   : > { %v2237_v51 = vsel %vm2231_vm8, %v2196_v47, %v1869_v49  ;;  %v2055_v52 = vsel %vm2047_vm9, %v2012_v48, %v1309_v26  ;;  %1324 = vrot.lane.b32.xlu0 %v7157_v40, %s7294_s23  ;;  %v7177_v40 = vld [vmem:[%s7387_s18 + $0x68] sm:$0xff]   ;;  %v7224_v48 = vld [vmem:[%s10883_s3 + $0x50] sm:$0xff]  }
  0xb4   : > { %6879 = vmatprep.mubr.msk.bf16.mxu0 %vm2470_vm10, %v2237_v51  ;;  %1464 = vrot.lane.b32.xlu1 %v7158_v43, %s7296_s10  ;;  %v7179_v49 = vld [vmem:[%s7387_s18 + $0x70] sm:$0xff]   ;;  %v7180_v51 = vld [vmem:[%s7387_s18 + $0x98] sm:$0xff]  }
  0xb5   : > { %2574 = vmatmul.mubr.bf16.gmra.mxu0 %v2055_v52  ;;  %v1311_v55 = vpop.permute.xlu0 %1310  ;;  %3036 = vmatpush2.bf16.msra.mxu1 %v7224_v48 }
  0xb6   : > { %v1451_v58 = vpop.permute.xlu1 %1450  ;;  %3037 = vmatprep.subr.bf16.mxu1 %v7303_v61 }
  0xb7   : > { %904 = vrot.lane.b32.xlu0 %v7159_v53, %s7295_s28  ;;  %v2116_v8 = vsel %vm2108_vm2, %v1311_v55, %v1451_v58  ;;  %v7182_v58 = vld [vmem:[%s7387_s18 + $0xa0] sm:$0xff]  }
  0xb8   : > { %1604 = vrot.lane.b32.xlu1 %v7160_v54, %s7297_s11 }
  0xb9   : > { %v891_v62 = vpop.permute.xlu0 %890 }
  0xba   : > { %v1591_v1 = vpop.permute.xlu1 %1590  ;;  %v1916_v9 = vsel %vm1904_vm3, %v7146_v0, %v891_v62 }
  0xbb   : > { %1044 = vrot.lane.b32.xlu0 %v7162_v56, %s7298_s14  ;;  %v2157_v11 = vsel %vm2149_vm4, %v2116_v8, %v1591_v1  ;;  %v7181_v56 = vld [vmem:[%s7387_s18 + $0x78] sm:$0xff]   ;;  %v7184_v1 = vld [vmem:[%s7387_s18 + $0x88] sm:$0xff]  }
  0xbc   : > { %1744 = vrot.lane.b32.xlu1 %v7163_v59, %s7299_s15 }
  0xbd   : > { %v1031_v4 = vpop.permute.xlu0 %1030 }
  0xbe   : > { %v1731_v6 = vpop.permute.xlu1 %1730  ;;  %v1973_v12 = vsel %vm1965_vm5, %v1916_v9, %v1031_v4  ;;  %v7186_v9 = vld [vmem:[%s7387_s18 + $0x70] sm:$0xff]  }
  0xbf   : > { %1184 = vrot.lane.b32.xlu0 %v7164_v63, %s7300_s16  ;;  %v2198_v15 = vsel %vm2190_vm6, %v2157_v11, %v1731_v6  ;;  %v7231_v63 = vld [vmem:[%s10883_s3 + $0x40] sm:$0xff]  }
  0xc0   : > { %1884 = vrot.lane.b32.xlu1 %v7165_v2, %s7301_s17 }
  0xc1   : > { %v1171_v13 = vpop.permute.xlu0 %1170 }
  0xc2   : > { %v2014_v16 = vsel %vm2006_vm7, %v1973_v12, %v1171_v13  ;;  %v1871_v17 = vpop.permute.xlu1 %1870  ;;  %v7189_v13 = vld [vmem:[%s7387_s18 + $0x78] sm:$0xff]  }
  0xc3   : > { %v2239_v19 = vsel %vm2231_vm8, %v2198_v15, %v1871_v17  ;;  %v2058_v20 = vsel %vm2047_vm9, %v2014_v16, %v1311_v55  ;;  %1326 = vrot.lane.b32.xlu0 %v7166_v5, %s7294_s23  ;;  %v7228_v55 = vld [vmem:[%s10883_s3 + $0x48] sm:$0xff]   ;;  %v7190_v15 = vld [vmem:[%s7387_s18 + $0xa0] sm:$0xff]  }
  0xc4   : > { %6880 = vmatprep.mubr.msk.bf16.mxu0 %vm2470_vm10, %v2239_v19  ;;  %1466 = vrot.lane.b32.xlu1 %v7167_v7, %s7296_s10  ;;  %v7192_v19 = vld [vmem:[%s7387_s18 + $0x80] sm:$0xff]  }
  0xc5   : > { %2584 = vmatmul.mubr.bf16.gmra.mxu0 %v2058_v20  ;;  %v1313_v21 = vpop.permute.xlu0 %1312  ;;  %3038 = vmatpush2.bf16.msra.mxu1 %v7228_v55 }
  0xc6   : > { %v1453_v23 = vpop.permute.xlu1 %1452  ;;  %3039 = vmatprep.subr.bf16.mxu1 %v7303_v61 }
  0xc7   : > { %906 = vrot.lane.b32.xlu0 %v7168_v14, %s7295_s28  ;;  %v2118_v28 = vsel %vm2108_vm2, %v1313_v21, %v1453_v23  ;;  %v7161_v14 = vld [vmem:[%s7387_s18 + $0x30] sm:$0xff]  }
  0xc8   : > { %1606 = vrot.lane.b32.xlu1 %v7169_v18, %s7297_s11 }
  0xc9   : > { %v893_v26 = vpop.permute.xlu0 %892  ;;  %3040 = vmatpush2.bf16.msra.mxu1 %v7231_v63 }
  0xca   : > { %v1593_v29 = vpop.permute.xlu1 %1592  ;;  %v1919_v31 = vsel %vm1904_vm3, %v7151_v24, %v893_v26  ;;  %v7195_v26 = vld [vmem:[%s7387_s18 + $0x90] sm:$0xff]  }
  0xcb   : > { %1046 = vrot.lane.b32.xlu0 %v7171_v22, %s7298_s14  ;;  %v2159_v32 = vsel %vm2149_vm4, %v2118_v28, %v1593_v29  ;;  %v7196_v28 = vld [vmem:[%s7387_s18 + $0x98] sm:$0xff]  }
  0xcc   : > { %1746 = vrot.lane.b32.xlu1 %v7172_v25, %s7299_s15 }
  0xcd   : > { %v1033_v33 = vpop.permute.xlu0 %1032 }
  0xce   : > { %v1733_v35 = vpop.permute.xlu1 %1732  ;;  %v1975_v37 = vsel %vm1965_vm5, %v1919_v31, %v1033_v33 }
  0xcf   : > { %1186 = vrot.lane.b32.xlu0 %v7173_v27, %s7300_s16  ;;  %v2200_v38 = vsel %vm2190_vm6, %v2159_v32, %v1733_v35  ;;  %v7199_v35 = vld [vmem:[%s7387_s18 + $0xa0] sm:$0xff]  }
  0xd0   : > { %1886 = vrot.lane.b32.xlu1 %v7174_v30, %s7301_s17 }
  0xd1   : > { %v1173_v39 = vpop.permute.xlu0 %1172 }
  0xd2   : > { %v2016_v41 = vsel %vm2006_vm7, %v1975_v37, %v1173_v39  ;;  %v1873_v42 = vpop.permute.xlu1 %1872  ;;  %v7170_v39 = vld [vmem:[%s7387_s18 + $0x38] sm:$0xff]  }
  0xd3   : > { %v2241_v43 = vsel %vm2231_vm8, %v2200_v38, %v1873_v42  ;;  %v2061_v44 = vsel %vm2047_vm9, %v2016_v41, %v1313_v21  ;;  %1328 = vrot.lane.b32.xlu0 %v7175_v34, %s7294_s23  ;;  %v7193_v21 = vld [vmem:[%s7387_s18 + $0xa8] sm:$0xff]   ;;  %v7198_v34 = vld [vmem:[%s7387_s18 + $0x78] sm:$0xff]   ;;  %v7201_v38 = vld [vmem:[%s7387_s18 + $0x80] sm:$0xff]  }
  0xd4   : > { %6881 = vmatprep.mubr.msk.bf16.mxu0 %vm2470_vm10, %v2241_v43  ;;  %1468 = vrot.lane.b32.xlu1 %v7176_v36, %s7296_s10 }
  0xd5   : > { %2594 = vmatmul.mubr.bf16.gmra.mxu0 %v2061_v44  ;;  %v1315_v46 = vpop.permute.xlu0 %1314  ;;  %v7204_v44 = vld [vmem:[%s7387_s18 + $0x88] sm:$0xff]  }
  0xd6   : > { %v1455_v47 = vpop.permute.xlu1 %1454 }
  0xd7   : > { %908 = vrot.lane.b32.xlu0 %v7177_v40, %s7295_s28  ;;  %v2120_v53 = vsel %vm2108_vm2, %v1315_v46, %v1455_v47  ;;  %v7202_v40 = vld [vmem:[%s7387_s18 + $0xa8] sm:$0xff]  }
  0xd8   : > { %1608 = vrot.lane.b32.xlu1 %v7178_v45, %s7297_s11 }
  0xd9   : > { %v895_v52 = vpop.permute.xlu0 %894 }
  0xda   : > { %v1595_v54 = vpop.permute.xlu1 %1594  ;;  %v1922_v57 = vsel %vm1904_vm3, %v7156_v50, %v895_v52 }
  0xdb   : > { %1048 = vrot.lane.b32.xlu0 %v7179_v49, %s7298_s14  ;;  %v2161_v59 = vsel %vm2149_vm4, %v2120_v53, %v1595_v54  ;;  %v7209_v53 = vld [vmem:[%s7387_s18 + $0xa0] sm:$0xff]  }
  0xdc   : > { %1748 = vrot.lane.b32.xlu1 %v7180_v51, %s7299_s15  ;;  %v7208_v51 = vld [vmem:[%s7387_s18 + $0x98] sm:$0xff]  }
  0xdd   : > { %v1035_v60 = vpop.permute.xlu0 %1034 }
  0xde   : > { %v1735_v62 = vpop.permute.xlu1 %1734  ;;  %v1977_v0 = vsel %vm1965_vm5, %v1922_v57, %v1035_v60  ;;  %v7212_v60 = vld [vmem:[%s7387_s18 + $0xa8] sm:$0xff]  }
  0xdf   : > { %1188 = vrot.lane.b32.xlu0 %v7181_v56, %s7300_s16  ;;  %v2202_v2 = vsel %vm2190_vm6, %v2161_v59, %v1735_v62  ;;  %v7211_v59 = vld [vmem:[%s7387_s18 + $0x80] sm:$0xff]  }
  0xe0   : > { %1888 = vrot.lane.b32.xlu1 %v7182_v58, %s7301_s17 }
  0xe1   : > { %v1175_v4 = vpop.permute.xlu0 %1174 }
  0xe2   : > { %v2018_v5 = vsel %vm2006_vm7, %v1977_v0, %v1175_v4  ;;  %v1875_v6 = vpop.permute.xlu1 %1874  ;;  %v7214_v0 = vld [vmem:[%s7387_s18 + $0x88] sm:$0xff]  }
  0xe3   : > { %v2243_v7 = vsel %vm2231_vm8, %v2202_v2, %v1875_v6  ;;  %v2064_v8 = vsel %vm2047_vm9, %v2018_v5, %v1315_v46  ;;  %1330 = vrot.lane.b32.xlu0 %v7184_v1, %s7294_s23  ;;  %v7205_v46 = vld [vmem:[%s7387_s18 + $0xb0] sm:$0xff]   ;;  %v7183_v1 = vld [vmem:[%s7387_s18 + $0x40] sm:$0xff]  }
  0xe4   : > { %6882 = vmatprep.mubr.msk.bf16.mxu0 %vm2470_vm10, %v2243_v7  ;;  %1470 = vrot.lane.b32.xlu1 %v7185_v3, %s7296_s10  ;;  %v7215_v2 = vld [vmem:[%s7387_s18 + $0xb0] sm:$0xff]  }
  0xe5   : > { %2604 = vmatmul.mubr.bf16.gmra.mxu0 %v2064_v8  ;;  %v1317_v11 = vpop.permute.xlu0 %1316  ;;  %v7217_v6 = vld [vmem:[%s7387_s18 + $0x90] sm:$0xff]   ;;  %v7218_v8 = vld [vmem:[%s7387_s18 + $0xb8] sm:$0xff]  }
  0xe6   : > { %v1457_v12 = vpop.permute.xlu1 %1456 }
  0xe7   : > { %910 = vrot.lane.b32.xlu0 %v7186_v9, %s7295_s28  ;;  %v2122_v17 = vsel %vm2108_vm2, %v1317_v11, %v1457_v12 }
  0xe8   : > { %1610 = vrot.lane.b32.xlu1 %v7187_v10, %s7297_s11 }
  0xe9   : > { %v897_v16 = vpop.permute.xlu0 %896 }
  0xea   : > { %v1597_v18 = vpop.permute.xlu1 %1596  ;;  %v1925_v20 = vsel %vm1904_vm3, %v7161_v14, %v897_v16 }
  0xeb   : > { %1050 = vrot.lane.b32.xlu0 %v7189_v13, %s7298_s14  ;;  %v2163_v22 = vsel %vm2149_vm4, %v2122_v17, %v1597_v18  ;;  %v7222_v13 = vld [vmem:[%s7387_s18 + $0xa0] sm:$0xff]  }
  0xec   : > { %1750 = vrot.lane.b32.xlu1 %v7190_v15, %s7299_s15  ;;  %v7223_v15 = vld [vmem:[%s7387_s18 + $0xa8] sm:$0xff]  }
  0xed   : > { %v1037_v23 = vpop.permute.xlu0 %1036 }
  0xee   : > { %v1737_v24 = vpop.permute.xlu1 %1736  ;;  %v1979_v25 = vsel %vm1965_vm5, %v1925_v20, %v1037_v23 }
  0xef   : > { %1190 = vrot.lane.b32.xlu0 %v7192_v19, %s7300_s16  ;;  %v2204_v27 = vsel %vm2190_vm6, %v2163_v22, %v1737_v24  ;;  %v7227_v22 = vld [vmem:[%s7387_s18 + $0xb0] sm:$0xff]  }
  0xf0   : > { %1890 = vrot.lane.b32.xlu1 %v7193_v21, %s7301_s17  ;;  %v7226_v21 = vld [vmem:[%s7387_s18 + $0x88] sm:$0xff]  }
  0xf1   : > { %v1177_v29 = vpop.permute.xlu0 %1176 }
  0xf2   : > { %v2020_v30 = vsel %vm2006_vm7, %v1979_v25, %v1177_v29  ;;  %v1877_v31 = vpop.permute.xlu1 %1876  ;;  %v7229_v25 = vld [vmem:[%s7387_s18 + $0x90] sm:$0xff]  }
  0xf3   : > { %v2245_v32 = vsel %vm2231_vm8, %v2204_v27, %v1877_v31  ;;  %v2067_v33 = vsel %vm2047_vm9, %v2020_v30, %v1317_v11  ;;  %1332 = vrot.lane.b32.xlu0 %v7195_v26, %s7294_s23  ;;  %v7206_v26 = vld [vmem:[%s7387_s18 + $0x48] sm:$0xff]   ;;  %v7230_v27 = vld [vmem:[%s7387_s18 + $0xb8] sm:$0xff]  }
  0xf4   : > { %6883 = vmatprep.mubr.msk.bf16.mxu0 %vm2470_vm10, %v2245_v32  ;;  %1472 = vrot.lane.b32.xlu1 %v7196_v28, %s7296_s10  ;;  %v7232_v31 = vld [vmem:[%s7387_s18 + $0x98] sm:$0xff]  }
  0xf5   : > { %2614 = vmatmul.mubr.bf16.gmra.mxu0 %v2067_v33  ;;  %v1319_v36 = vpop.permute.xlu0 %1318  ;;  %v7233_v33 = vld [vmem:[%s7387_s18 + $0xc0] sm:$0xff]  }
  0xf6   : > { %v1459_v37 = vpop.permute.xlu1 %1458 }
  0xf7   : > { %912 = vrot.lane.b32.xlu0 %v7198_v34, %s7295_s28  ;;  %v2124_v42 = vsel %vm2108_vm2, %v1319_v36, %v1459_v37 }
  0xf8   : > { %1612 = vrot.lane.b32.xlu1 %v7199_v35, %s7297_s11 }
  0xf9   : > { %v899_v41 = vpop.permute.xlu0 %898 }
  0xfa   : > { %v1599_v43 = vpop.permute.xlu1 %1598  ;;  %v1928_v45 = vsel %vm1904_vm3, %v7170_v39, %v899_v41 }
  0xfb   : > { %1052 = vrot.lane.b32.xlu0 %v7201_v38, %s7298_s14  ;;  %v2165_v47 = vsel %vm2149_vm4, %v2124_v42, %v1599_v43  ;;  %v7234_v38 = vld [vmem:[%s7387_s18 + $0xa8] sm:$0xff]  }
  0xfc   : > { %1752 = vrot.lane.b32.xlu1 %v7202_v40, %s7299_s15  ;;  %v7235_v40 = vld [vmem:[%s7387_s18 + $0xb0] sm:$0xff]  }
  0xfd   : > { %v1039_v48 = vpop.permute.xlu0 %1038 }
  0xfe   : > { %v1739_v49 = vpop.permute.xlu1 %1738  ;;  %v1981_v50 = vsel %vm1965_vm5, %v1928_v45, %v1039_v48 }
  0xff   : > { %1192 = vrot.lane.b32.xlu0 %v7204_v44, %s7300_s16  ;;  %v2206_v52 = vsel %vm2190_vm6, %v2165_v47, %v1739_v49  ;;  %v7237_v47 = vld [vmem:[%s7387_s18 + $0xb8] sm:$0xff]  }
 0x100   : > { %1892 = vrot.lane.b32.xlu1 %v7205_v46, %s7301_s17  ;;  %v7236_v46 = vld [vmem:[%s7387_s18 + $0x90] sm:$0xff]  }
 0x101   : > { %v1179_v54 = vpop.permute.xlu0 %1178 }
 0x102   : > { %v2022_v55 = vsel %vm2006_vm7, %v1981_v50, %v1179_v54  ;;  %v1879_v56 = vpop.permute.xlu1 %1878  ;;  %v7238_v50 = vld [vmem:[%s7387_s18 + $0x98] sm:$0xff]  }
 0x103   : > { %v2247_v57 = vsel %vm2231_vm8, %v2206_v52, %v1879_v56  ;;  %v2070_v58 = vsel %vm2047_vm9, %v2022_v55, %v1319_v36  ;;  %1334 = vrot.lane.b32.xlu0 %v7208_v51, %s7294_s23  ;;  %v7225_v51 = vld [vmem:[%s7387_s18 + $0x50] sm:$0xff]   ;;  %v7239_v52 = vld [vmem:[%s7387_s18 + $0xc0] sm:$0xff]  }
 0x104   : > { %6884 = vmatprep.mubr.msk.bf16.mxu0 %vm2470_vm10, %v2247_v57  ;;  %1474 = vrot.lane.b32.xlu1 %v7209_v53, %s7296_s10  ;;  %v7241_v56 = vld [vmem:[%s7387_s18 + $0xa0] sm:$0xff]  }
 0x105   : > { %2624 = vmatmul.mubr.bf16.gmra.mxu0 %v2070_v58  ;;  %v1321_v62 = vpop.permute.xlu0 %1320  ;;  %v7242_v58 = vld [vmem:[%s7387_s18 + $0xc8] sm:$0xff]  }
 0x106   : > { %v1461_v63 = vpop.permute.xlu1 %1460 }
 0x107   : > { %914 = vrot.lane.b32.xlu0 %v7211_v59, %s7295_s28  ;;  %v2126_v4 = vsel %vm2108_vm2, %v1321_v62, %v1461_v63 }
 0x108   : > { %1614 = vrot.lane.b32.xlu1 %v7212_v60, %s7297_s11 }
 0x109   : > { %v901_v3 = vpop.permute.xlu0 %900 }
 0x10a   : > { %v1601_v5 = vpop.permute.xlu1 %1600  ;;  %v1931_v7 = vsel %vm1904_vm3, %v7183_v1, %v901_v3 }
 0x10b   : > { %1054 = vrot.lane.b32.xlu0 %v7214_v0, %s7298_s14  ;;  %v2167_v9 = vsel %vm2149_vm4, %v2126_v4, %v1601_v5 }
 0x10c   : > { %1754 = vrot.lane.b32.xlu1 %v7215_v2, %s7299_s15 }
 0x10d   : > { %v1041_v10 = vpop.permute.xlu0 %1040 }
 0x10e   : > { %v1741_v11 = vpop.permute.xlu1 %1740  ;;  %v1983_v12 = vsel %vm1965_vm5, %v1931_v7, %v1041_v10 }
 0x10f   : > { %1194 = vrot.lane.b32.xlu0 %v7217_v6, %s7300_s16  ;;  %v2208_v14 = vsel %vm2190_vm6, %v2167_v9, %v1741_v11 }
 0x110   : > { %1894 = vrot.lane.b32.xlu1 %v7218_v8, %s7301_s17  ;;  %v7240_v8 = vld [vmem:[%s7387_s18 + $0x58] sm:$0xff]  }
 0x111   : > { %v1181_v16 = vpop.permute.xlu0 %1180 }
 0x112   : > { %v2024_v17 = vsel %vm2006_vm7, %v1983_v12, %v1181_v16  ;;  %v1881_v18 = vpop.permute.xlu1 %1880 }
 0x113   : > { %v2249_v19 = vsel %vm2231_vm8, %v2208_v14, %v1881_v18  ;;  %v2073_v20 = vsel %vm2047_vm9, %v2024_v17, %v1321_v62  ;;  %1336 = vrot.lane.b32.xlu0 %v7222_v13, %s7294_s23 }
 0x114   : > { %6885 = vmatprep.mubr.msk.bf16.mxu0 %vm2470_vm10, %v2249_v19  ;;  %1476 = vrot.lane.b32.xlu1 %v7223_v15, %s7296_s10 }
 0x115   : > { %2634 = vmatmul.mubr.bf16.gmra.mxu0 %v2073_v20  ;;  %v1323_v23 = vpop.permute.xlu0 %1322 }
 0x116   : > { %v1463_v24 = vpop.permute.xlu1 %1462 }
 0x117   : > { %916 = vrot.lane.b32.xlu0 %v7226_v21, %s7295_s28  ;;  %v2128_v29 = vsel %vm2108_vm2, %v1323_v23, %v1463_v24 }
 0x118   : > { %1616 = vrot.lane.b32.xlu1 %v7227_v22, %s7297_s11 }
 0x119   : > { %v903_v28 = vpop.permute.xlu0 %902 }
 0x11a   : > { %v1603_v30 = vpop.permute.xlu1 %1602  ;;  %v1934_v32 = vsel %vm1904_vm3, %v7206_v26, %v903_v28 }
 0x11b   : > { %1056 = vrot.lane.b32.xlu0 %v7229_v25, %s7298_s14  ;;  %v2169_v34 = vsel %vm2149_vm4, %v2128_v29, %v1603_v30  ;;  %v7243_v25 = vld [vmem:[%s7387_s18 + $0x60] sm:$0xff]   ;;  %v2305_v29 = vlaneseq }
 0x11c   : > { %1756 = vrot.lane.b32.xlu1 %v7230_v27, %s7299_s15 }
 0x11d   : > { %v1043_v35 = vpop.permute.xlu0 %1042 }
 0x11e   : > { %v1743_v36 = vpop.permute.xlu1 %1742  ;;  %v1985_v37 = vsel %vm1965_vm5, %v1934_v32, %v1043_v35 }
 0x11f   : > { %1196 = vrot.lane.b32.xlu0 %v7232_v31, %s7300_s16  ;;  %v2210_v39 = vsel %vm2190_vm6, %v2169_v34, %v1743_v36  ;;  %v7945_v34 = vshrl.u32 %v2305_v29, 7 }
 0x120   : > { %1896 = vrot.lane.b32.xlu1 %v7233_v33, %s7301_s17 }
 0x121   : > { %v1183_v41 = vpop.permute.xlu0 %1182  ;;  %11161 = vst [vmem:[#allocation2_spill] sm:$0xff] %v7945_v34 }
 0x122   : > { %v2026_v42 = vsel %vm2006_vm7, %v1985_v37, %v1183_v41  ;;  %v1883_v43 = vpop.permute.xlu1 %1882  ;;  %v2307_v41 = vsub.s32 0, %v7945_v34 }
 0x123   : > { %v2251_v44 = vsel %vm2231_vm8, %v2210_v39, %v1883_v43  ;;  %v2076_v45 = vsel %vm2047_vm9, %v2026_v42, %v1323_v23  ;;  %1338 = vrot.lane.b32.xlu0 %v7234_v38, %s7294_s23  ;;  %v2311_v38 = vsub.s32 1, %v7945_v34 }
 0x124   : > { %6886 = vmatprep.mubr.msk.bf16.mxu0 %vm2470_vm10, %v2251_v44  ;;  %1478 = vrot.lane.b32.xlu1 %v7235_v40, %s7296_s10  ;;  %v2303_v44 = vld [vmem:[%s10882_s2] sm:$0x3] }
 0x125   : > { %2644 = vmatmul.mubr.bf16.gmra.mxu0 %v2076_v45  ;;  %v1325_v48 = vpop.permute.xlu0 %1324 }
 0x126   : > { %v1465_v49 = vpop.permute.xlu1 %1464 }
 0x127   : > { %918 = vrot.lane.b32.xlu0 %v7236_v46, %s7295_s28  ;;  %v2130_v54 = vsel %vm2108_vm2, %v1325_v48, %v1465_v49  ;;  %v7960_v49 = vrot.slane %v2303_v44, %v2307_v41  ;;  %v7258_v41 = vld [vmem:[%s7387_s18 + $0xb8] sm:$0xff]  }
 0x128   : > { %1618 = vrot.lane.b32.xlu1 %v7237_v47, %s7297_s11  ;;  %v7958_v47 = vrot.slane %v2303_v44, %v2311_v38 }
 0x129   : > { %v905_v53 = vpop.permute.xlu0 %904 }
 0x12a   : > { %v1605_v55 = vpop.permute.xlu1 %1604  ;;  %v1937_v57 = vsel %vm1904_vm3, %v7225_v51, %v905_v53  ;;  %v7244_v51 = vld [vmem:[%s7387_s18 + $0x68] sm:$0xff]  }
 0x12b   : > { %1058 = vrot.lane.b32.xlu0 %v7238_v50, %s7298_s14  ;;  %v2171_v59 = vsel %vm2149_vm4, %v2130_v54, %v1605_v55 }
 0x12c   : > { %1758 = vrot.lane.b32.xlu1 %v7239_v52, %s7299_s15 }
 0x12d   : > { %v1045_v60 = vpop.permute.xlu0 %1044 }
 0x12e   : > { %v1745_v62 = vpop.permute.xlu1 %1744  ;;  %v1987_v63 = vsel %vm1965_vm5, %v1937_v57, %v1045_v60 }
 0x12f   : > { %1198 = vrot.lane.b32.xlu0 %v7241_v56, %s7300_s16  ;;  %v2212_v0 = vsel %vm2190_vm6, %v2171_v59, %v1745_v62 }
 0x130   : > { %1898 = vrot.lane.b32.xlu1 %v7242_v58, %s7301_s17 }
 0x131   : > { %v1185_v1 = vpop.permute.xlu0 %1184 }
 0x132   : > { %v2028_v2 = vsel %vm2006_vm7, %v1987_v63, %v1185_v1  ;;  %v1885_v3 = vpop.permute.xlu1 %1884 }
 0x133   : > { %v2253_v4 = vsel %vm2231_vm8, %v2212_v0, %v1885_v3  ;;  %v2079_v5 = vsel %vm2047_vm9, %v2028_v2, %v1325_v48 }
 0x134   : > { %6887 = vmatprep.mubr.msk.bf16.mxu0 %vm2470_vm10, %v2253_v4 }
 0x135   : > { %2654 = vmatmul.mubr.bf16.gmra.mxu0 %v2079_v5  ;;  %v1327_v6 = vpop.permute.xlu0 %1326 }
 0x136   : > { %v1467_v7 = vpop.permute.xlu1 %1466 }
 0x137   : > { %v2132_v10 = vsel %vm2108_vm2, %v1327_v6, %v1467_v7 }
 0x139   : > { %v907_v9 = vpop.permute.xlu0 %906 }
 0x13a   : > { %v1607_v11 = vpop.permute.xlu1 %1606  ;;  %v1940_v12 = vsel %vm1904_vm3, %v7240_v8, %v907_v9 }
 0x13b   : > { %v2173_v13 = vsel %vm2149_vm4, %v2132_v10, %v1607_v11 }
 0x13d   : > { %v1047_v14 = vpop.permute.xlu0 %1046 }
 0x13e   : > { %v1747_v15 = vpop.permute.xlu1 %1746  ;;  %v1989_v16 = vsel %vm1965_vm5, %v1940_v12, %v1047_v14 }
 0x13f   : > { %v2214_v17 = vsel %vm2190_vm6, %v2173_v13, %v1747_v15  ;;  %v7249_v13 = vld [vmem:[%s7387_s18 + $0x98] sm:$0xff]  }
 0x140   : > { %920 = vrot.lane.b32.xlu0 %v7249_v13, %s7295_s28 }
 0x141   : > { %v1187_v18 = vpop.permute.xlu0 %1186 }
 0x142   : > { %v2030_v19 = vsel %vm2006_vm7, %v1989_v16, %v1187_v18  ;;  %v1887_v20 = vpop.permute.xlu1 %1886  ;;  %v7252_v16 = vld [vmem:[%s7387_s18 + $0xa0] sm:$0xff]  }
 0x143   : > { %v2255_v21 = vsel %vm2231_vm8, %v2214_v17, %v1887_v20  ;;  %v2082_v22 = vsel %vm2047_vm9, %v2030_v19, %v1327_v6  ;;  %v7250_v17 = vld [vmem:[%s7387_s18 + $0xa0] sm:$0xff]   ;;  %922 = vrot.lane.b32.xlu1 %v7252_v16, %s7295_s28  ;;  %v7254_v20 = vld [vmem:[%s7387_s18 + $0xa8] sm:$0xff]   ;;  %s7305_s28 = smov 64  }
 0x144   : > { %6888 = vmatprep.mubr.msk.bf16.mxu0 %vm2470_vm10, %v2255_v21  ;;  %1060 = vrot.lane.b32.xlu0 %v7250_v17, %s7298_s14 }
 0x145   : > { %2664 = vmatmul.mubr.bf16.gmra.mxu0 %v2082_v22  ;;  %v1329_v23 = vpop.permute.xlu0 %1328 }
 0x146   : > { %v1469_v24 = vpop.permute.xlu1 %1468 }
 0x147   : > { %v2134_v27 = vsel %vm2108_vm2, %v1329_v23, %v1469_v24  ;;  %v7251_v24 = vld [vmem:[%s7387_s18 + $0xa8] sm:$0xff]   ;;  %1062 = vrot.lane.b32.xlu1 %v7254_v20, %s7298_s14 }
 0x148   : > { %1200 = vrot.lane.b32.xlu0 %v7251_v24, %s7300_s16 }
 0x149   : > { %v909_v26 = vpop.permute.xlu0 %908 }
 0x14a   : > { %v1609_v28 = vpop.permute.xlu1 %1608  ;;  %v1943_v30 = vsel %vm1904_vm3, %v7243_v25, %v909_v26 }
 0x14b   : > { %v2175_v31 = vsel %vm2149_vm4, %v2134_v27, %v1609_v28  ;;  %v7256_v27 = vld [vmem:[%s7387_s18 + $0xb0] sm:$0xff]  }
 0x14c   : > { %1202 = vrot.lane.b32.xlu1 %v7256_v27, %s7300_s16 }
 0x14d   : > { %v1049_v32 = vpop.permute.xlu0 %1048 }
 0x14e   : > { %v1749_v33 = vpop.permute.xlu1 %1748  ;;  %v1991_v35 = vsel %vm1965_vm5, %v1943_v30, %v1049_v32 }
 0x14f   : > { %v2216_v36 = vsel %vm2190_vm6, %v2175_v31, %v1749_v33 }
 0x150   : > { %1342 = vrot.lane.b32.xlu1 %v7258_v41, %s7294_s23 }
 0x151   : > { %v1189_v37 = vpop.permute.xlu0 %1188 }
 0x152   : > { %v2032_v39 = vsel %vm2006_vm7, %v1991_v35, %v1189_v37  ;;  %v1889_v40 = vpop.permute.xlu1 %1888  ;;  %v7253_v37 = vld [vmem:[%s7387_s18 + $0xb0] sm:$0xff]  }
 0x153   : > { %v2257_v42 = vsel %vm2231_vm8, %v2216_v36, %v1889_v40  ;;  %v2085_v43 = vsel %vm2047_vm9, %v2032_v39, %v1329_v23  ;;  %v7245_v23 = vld [vmem:[%s7387_s18 + $0x70] sm:$0xff]   ;;  %1340 = vrot.lane.b32.xlu0 %v7253_v37, %s7294_s23  ;;  %s7304_s23 = smov 32  }
 0x154   : > { %6889 = vmatprep.mubr.msk.bf16.mxu0 %vm2470_vm10, %v2257_v42 }
 0x155   : > { %v2555_v45 = vpop.f32.mrf.mxu0  ;;  %2674 = vmatmul.mubr.bf16.gmra.mxu0 %v2085_v43  ;;  %v1331_v46 = vpop.permute.xlu0 %1330 }
 0x156   : > { %v1471_v48 = vpop.permute.xlu1 %1470  ;;  %v2556_v58 = vadd.f32 %v2555_v45, %v7960_v49 }
 0x157   : > { %v2557_v50 = vpop.f32.mrf.mxu0  ;;  %v2136_v56 = vsel %vm2108_vm2, %v1331_v46, %v1471_v48 }
 0x158   : > { %v2558_v54 = vadd.f32 %v2557_v50, %v7958_v47  ;;  %v2754_v5 = vmax.f32 %v2556_v58, 0.0 }
 0x159   : > { %v2559_v52 = vpop.f32.mrf.mxu0  ;;  %v911_v53 = vpop.permute.xlu0 %910 }
 0x15a   : > { %v2560_v55 = vadd.f32 %v2559_v52, %v7960_v49  ;;  %v1611_v57 = vpop.permute.xlu1 %1610  ;;  %v1946_v62 = vsel %vm1904_vm3, %v7244_v51, %v911_v53  ;;  %v2755_v2 = vmax.f32 %v2558_v54, 0.0  ;;  %v7255_v51 = vld [vmem:[%s7387_s18 + $0xb8] sm:$0xff]   ;;  %v7260_v54 = vld [vmem:[%s7387_s18 + $0xc0] sm:$0xff]  }
 0x15b   : > { %v2561_v59 = vpop.f32.mrf.mxu0  ;;  %v2177_v0 = vsel %vm2149_vm4, %v2136_v56, %v1611_v57  ;;  %1480 = vrot.lane.b32.xlu0 %v7255_v51, %s7296_s10  ;;  %1482 = vrot.lane.b32.xlu1 %v7260_v54, %s7296_s10  ;;  %s7306_s10 = smov 96  }
 0x15c   : > { %v2562_v60 = vadd.f32 %v2561_v59, %v7958_v47  ;;  %v2756_v63 = vmax.f32 %v2560_v55, 0.0  ;;  %v7257_v59 = vld [vmem:[%s7387_s18 + $0xc0] sm:$0xff]  }
 0x15d   : > { %v1051_v1 = vpop.permute.xlu0 %1050 }
 0x15e   : > { %v2757_v3 = vmax.f32 %v2562_v60, 0.0  ;;  %v1751_v4 = vpop.permute.xlu1 %1750  ;;  %v1993_v6 = vsel %vm1965_vm5, %v1946_v62, %v1051_v1  ;;  %v2834_v9 = vpack.c.bf16 %v2756_v63, %v2754_v5  ;;  %v7262_v63 = vld [vmem:[%s7387_s18 + $0xc8] sm:$0xff]  }
 0x15f   : > { %v2218_v8 = vsel %vm2190_vm6, %v2177_v0, %v1751_v4  ;;  %1620 = vrot.lane.b32.xlu0 %v7257_v59, %s7297_s11  ;;  %1622 = vrot.lane.b32.xlu1 %v7262_v63, %s7297_s11 }
 0x160   : > { %v2835_v7 = vpack.c.bf16 %v2757_v3, %v2755_v2  ;;  %v7246_v2 = vld [vmem:[%s7387_s18 + $0x78] sm:$0xff]   ;;  %v7259_v3 = vld [vmem:[%s7387_s18 + $0xc8] sm:$0xff]  }
 0x161   : > { %v1191_v10 = vpop.permute.xlu0 %1190 }
 0x162   : > { %3041 = vmatprep.mubr.bf16.mxu1 %v2835_v7  ;;  %v2034_v11 = vsel %vm2006_vm7, %v1993_v6, %v1191_v10  ;;  %v1891_v12 = vpop.permute.xlu1 %1890  ;;  %v7263_v6 = vld [vmem:[%s7387_s18 + $0xd0] sm:$0xff]  }
 0x163   : > { %3042 = vmatmul.mubr.bf16.vlgmr.msra.gmra.mxu1 %v2834_v9  ;;  %v2259_v14 = vsel %vm2231_vm8, %v2218_v8, %v1891_v12  ;;  %v2088_v15 = vsel %vm2047_vm9, %v2034_v11, %v1331_v46  ;;  %1760 = vrot.lane.b32.xlu0 %v7259_v3, %s7299_s15 }
 0x164   : > { %6890 = vmatprep.mubr.msk.bf16.mxu0 %vm2470_vm10, %v2259_v14  ;;  %1762 = vrot.lane.b32.xlu1 %v7263_v6, %s7299_s15 }
 0x165   : > { %v2565_v18 = vpop.f32.mrf.mxu0  ;;  %2684 = vmatmul.mubr.bf16.gmra.mxu0 %v2088_v15  ;;  %v1333_v19 = vpop.permute.xlu0 %1332  ;;  %v7261_v15 = vld [vmem:[%s7387_s18 + $0xd0] sm:$0xff]  }
 0x166   : > { %v1473_v21 = vpop.permute.xlu1 %1472  ;;  %v2566_v32 = vadd.f32 %v2565_v18, %v7960_v49 }
 0x167   : > { %v2567_v22 = vpop.f32.mrf.mxu0  ;;  %v2138_v30 = vsel %vm2108_vm2, %v1333_v19, %v1473_v21  ;;  %1900 = vrot.lane.b32.xlu0 %v7261_v15, %s7301_s17 }
 0x168   : > { %v2568_v28 = vadd.f32 %v2567_v22, %v7958_v47  ;;  %v2758_v45 = vmax.f32 %v2566_v32, 0.0 }
 0x169   : > { %v2569_v25 = vpop.f32.mrf.mxu0  ;;  %v913_v26 = vpop.permute.xlu0 %912 }
 0x16a   : > { %v2570_v29 = vadd.f32 %v2569_v25, %v7960_v49  ;;  %v1613_v31 = vpop.permute.xlu1 %1612  ;;  %v1949_v36 = vsel %vm1904_vm3, %v7245_v23, %v913_v26  ;;  %v2759_v42 = vmax.f32 %v2568_v28, 0.0 }
 0x16b   : > { %v2571_v33 = vpop.f32.mrf.mxu0  ;;  %v2179_v39 = vsel %vm2149_vm4, %v2138_v30, %v1613_v31 }
 0x16c   : > { %v2572_v35 = vadd.f32 %v2571_v33, %v7958_v47  ;;  %v2760_v38 = vmax.f32 %v2570_v29, 0.0 }
 0x16d   : > { %v1053_v40 = vpop.permute.xlu0 %1052 }
 0x16e   : > { %v2761_v43 = vmax.f32 %v2572_v35, 0.0  ;;  %v1753_v44 = vpop.permute.xlu1 %1752  ;;  %v1995_v46 = vsel %vm1965_vm5, %v1949_v36, %v1053_v40  ;;  %v2836_v52 = vpack.c.bf16 %v2760_v38, %v2758_v45  ;;  %v7247_v38 = vld [vmem:[%s7387_s18 + $0x80] sm:$0xff]  }
 0x16f   : > { %v2220_v50 = vsel %vm2190_vm6, %v2179_v39, %v1753_v44 }
 0x170   : > { %v2837_v48 = vpack.c.bf16 %v2761_v43, %v2759_v42 }
 0x171   : > { %v1193_v53 = vpop.permute.xlu0 %1192 }
 0x172   : > { %3049 = vmatprep.mubr.bf16.mxu1 %v2837_v48  ;;  %v2036_v55 = vsel %vm2006_vm7, %v1995_v46, %v1193_v53  ;;  %v1893_v56 = vpop.permute.xlu1 %1892 }
 0x173   : > { %3050 = vmatmul.mubr.bf16.gmra.mxu1 %v2836_v52  ;;  %v2261_v57 = vsel %vm2231_vm8, %v2220_v50, %v1893_v56  ;;  %v2091_v58 = vsel %vm2047_vm9, %v2036_v55, %v1333_v19  ;;  %v7264_v19 = vld [vmem:[%s7387_s18 + $0xd8] sm:$0xff]  }
 0x174   : > { %6891 = vmatprep.mubr.msk.bf16.mxu0 %vm2470_vm10, %v2261_v57  ;;  %1902 = vrot.lane.b32.xlu1 %v7264_v19, %s7301_s17 }
 0x175   : > { %v2575_v60 = vpop.f32.mrf.mxu0  ;;  %2694 = vmatmul.mubr.bf16.gmra.mxu0 %v2091_v58  ;;  %v1335_v62 = vpop.permute.xlu0 %1334 }
 0x176   : > { %v1475_v0 = vpop.permute.xlu1 %1474  ;;  %v2576_v11 = vadd.f32 %v2575_v60, %v7960_v49 }
 0x177   : > { %v2577_v1 = vpop.f32.mrf.mxu0  ;;  %v2140_v9 = vsel %vm2108_vm2, %v1335_v62, %v1475_v0 }
 0x178   : > { %v2578_v7 = vadd.f32 %v2577_v1, %v7958_v47  ;;  %v2762_v23 = vmax.f32 %v2576_v11, 0.0 }
 0x179   : > { %v2579_v4 = vpop.f32.mrf.mxu0  ;;  %v915_v5 = vpop.permute.xlu0 %914 }
 0x17a   : > { %v2580_v8 = vadd.f32 %v2579_v4, %v7960_v49  ;;  %v1615_v10 = vpop.permute.xlu1 %1614  ;;  %v1952_v14 = vsel %vm1904_vm3, %v7246_v2, %v915_v5  ;;  %v2763_v20 = vmax.f32 %v2578_v7, 0.0 }
 0x17b   : > { %v2581_v12 = vpop.f32.mrf.mxu0  ;;  %v2181_v17 = vsel %vm2149_vm4, %v2140_v9, %v1615_v10 }
 0x17c   : > { %v2582_v13 = vadd.f32 %v2581_v12, %v7958_v47  ;;  %v2764_v16 = vmax.f32 %v2580_v8, 0.0  ;;  %v7248_v8 = vld [vmem:[%s7387_s18 + $0x88] sm:$0xff]  }
 0x17d   : > { %v1055_v18 = vpop.permute.xlu0 %1054 }
 0x17e   : > { %v2765_v21 = vmax.f32 %v2582_v13, 0.0  ;;  %v1755_v22 = vpop.permute.xlu1 %1754  ;;  %v1997_v24 = vsel %vm1965_vm5, %v1952_v14, %v1055_v18  ;;  %v2838_v27 = vpack.c.bf16 %v2764_v16, %v2762_v23 }
 0x17f   : > { %v2222_v26 = vsel %vm2190_vm6, %v2181_v17, %v1755_v22 }
 0x180   : > { %v2839_v25 = vpack.c.bf16 %v2765_v21, %v2763_v20 }
 0x181   : > { %v1195_v28 = vpop.permute.xlu0 %1194 }
 0x182   : > { %3057 = vmatprep.mubr.bf16.mxu1 %v2839_v25  ;;  %v2038_v29 = vsel %vm2006_vm7, %v1997_v24, %v1195_v28  ;;  %v1895_v30 = vpop.permute.xlu1 %1894 }
 0x183   : > { %3058 = vmatmul.mubr.bf16.gmra.mxu1 %v2838_v27  ;;  %v2263_v31 = vsel %vm2231_vm8, %v2222_v26, %v1895_v30  ;;  %v2094_v32 = vsel %vm2047_vm9, %v2038_v29, %v1335_v62 }
 0x184   : > { %6892 = vmatprep.mubr.msk.bf16.mxu0 %vm2470_vm10, %v2263_v31 }
 0x185   : > { %v2585_v33 = vpop.f32.mrf.mxu0  ;;  %2704 = vmatmul.mubr.bf16.gmra.mxu0 %v2094_v32  ;;  %v1337_v35 = vpop.permute.xlu0 %1336 }
 0x186   : > { %v1477_v36 = vpop.permute.xlu1 %1476  ;;  %v2586_v45 = vadd.f32 %v2585_v33, %v7960_v49 }
 0x187   : > { %v2587_v37 = vpop.f32.mrf.mxu0  ;;  %v2142_v43 = vsel %vm2108_vm2, %v1337_v35, %v1477_v36 }
 0x188   : > { %v2588_v41 = vadd.f32 %v2587_v37, %v7958_v47  ;;  %v2766_v57 = vmax.f32 %v2586_v45, 0.0 }
 0x189   : > { %v2589_v39 = vpop.f32.mrf.mxu0  ;;  %v917_v40 = vpop.permute.xlu0 %916 }
 0x18a   : > { %v2590_v42 = vadd.f32 %v2589_v39, %v7960_v49  ;;  %v1617_v44 = vpop.permute.xlu1 %1616  ;;  %v1955_v50 = vsel %vm1904_vm3, %v7247_v38, %v917_v40  ;;  %v2767_v54 = vmax.f32 %v2588_v41, 0.0 }
 0x18b   : > { %v2591_v46 = vpop.f32.mrf.mxu0  ;;  %v2183_v52 = vsel %vm2149_vm4, %v2142_v43, %v1617_v44 }
 0x18c   : > { %v2592_v48 = vadd.f32 %v2591_v46, %v7958_v47  ;;  %v2768_v51 = vmax.f32 %v2590_v42, 0.0 }
 0x18d   : > { %v1057_v53 = vpop.permute.xlu0 %1056 }
 0x18e   : > { %v2769_v55 = vmax.f32 %v2592_v48, 0.0  ;;  %v1757_v56 = vpop.permute.xlu1 %1756  ;;  %v1999_v58 = vsel %vm1965_vm5, %v1955_v50, %v1057_v53  ;;  %v2840_v62 = vpack.c.bf16 %v2768_v51, %v2766_v57 }
 0x18f   : > { %v2224_v60 = vsel %vm2190_vm6, %v2183_v52, %v1757_v56  ;;  %v3384_v52 = vrot.slane %v7303_v61, 7 }
 0x190   : > { %v2841_v59 = vpack.c.bf16 %v2769_v55, %v2767_v54 }
 0x191   : > { %v1197_v63 = vpop.permute.xlu0 %1196  ;;  %v8070_v53 = vsel %vm2511_vm0, 0, %v3384_v52  ;;  %v8077_v57 = vsel %vm2511_vm0, %v3384_v52, 0 }
 0x192   : > { %3065 = vmatprep.mubr.bf16.mxu1 %v2841_v59  ;;  %v2040_v0 = vsel %vm2006_vm7, %v1999_v58, %v1197_v63  ;;  %v1897_v1 = vpop.permute.xlu1 %1896  ;;  %11162 = vst [vmem:[#allocation3_spill] sm:$0xff] %v8070_v53  ;;  %v8073_v55 = vshll.u32 %v8070_v53, 16  ;;  %11164 = vst [vmem:[#allocation5_spill] sm:$0xff] %v8077_v57  ;;  %v8080_v59 = vshrl.u32 %v8070_v53, 16  ;;  %v3472_v61 = vshll.u32 %v8077_v57, 16 }
 0x193   : > { %3066 = vmatmul.mubr.bf16.gmra.mxu1 %v2840_v62  ;;  %v2265_v2 = vsel %vm2231_vm8, %v2224_v60, %v1897_v1  ;;  %v2097_v3 = vsel %vm2047_vm9, %v2040_v0, %v1337_v35 }
 0x194   : > { %6893 = vmatprep.mubr.msk.bf16.mxu0 %vm2470_vm10, %v2265_v2  ;;  %11163 = vst [vmem:[#allocation4_spill] sm:$0xff] %v8073_v55  ;;  %11165 = vst [vmem:[#allocation6_spill] sm:$0xff] %v8080_v59  ;;  %v3470_v60 = vrot.slane %v8073_v55, 1  ;;  %v3474_v1 = vrot.slane %v3472_v61, 1 }
 0x195   : > { %v2595_v4 = vpop.f32.mrf.mxu0  ;;  %2714 = vmatmul.mubr.bf16.gmra.mxu0 %v2097_v3  ;;  %v1339_v5 = vpop.permute.xlu0 %1338 }
 0x196   : > { %v1479_v6 = vpop.permute.xlu1 %1478  ;;  %v2596_v15 = vadd.f32 %v2595_v4, %v7960_v49  ;;  %v3471_v0 = vor.u32 %v3470_v60, %v8080_v59  ;;  %v3691_v4 = vrot.slane %v8070_v53, 1 }
 0x197   : > { %v2597_v7 = vpop.f32.mrf.mxu0  ;;  %v2144_v13 = vsel %vm2108_vm2, %v1339_v5, %v1479_v6 }
 0x198   : > { %v2598_v11 = vadd.f32 %v2597_v7, %v7958_v47  ;;  %v2770_v25 = vmax.f32 %v2596_v15, 0.0 }
 0x199   : > { %v2599_v9 = vpop.f32.mrf.mxu0  ;;  %v919_v10 = vpop.permute.xlu0 %918 }
 0x19a   : > { %v2600_v12 = vadd.f32 %v2599_v9, %v7960_v49  ;;  %v1619_v14 = vpop.permute.xlu1 %1618  ;;  %v1958_v18 = vsel %vm1904_vm3, %v7248_v8, %v919_v10  ;;  %v2771_v22 = vmax.f32 %v2598_v11, 0.0  ;;  %v8090_v8 = vsel %vm3465_vm11, %v3471_v0, %v3474_v1 }
 0x19b   : > { %v2601_v16 = vpop.f32.mrf.mxu0  ;;  %v2185_v20 = vsel %vm2149_vm4, %v2144_v13, %v1619_v14  ;;  %11166 = vst [vmem:[#allocation7_spill] sm:$0xff] %v8090_v8  ;;  %v3772_v9 = vrot.slane %v8080_v59, 1  ;;  %v3773_v10 = vrot.slane %v8073_v55, 2  ;;  %3626 = vrot.lane.b32.xlu0 %v8090_v8, %s7304_s23  ;;  %3628 = vrot.lane.b32.xlu1 %v8090_v8, %s7304_s23  ;;  %v8105_v14 = vshrl.u32 %v8077_v57, 16 }
 0x19c   : > { %v2602_v17 = vadd.f32 %v2601_v16, %v7958_v47  ;;  %v2772_v19 = vmax.f32 %v2600_v12, 0.0  ;;  %v3778_v16 = vrot.slane %v3472_v61, 2 }
 0x19d   : > { %v1059_v21 = vpop.permute.xlu0 %1058  ;;  %11168 = vst [vmem:[#allocation9_spill] sm:$0xff] %v8105_v14 }
 0x19e   : > { %v2773_v23 = vmax.f32 %v2602_v17, 0.0  ;;  %v1759_v24 = vpop.permute.xlu1 %1758  ;;  %v2001_v26 = vsel %vm1965_vm5, %v1958_v18, %v1059_v21  ;;  %v2842_v29 = vpack.c.bf16 %v2772_v19, %v2770_v25  ;;  %v3774_v18 = vor.u32 %v3773_v10, %v3772_v9 }
 0x19f   : > { %v2226_v28 = vsel %vm2190_vm6, %v2185_v20, %v1759_v24  ;;  %v8110_v19 = vrot.slane %v8105_v14, 1  ;;  %v3949_v24 = vrot.slane %v8070_v53, 2  ;;  %v3950_v25 = vrot.slane %v8077_v57, 2 }
 0x1a0   : > { %v2843_v27 = vpack.c.bf16 %v2773_v23, %v2771_v22 }
 0x1a1   : > { %v1199_v30 = vpop.permute.xlu0 %1198  ;;  %11169 = vst [vmem:[#allocation10_spill] sm:$0xff] %v8110_v19  ;;  %v3779_v22 = vor.u32 %v3778_v16, %v8110_v19 }
 0x1a2   : > { %3073 = vmatprep.mubr.bf16.mxu1 %v2843_v27  ;;  %v2042_v31 = vsel %vm2006_vm7, %v2001_v26, %v1199_v30  ;;  %v1899_v32 = vpop.permute.xlu1 %1898  ;;  %v8124_v27 = vsel %vm3948_vm14, %v3949_v24, %v3950_v25 }
 0x1a3   : > { %3074 = vmatmul.mubr.bf16.gmra.mxu1 %v2842_v29  ;;  %v2267_v33 = vsel %vm2231_vm8, %v2226_v28, %v1899_v32  ;;  %v2100_v35 = vsel %vm2047_vm9, %v2042_v31, %v1339_v5  ;;  %v10891_v5 = vrot.slane %v8077_v57, 1  ;;  %v8115_v23 = vsel %vm3771_vm13, %v3774_v18, %v3779_v22  ;;  %11171 = vst [vmem:[#allocation12_spill] sm:$0xff] %v8124_v27 }
 0x1a4   : > { %6894 = vmatprep.mubr.msk.bf16.mxu0 %vm2470_vm10, %v2267_v33  ;;  %11170 = vst [vmem:[#allocation11_spill] sm:$0xff] %v8115_v23  ;;  %3916 = vrot.lane.b32.xlu1 %v8115_v23, %s7306_s10  ;;  %v6988_v30 = vpack.i.bf16 %v8124_v27, %v8070_v53 }
 0x1a5   : > { %v2605_v36 = vpop.f32.mrf.mxu0  ;;  %2724 = vmatmul.mubr.bf16.gmra.mxu0 %v2100_v35  ;;  %v8102_v13 = vsel %vm3690_vm12, %v3691_v4, %v10891_v5 }
 0x1a6   : > { %v2606_v37 = vadd.f32 %v2605_v36, %v7960_v49  ;;  %11167 = vst [vmem:[#allocation8_spill] sm:$0xff] %v8102_v13  ;;  %v6983_v15 = vpack.i.bf16 %v8102_v13, %v8102_v13  ;;  %v6993_v35 = vpack.i.bf16 %v8070_v53, %v8102_v13 }
 0x1a7   : > { %v2607_v38 = vpop.f32.mrf.mxu0 }
 0x1a8   : > { %v2608_v39 = vadd.f32 %v2607_v38, %v7958_v47  ;;  %v2774_v42 = vmax.f32 %v2606_v37, 0.0  ;;  %6984 = vrot.lane.b32.xlu0 %v6983_v15, %s7305_s28  ;;  %6989 = vrot.lane.b32.xlu1 %v6988_v30, %s7304_s23 }
 0x1a9   : > { %v2609_v40 = vpop.f32.mrf.mxu0 }
 0x1aa   : > { %v2610_v41 = vadd.f32 %v2609_v40, %v7960_v49  ;;  %v2775_v44 = vmax.f32 %v2608_v39, 0.0 }
 0x1ab   : > { %v2611_v43 = vpop.f32.mrf.mxu0 }
 0x1ac   : > { %v2776_v45 = vmax.f32 %v2610_v41, 0.0  ;;  %v2612_v46 = vadd.f32 %v2611_v43, %v7958_v47  ;;  %3918 = vrot.lane.b32.xlu0 %v8115_v23, %s7306_s10  ;;  %4040 = vrot.lane.b32.xlu1 %v8090_v8, %s7305_s28 }
 0x1ae   : > { %v2777_v48 = vmax.f32 %v2612_v46, 0.0  ;;  %v2844_v50 = vpack.c.bf16 %v2776_v45, %v2774_v42 }
 0x1b0   : > { %v2845_v51 = vpack.c.bf16 %v2777_v48, %v2775_v44  ;;  %6994 = vrot.lane.b32.xlu0 %v6993_v35, %s7306_s10 }
 0x1b2   : > { %3081 = vmatprep.mubr.bf16.mxu1 %v2845_v51  ;;  %v921_v1 = vpop.permute.xlu0 %920 }
 0x1b3   : > { %3082 = vmatmul.mubr.bf16.gmra.mxu1 %v2844_v50 }
 0x1b5   : > { %v2615_v54 = vpop.f32.mrf.mxu0 }
 0x1b6   : > { %v2616_v56 = vadd.f32 %v2615_v54, %v7960_v49 }
 0x1b7   : > { %v2617_v58 = vpop.f32.mrf.mxu0 }
 0x1b8   : > { %v2618_v62 = vadd.f32 %v2617_v58, %v7958_v47  ;;  %v2778_v2 = vmax.f32 %v2616_v56, 0.0 }
 0x1b9   : > { %v2619_v63 = vpop.f32.mrf.mxu0 }
 0x1ba   : > { %v2620_v3 = vadd.f32 %v2619_v63, %v7960_v49  ;;  %v2779_v6 = vmax.f32 %v2618_v62, 0.0 }
 0x1bb   : > { %v2621_v7 = vpop.f32.mrf.mxu0 }
 0x1bc   : > { %v2780_v11 = vmax.f32 %v2620_v3, 0.0  ;;  %v2622_v12 = vadd.f32 %v2621_v7, %v7958_v47 }
 0x1be   : > { %v2781_v17 = vmax.f32 %v2622_v12, 0.0  ;;  %v2846_v20 = vpack.c.bf16 %v2780_v11, %v2778_v2  ;;  %v1061_v11 = vpop.permute.xlu0 %1060 }
 0x1c0   : > { %v2847_v21 = vpack.c.bf16 %v2781_v17, %v2779_v6 }
 0x1c2   : > { %3089 = vmatprep.mubr.bf16.mxu1 %v2847_v21  ;;  %v923_v21 = vpop.permute.xlu1 %922 }
 0x1c3   : > { %3090 = vmatmul.mubr.bf16.gmra.mxu1 %v2846_v20  ;;  %v1201_v20 = vpop.permute.xlu0 %1200 }
 0x1c5   : > { %v2625_v26 = vpop.f32.mrf.mxu0 }
 0x1c6   : > { %v2626_v28 = vadd.f32 %v2625_v26, %v7960_v49  ;;  %v1063_v25 = vpop.permute.xlu1 %1062 }
 0x1c7   : > { %v2627_v29 = vpop.f32.mrf.mxu0  ;;  %v1341_v24 = vpop.permute.xlu0 %1340 }
 0x1c8   : > { %v2628_v31 = vadd.f32 %v2627_v29, %v7958_v47  ;;  %v2782_v36 = vmax.f32 %v2626_v28, 0.0 }
 0x1c9   : > { %v2629_v32 = vpop.f32.mrf.mxu0 }
 0x1ca   : > { %v2630_v33 = vadd.f32 %v2629_v32, %v7960_v49  ;;  %v2783_v38 = vmax.f32 %v2628_v31, 0.0  ;;  %v7265_v32 = vld [vmem:[%s7387_s18 + $0x90] sm:$0xff]  }
 0x1cb   : > { %v2631_v37 = vpop.f32.mrf.mxu0 }
 0x1cc   : > { %v2784_v39 = vmax.f32 %v2630_v33, 0.0  ;;  %v2632_v40 = vadd.f32 %v2631_v37, %v7958_v47  ;;  %v1203_v33 = vpop.permute.xlu1 %1202 }
 0x1cd   : > { %v1481_v30 = vpop.permute.xlu0 %1480 }
 0x1ce   : > { %v2785_v41 = vmax.f32 %v2632_v40, 0.0  ;;  %v2848_v42 = vpack.c.bf16 %v2784_v39, %v2782_v36 }
 0x1d0   : > { %v2849_v43 = vpack.c.bf16 %v2785_v41, %v2783_v38 }
 0x1d1   : > { %v1621_v39 = vpop.permute.xlu0 %1620 }
 0x1d2   : > { %3097 = vmatprep.mubr.bf16.mxu1 %v2849_v43  ;;  %v1961_v43 = vsel %vm1904_vm3, %v7265_v32, %v921_v1 }
 0x1d3   : > { %3098 = vmatmul.mubr.bf16.gmra.mxu1 %v2848_v42 }
 0x1d5   : > { %v2635_v44 = vpop.f32.mrf.mxu0 }
 0x1d6   : > { %v2636_v45 = vadd.f32 %v2635_v44, %v7960_v49  ;;  %v1343_v44 = vpop.permute.xlu1 %1342 }
 0x1d7   : > { %v2637_v46 = vpop.f32.mrf.mxu0 }
 0x1d8   : > { %v2638_v48 = vadd.f32 %v2637_v46, %v7958_v47  ;;  %v2786_v52 = vmax.f32 %v2636_v45, 0.0  ;;  %v2146_v46 = vsel %vm2108_vm2, %v1341_v24, %v1481_v30 }
 0x1d9   : > { %v2639_v50 = vpop.f32.mrf.mxu0 }
 0x1da   : > { %v2640_v51 = vadd.f32 %v2639_v50, %v7960_v49  ;;  %v2787_v56 = vmax.f32 %v2638_v48, 0.0  ;;  %v2003_v50 = vsel %vm1965_vm5, %v1961_v43, %v1061_v11 }
 0x1db   : > { %v2641_v54 = vpop.f32.mrf.mxu0 }
 0x1dc   : > { %v2788_v58 = vmax.f32 %v2640_v51, 0.0  ;;  %v2642_v60 = vadd.f32 %v2641_v54, %v7958_v47  ;;  %v1761_v51 = vpop.permute.xlu0 %1760  ;;  %v7266_v54 = vld [vmem:[%s7387_s18 + $0x98] sm:$0xff]  }
 0x1de   : > { %v2789_v61 = vmax.f32 %v2642_v60, 0.0  ;;  %v2850_v62 = vpack.c.bf16 %v2788_v58, %v2786_v52  ;;  %v2187_v58 = vsel %vm2149_vm4, %v2146_v46, %v1621_v39  ;;  %v2044_v60 = vsel %vm2006_vm7, %v2003_v50, %v1201_v20 }
 0x1e0   : > { %v2851_v63 = vpack.c.bf16 %v2789_v61, %v2787_v56  ;;  %v1483_v56 = vpop.permute.xlu1 %1482  ;;  %v2228_v61 = vsel %vm2190_vm6, %v2187_v58, %v1761_v51 }
 0x1e2   : > { %3105 = vmatprep.mubr.bf16.mxu1 %v2851_v63  ;;  %v1964_v63 = vsel %vm1904_vm3, %v7266_v54, %v923_v21 }
 0x1e3   : > { %3106 = vmatmul.mubr.bf16.gmra.mxu1 %v2850_v62  ;;  %v1901_v62 = vpop.permute.xlu0 %1900 }
 0x1e4   : > { %v2269_v1 = vsel %vm2231_vm8, %v2228_v61, %v1901_v62 }
 0x1e5   : > { %v2645_v0 = vpop.f32.mrf.mxu0  ;;  %6895 = vmatprep.mubr.msk.bf16.mxu0 %vm2470_vm10, %v2269_v1 }
 0x1e6   : > { %v2646_v2 = vadd.f32 %v2645_v0, %v7960_v49  ;;  %v2148_v0 = vsel %vm2108_vm2, %v1343_v44, %v1483_v56  ;;  %vm4406_vm2 = vcmask 785408  }
 0x1e7   : > { %v2647_v3 = vpop.f32.mrf.mxu0 }
 0x1e8   : > { %v2648_v4 = vadd.f32 %v2647_v3, %v7958_v47  ;;  %v2790_v9 = vmax.f32 %v2646_v2, 0.0  ;;  %v1623_v2 = vpop.permute.xlu1 %1622 }
 0x1e9   : > { %v2649_v6 = vpop.f32.mrf.mxu0 }
 0x1ea   : > { %v2650_v7 = vadd.f32 %v2649_v6, %v7960_v49  ;;  %v2791_v12 = vmax.f32 %v2648_v4, 0.0  ;;  %v2103_v4 = vsel %vm2047_vm9, %v2044_v60, %v1341_v24 }
 0x1eb   : > { %v2651_v10 = vpop.f32.mrf.mxu0  ;;  %2734 = vmatmul.mubr.bf16.gmra.mxu0 %v2103_v4 }
 0x1ec   : > { %v2792_v15 = vmax.f32 %v2650_v7, 0.0  ;;  %v2652_v16 = vadd.f32 %v2651_v10, %v7958_v47  ;;  %v2189_v10 = vsel %vm2149_vm4, %v2148_v0, %v1623_v2 }
 0x1ee   : > { %v2793_v17 = vmax.f32 %v2652_v16, 0.0  ;;  %v2852_v18 = vpack.c.bf16 %v2792_v15, %v2790_v9  ;;  %v2005_v9 = vsel %vm1965_vm5, %v1964_v63, %v1063_v25 }
 0x1f0   : > { %v2853_v22 = vpack.c.bf16 %v2793_v17, %v2791_v12  ;;  %v1763_v12 = vpop.permute.xlu1 %1762  ;;  %v2046_v17 = vsel %vm2006_vm7, %v2005_v9, %v1203_v33 }
 0x1f2   : > { %3113 = vmatprep.mubr.bf16.mxu1 %v2853_v22 }
 0x1f3   : > { %3114 = vmatmul.mubr.bf16.gmra.mxu1 %v2852_v18  ;;  %v2230_v18 = vsel %vm2190_vm6, %v2189_v10, %v1763_v12 }
 0x1f5   : > { %v2655_v26 = vpop.f32.mrf.mxu0 }
 0x1f6   : > { %v2656_v28 = vadd.f32 %v2655_v26, %v7960_v49 }
 0x1f7   : > { %v2657_v29 = vpop.f32.mrf.mxu0 }
 0x1f8   : > { %v2658_v31 = vadd.f32 %v2657_v29, %v7958_v47  ;;  %v2794_v37 = vmax.f32 %v2656_v28, 0.0  ;;  %v1903_v28 = vpop.permute.xlu1 %1902  ;;  %v2106_v29 = vsel %vm2047_vm9, %v2046_v17, %v1343_v44 }
 0x1f9   : > { %v2659_v35 = vpop.f32.mrf.mxu0  ;;  %v2271_v25 = vsel %vm2231_vm8, %v2230_v18, %v1903_v28 }
 0x1fa   : > { %v2660_v36 = vadd.f32 %v2659_v35, %v7960_v49  ;;  %v2795_v40 = vmax.f32 %v2658_v31, 0.0  ;;  %6896 = vmatprep.mubr.msk.bf16.mxu0 %vm2470_vm10, %v2271_v25 }
 0x1fb   : > { %v2661_v38 = vpop.f32.mrf.mxu0  ;;  %2744 = vmatmul.mubr.bf16.gmra.mxu0 %v2106_v29 }
 0x1fc   : > { %v2796_v41 = vmax.f32 %v2660_v36, 0.0  ;;  %v2662_v42 = vadd.f32 %v2661_v38, %v7958_v47 }
 0x1fe   : > { %v2797_v45 = vmax.f32 %v2662_v42, 0.0  ;;  %v2854_v48 = vpack.c.bf16 %v2796_v41, %v2794_v37 }
 0x200   : > { %v2855_v52 = vpack.c.bf16 %v2797_v45, %v2795_v40 }
 0x202   : > { %3121 = vmatprep.mubr.bf16.mxu1 %v2855_v52 }
 0x203   : > { %3122 = vmatmul.mubr.bf16.gmra.mxu1 %v2854_v48 }
 0x205   : > { %v2665_v3 = vpop.f32.mrf.mxu0 }
 0x206   : > { %v2666_v6 = vadd.f32 %v2665_v3, %v7960_v49 }
 0x207   : > { %v2667_v7 = vpop.f32.mrf.mxu0 }
 0x208   : > { %v2668_v11 = vadd.f32 %v2667_v7, %v7958_v47  ;;  %v2798_v20 = vmax.f32 %v2666_v6, 0.0 }
 0x209   : > { %v2669_v15 = vpop.f32.mrf.mxu0 }
 0x20a   : > { %v2670_v16 = vadd.f32 %v2669_v15, %v7960_v49  ;;  %v2799_v22 = vmax.f32 %v2668_v11, 0.0 }
 0x20b   : > { %v2671_v21 = vpop.f32.mrf.mxu0 }
 0x20c   : > { %v2800_v24 = vmax.f32 %v2670_v16, 0.0  ;;  %v2672_v26 = vadd.f32 %v2671_v21, %v7958_v47 }
 0x20e   : > { %v2801_v30 = vmax.f32 %v2672_v26, 0.0  ;;  %v2856_v31 = vpack.c.bf16 %v2800_v24, %v2798_v20 }
 0x210   : > { %v2857_v32 = vpack.c.bf16 %v2801_v30, %v2799_v22 }
 0x212   : > { %3129 = vmatprep.mubr.bf16.mxu1 %v2857_v32 }
 0x213   : > { %3130 = vmatmul.mubr.bf16.gmra.mxu1 %v2856_v31 }
 0x215   : > { %v2675_v33 = vpop.f32.mrf.mxu0 }
 0x216   : > { %v2676_v35 = vadd.f32 %v2675_v33, %v7960_v49  ;;  %v8189_v33 = vld [vmem:[%s10884_s4] ss:$0 sm:$0xff] }
 0x217   : > { %v2677_v36 = vpop.f32.mrf.mxu0 }
 0x218   : > { %v2678_v37 = vadd.f32 %v2677_v36, %v7958_v47  ;;  %v2802_v40 = vmax.f32 %v2676_v35, 0.0 }
 0x219   : > { %v2679_v38 = vpop.f32.mrf.mxu0 }
 0x21a   : > { %v2680_v39 = vadd.f32 %v2679_v38, %v7960_v49  ;;  %v2803_v42 = vmax.f32 %v2678_v37, 0.0 }
 0x21b   : > { %v2681_v41 = vpop.f32.mrf.mxu0 }
 0x21c   : > { %v2804_v43 = vmax.f32 %v2680_v39, 0.0  ;;  %v2682_v44 = vadd.f32 %v2681_v41, %v7958_v47 }
 0x21e   : > { %v2805_v45 = vmax.f32 %v2682_v44, 0.0  ;;  %v2858_v46 = vpack.c.bf16 %v2804_v43, %v2802_v40 }
 0x220   : > { %v2859_v48 = vpack.c.bf16 %v2805_v45, %v2803_v42 }
 0x222   : > { %3137 = vmatprep.mubr.bf16.mxu1 %v2859_v48 }
 0x223   : > { %v3043_v50 = vpop.f32.mrf.mxu1  ;;  %3138 = vmatmul.mubr.bf16.gmra.mxu1 %v2858_v46 }
 0x225   : > { %v3045_v51 = vpop.f32.mrf.mxu1  ;;  %v2685_v52 = vpop.f32.mrf.mxu0 }
 0x226   : > { %v2686_v56 = vadd.f32 %v2685_v52, %v7960_v49 }
 0x227   : > { %v3046_v54 = vpop.f32.mrf.mxu1  ;;  %v2687_v58 = vpop.f32.mrf.mxu0 }
 0x228   : > { %v2688_v60 = vadd.f32 %v2687_v58, %v7958_v47  ;;  %v2806_v0 = vmax.f32 %v2686_v56, 0.0 }
 0x229   : > { %v3048_v61 = vpop.f32.mrf.mxu1  ;;  %v2689_v62 = vpop.f32.mrf.mxu0 }
 0x22a   : > { %v2690_v63 = vadd.f32 %v2689_v62, %v7960_v49  ;;  %v2807_v2 = vmax.f32 %v2688_v60, 0.0 }
 0x22b   : > { %v2691_v1 = vpop.f32.mrf.mxu0 }
 0x22c   : > { %v2808_v3 = vmax.f32 %v2690_v63, 0.0  ;;  %v2692_v4 = vadd.f32 %v2691_v1, %v7958_v47 }
 0x22e   : > { %v2809_v6 = vmax.f32 %v2692_v4, 0.0  ;;  %v2860_v7 = vpack.c.bf16 %v2808_v3, %v2806_v0 }
 0x230   : > { %v2861_v9 = vpack.c.bf16 %v2809_v6, %v2807_v2 }
 0x232   : > { %3145 = vmatprep.mubr.bf16.mxu1 %v2861_v9 }
 0x233   : > { %v3051_v10 = vpop.f32.mrf.mxu1  ;;  %3146 = vmatmul.mubr.bf16.gmra.mxu1 %v2860_v7 }
 0x235   : > { %v3053_v11 = vpop.f32.mrf.mxu1  ;;  %v2695_v12 = vpop.f32.mrf.mxu0 }
 0x236   : > { %v2696_v16 = vadd.f32 %v2695_v12, %v7960_v49 }
 0x237   : > { %v3054_v15 = vpop.f32.mrf.mxu1  ;;  %v2697_v17 = vpop.f32.mrf.mxu0 }
 0x238   : > { %v2698_v18 = vadd.f32 %v2697_v17, %v7958_v47  ;;  %v2810_v24 = vmax.f32 %v2696_v16, 0.0 }
 0x239   : > { %v3056_v20 = vpop.f32.mrf.mxu1  ;;  %v2699_v21 = vpop.f32.mrf.mxu0 }
 0x23a   : > { %v2700_v22 = vadd.f32 %v2699_v21, %v7960_v49  ;;  %v2811_v28 = vmax.f32 %v2698_v18, 0.0 }
 0x23b   : > { %v2701_v26 = vpop.f32.mrf.mxu0 }
 0x23c   : > { %v2812_v25 = vmax.f32 %v2700_v22, 0.0  ;;  %v2702_v29 = vadd.f32 %v2701_v26, %v7958_v47 }
 0x23e   : > { %v2813_v30 = vmax.f32 %v2702_v29, 0.0  ;;  %v2862_v31 = vpack.c.bf16 %v2812_v25, %v2810_v24 }
 0x240   : > { %v2863_v32 = vpack.c.bf16 %v2813_v30, %v2811_v28 }
 0x242   : > { %3153 = vmatprep.mubr.bf16.mxu1 %v2863_v32 }
 0x243   : > { %v3059_v35 = vpop.f32.mrf.mxu1  ;;  %3154 = vmatmul.mubr.bf16.gmra.mxu1 %v2862_v31 }
 0x244   : > { %v3060_v38 = vadd.f32 %v8189_v33, %v3059_v35 }
 0x245   : > { %v3061_v36 = vpop.f32.mrf.mxu1  ;;  %v2705_v37 = vpop.f32.mrf.mxu0 }
 0x246   : > { %v2706_v40 = vadd.f32 %v2705_v37, %v7960_v49  ;;  %v3206_v46 = vmax.f32 %v3060_v38, 0.0 }
 0x247   : > { %v3062_v39 = vpop.f32.mrf.mxu1  ;;  %v2707_v41 = vpop.f32.mrf.mxu0 }
 0x248   : > { %v3063_v42 = vadd.f32 %v8189_v33, %v3062_v39  ;;  %v2708_v43 = vadd.f32 %v2707_v41, %v7958_v47  ;;  %v2814_v51 = vmax.f32 %v2706_v40, 0.0 }
 0x249   : > { %v3064_v44 = vpop.f32.mrf.mxu1  ;;  %v2709_v45 = vpop.f32.mrf.mxu0 }
 0x24a   : > { %v3207_v48 = vmax.f32 %v3063_v42, 0.0  ;;  %v2710_v50 = vadd.f32 %v2709_v45, %v7960_v49  ;;  %v2815_v56 = vmax.f32 %v2708_v43, 0.0 }
 0x24b   : > { %v2711_v52 = vpop.f32.mrf.mxu0 }
 0x24c   : > { %v3244_v54 = vpack.c.bf16 %v3207_v48, %v3206_v46  ;;  %v2816_v58 = vmax.f32 %v2710_v50, 0.0  ;;  %v2712_v60 = vadd.f32 %v2711_v52, %v7958_v47 }
 0x24e   : > { %v3386_v61 = vrot.slane %v3244_v54, 7  ;;  %v2817_v62 = vmax.f32 %v2712_v60, 0.0  ;;  %v2864_v63 = vpack.c.bf16 %v2816_v58, %v2814_v51 }
 0x250   : > { %v8198_v0 = vsel %vm2511_vm0, 0, %v3386_v61  ;;  %v3447_v1 = vsel %vm2511_vm0, %v3386_v61, 0  ;;  %v2865_v2 = vpack.c.bf16 %v2817_v62, %v2815_v56 }
 0x251   : > { %11172 = vst [vmem:[#allocation13_spill] sm:$0xff] %v8198_v0  ;;  %v3492_v3 = vshll.u32 %v3447_v1, 16  ;;  %v3793_v4 = vshrl.u32 %v3447_v1, 16  ;;  %4153 = vrot.lane.b32.xlu0 %v8198_v0, %s7305_s28  ;;  %4000 = vrot.lane.b32.xlu1 %v8198_v0, %s7304_s23  ;;  %v3697_v6 = vrot.slane %v8198_v0, 1  ;;  %v3698_v7 = vrot.slane %v3447_v1, 1 }
 0x252   : > { %v3486_v9 = vshrl.u32 %v8198_v0, 16  ;;  %v3488_v10 = vshll.u32 %v8198_v0, 16  ;;  %3161 = vmatprep.mubr.bf16.mxu1 %v2865_v2  ;;  %v3955_v17 = vrot.slane %v8198_v0, 2  ;;  %v3956_v18 = vrot.slane %v3447_v1, 2 }
 0x253   : > { %v3067_v11 = vpop.f32.mrf.mxu1  ;;  %v8209_v12 = vsel %vm3690_vm12, %v3697_v6, %v3698_v7  ;;  %v3795_v15 = vrot.slane %v3793_v4, 1  ;;  %v3796_v16 = vrot.slane %v3492_v3, 2  ;;  %3162 = vmatmul.mubr.bf16.gmra.mxu1 %v2864_v63  ;;  %v3494_v40 = vrot.slane %v3492_v3, 1 }
 0x254   : > { %11173 = vst [vmem:[#allocation14_spill] sm:$0xff] %v8209_v12  ;;  %v3790_v20 = vrot.slane %v3486_v9, 1  ;;  %v3791_v21 = vrot.slane %v3488_v10, 2  ;;  %v3490_v24 = vrot.slane %v3488_v10, 1  ;;  %v3068_v28 = vadd.f32 %v8189_v33, %v3067_v11 }
 0x255   : > { %v3069_v22 = vpop.f32.mrf.mxu1  ;;  %4078 = vrot.lane.b32.xlu0 %v8209_v12, %s7306_s10  ;;  %3743 = vrot.lane.b32.xlu1 %v8209_v12, %s7305_s28  ;;  %v2715_v26 = vpop.f32.mrf.mxu0  ;;  %v3797_v30 = vor.u32 %v3796_v16, %v3795_v15  ;;  %v8220_v37 = vsel %vm3948_vm14, %v3955_v17, %v3956_v18 }
 0x256   : > { %v3792_v29 = vor.u32 %v3791_v21, %v3790_v20  ;;  %v3491_v31 = vor.u32 %v3490_v24, %v3486_v9  ;;  %v2716_v32 = vadd.f32 %v2715_v26, %v7960_v49  ;;  %11174 = vst [vmem:[#allocation15_spill] sm:$0xff] %v8220_v37  ;;  %v3208_v42 = vmax.f32 %v3068_v28, 0.0 }
 0x257   : > { %v3070_v25 = vpop.f32.mrf.mxu1  ;;  %v2717_v35 = vpop.f32.mrf.mxu0 }
 0x258   : > { %v3071_v36 = vadd.f32 %v8189_v33, %v3070_v25  ;;  %v2718_v38 = vadd.f32 %v2717_v35, %v7958_v47  ;;  %v8229_v45 = vsel %vm3771_vm13, %v3792_v29, %v3797_v30  ;;  %v3495_v46 = vsel %vm3465_vm11, %v3491_v31, %v3494_v40 }
 0x259   : > { %v3072_v39 = vpop.f32.mrf.mxu1  ;;  %4275 = vrot.lane.b32.xlu0 %v8220_v37, %s7305_s28  ;;  %4122 = vrot.lane.b32.xlu1 %v8220_v37, %s7304_s23  ;;  %v2719_v41 = vpop.f32.mrf.mxu0  ;;  %11175 = vst [vmem:[#allocation16_spill] sm:$0xff] %v8229_v45  ;;  %v2818_v48 = vmax.f32 %v2716_v32, 0.0 }
 0x25a   : > { %v3209_v43 = vmax.f32 %v3071_v36, 0.0  ;;  %v2720_v44 = vadd.f32 %v2719_v41, %v7960_v49  ;;  %v2819_v52 = vmax.f32 %v2718_v38, 0.0 }
 0x25b   : > { %v2721_v50 = vpop.f32.mrf.mxu0 }
 0x25c   : > { %v3245_v51 = vpack.c.bf16 %v3209_v43, %v3208_v42  ;;  %v2820_v54 = vmax.f32 %v2720_v44, 0.0  ;;  %v2722_v56 = vadd.f32 %v2721_v50, %v7958_v47 }
 0x25d   : > { %3920 = vrot.lane.b32.xlu1 %v8229_v45, %s7306_s10  ;;  %3630 = vrot.lane.b32.xlu0 %v3495_v46, %s7304_s23 }
 0x25e   : > { %v3387_v58 = vrot.slane %v3245_v51, 7  ;;  %v2821_v60 = vmax.f32 %v2722_v56, 0.0  ;;  %v2866_v61 = vpack.c.bf16 %v2820_v54, %v2818_v48 }
 0x260   : > { %v8237_v62 = vsel %vm2511_vm0, 0, %v3387_v58  ;;  %v8240_v63 = vsel %vm2511_vm0, %v3387_v58, 0  ;;  %v2867_v1 = vpack.c.bf16 %v2821_v60, %v2819_v52 }
 0x261   : > { %11176 = vst [vmem:[#allocation17_spill] sm:$0xff] %v8237_v62  ;;  %11177 = vst [vmem:[#allocation18_spill] sm:$0xff] %v8240_v63  ;;  %4042 = vrot.lane.b32.xlu1 %v3495_v46, %s7305_s28  ;;  %4195 = vrot.lane.b32.xlu0 %v3495_v46, %s7306_s10  ;;  %v3700_v2 = vrot.slane %v8237_v62, 1  ;;  %v10892_v3 = vrot.slane %v8240_v63, 1  ;;  %v10893_v7 = vshrl.u32 %v8240_v63, 16  ;;  %v3958_v10 = vrot.slane %v8237_v62, 2 }
 0x262   : > { %3169 = vmatprep.mubr.bf16.mxu1 %v2867_v1  ;;  %v3959_v11 = vrot.slane %v8240_v63, 2  ;;  %v3498_v17 = vshll.u32 %v8237_v62, 16  ;;  %v3496_v20 = vshrl.u32 %v8237_v62, 16  ;;  %v3502_v21 = vshll.u32 %v8240_v63, 16 }
 0x263   : > { %v3075_v4 = vpop.f32.mrf.mxu1  ;;  %v8249_v6 = vsel %vm3690_vm12, %v3700_v2, %v10892_v3  ;;  %3170 = vmatmul.mubr.bf16.gmra.mxu1 %v2866_v61  ;;  %v8274_v30 = vrot.slane %v10893_v7, 1 }
 0x264   : > { %11178 = vst [vmem:[#allocation19_spill] sm:$0xff] %v8249_v6  ;;  %v3076_v16 = vadd.f32 %v8189_v33, %v3075_v4  ;;  %v8270_v29 = vsel %vm3948_vm14, %v3958_v10, %v3959_v11  ;;  %v3500_v36 = vrot.slane %v3498_v17, 1  ;;  %v3799_v39 = vrot.slane %v3496_v20, 1 }
 0x265   : > { %v3077_v9 = vpop.f32.mrf.mxu1  ;;  %4240 = vrot.lane.b32.xlu1 %v8229_v45, %s7304_s23  ;;  %3745 = vrot.lane.b32.xlu0 %v8249_v6, %s7305_s28  ;;  %v2725_v15 = vpop.f32.mrf.mxu0  ;;  %11179 = vst [vmem:[#allocation20_spill] sm:$0xff] %v8270_v29  ;;  %11180 = vst [vmem:[#allocation21_spill] sm:$0xff] %v8274_v30  ;;  %v3800_v40 = vrot.slane %v3498_v17, 2  ;;  %v3805_v41 = vrot.slane %v3502_v21, 2  ;;  %v3504_v2 = vrot.slane %v3502_v21, 1 }
 0x266   : > { %v2726_v22 = vadd.f32 %v2725_v15, %v7960_v49  ;;  %v3210_v32 = vmax.f32 %v3076_v16, 0.0  ;;  %v3501_v54 = vor.u32 %v3500_v36, %v3496_v20 }
 0x267   : > { %v3078_v18 = vpop.f32.mrf.mxu1  ;;  %v2727_v24 = vpop.f32.mrf.mxu0  ;;  %v3801_v60 = vor.u32 %v3800_v40, %v3799_v39  ;;  %v3806_v61 = vor.u32 %v3805_v41, %v8274_v30 }
 0x268   : > { %v3079_v26 = vadd.f32 %v8189_v33, %v3078_v18  ;;  %v2728_v28 = vadd.f32 %v2727_v24, %v7958_v47  ;;  %v2822_v42 = vmax.f32 %v2726_v22, 0.0  ;;  %v3505_v10 = vsel %vm3465_vm11, %v3501_v54, %v3504_v2 }
 0x269   : > { %v3080_v25 = vpop.f32.mrf.mxu1  ;;  %4002 = vrot.lane.b32.xlu1 %v8237_v62, %s7304_s23  ;;  %4080 = vrot.lane.b32.xlu0 %v8249_v6, %s7306_s10  ;;  %v2729_v31 = vpop.f32.mrf.mxu0  ;;  %v8295_v11 = vsel %vm3771_vm13, %v3801_v60, %v3806_v61 }
 0x26a   : > { %v3211_v35 = vmax.f32 %v3079_v26, 0.0  ;;  %v2730_v38 = vadd.f32 %v2729_v31, %v7960_v49  ;;  %v2823_v46 = vmax.f32 %v2728_v28, 0.0  ;;  %11183 = vst [vmem:[#allocation24_spill] sm:$0xff] %v8295_v11 }
 0x26b   : > { %v2731_v43 = vpop.f32.mrf.mxu0 }
 0x26c   : > { %v3246_v44 = vpack.c.bf16 %v3211_v35, %v3210_v32  ;;  %v2824_v48 = vmax.f32 %v2730_v38, 0.0  ;;  %v2732_v50 = vadd.f32 %v2731_v43, %v7958_v47 }
 0x26d   : > { %4155 = vrot.lane.b32.xlu1 %v8237_v62, %s7305_s28  ;;  %4124 = vrot.lane.b32.xlu0 %v8270_v29, %s7304_s23 }
 0x26e   : > { %v3388_v51 = vrot.slane %v3246_v44, 7  ;;  %v2825_v52 = vmax.f32 %v2732_v50, 0.0  ;;  %v2868_v56 = vpack.c.bf16 %v2824_v48, %v2822_v42 }
 0x270   : > { %v8283_v58 = vsel %vm2511_vm0, 0, %v3388_v51  ;;  %v2869_v1 = vpack.c.bf16 %v2825_v52, %v2823_v46  ;;  %v8312_v25 = vsel %vm2511_vm0, %v3388_v51, 0 }
 0x271   : > { %11181 = vst [vmem:[#allocation22_spill] sm:$0xff] %v8283_v58  ;;  %4308 = vrot.lane.b32.xlu1 %v8237_v62, %s7306_s10  ;;  %4277 = vrot.lane.b32.xlu0 %v8270_v29, %s7305_s28  ;;  %v8291_v4 = vshrl.u32 %v8283_v58, 16  ;;  %v3508_v16 = vshll.u32 %v8283_v58, 16  ;;  %11185 = vst [vmem:[#allocation26_spill] sm:$0xff] %v8312_v25  ;;  %v3703_v35 = vrot.slane %v8283_v58, 1  ;;  %v8319_v36 = vrot.slane %v8312_v25, 1 }
 0x272   : > { %3177 = vmatprep.mubr.bf16.mxu1 %v2869_v1  ;;  %v8322_v38 = vshrl.u32 %v8312_v25, 16  ;;  %v3512_v40 = vshll.u32 %v8312_v25, 16  ;;  %v3961_v41 = vrot.slane %v8283_v58, 2  ;;  %v3962_v46 = vrot.slane %v8312_v25, 2 }
 0x273   : > { %11182 = vst [vmem:[#allocation23_spill] sm:$0xff] %v8291_v4  ;;  %v3083_v9 = vpop.f32.mrf.mxu1  ;;  %3178 = vmatmul.mubr.bf16.gmra.mxu1 %v2868_v56  ;;  %v10888_v17 = vrot.slane %v8291_v4, 7  ;;  %11186 = vst [vmem:[#allocation27_spill] sm:$0xff] %v8319_v36  ;;  %v8338_v44 = vsel %vm3690_vm12, %v3703_v35, %v8319_v36  ;;  %v3808_v48 = vrot.slane %v8291_v4, 1  ;;  %v3809_v50 = vrot.slane %v3508_v16, 2 }
 0x274   : > { %v3084_v18 = vadd.f32 %v8189_v33, %v3083_v9  ;;  %11187 = vst [vmem:[#allocation28_spill] sm:$0xff] %v8322_v38  ;;  %11189 = vst [vmem:[#allocation30_spill] sm:$0xff] %v8338_v44  ;;  %v8344_v52 = vrot.slane %v8322_v38, 1  ;;  %v3814_v54 = vrot.slane %v3512_v40, 2  ;;  %v3510_v56 = vrot.slane %v3508_v16, 1 }
 0x275   : > { %v3085_v15 = vpop.f32.mrf.mxu1  ;;  %3632 = vrot.lane.b32.xlu1 %v3505_v10, %s7304_s23  ;;  %3922 = vrot.lane.b32.xlu0 %v8295_v11, %s7306_s10  ;;  %v8305_v21 = vor.u32 %v10888_v17, %v3508_v16  ;;  %v8355_v9 = vsel %vm3948_vm14, %v3961_v41, %v3962_v46 }
 0x276   : > { %v3212_v26 = vmax.f32 %v3084_v18, 0.0  ;;  %11190 = vst [vmem:[#allocation31_spill] sm:$0xff] %v8344_v52 }
 0x277   : > { %v3086_v20 = vpop.f32.mrf.mxu1  ;;  %11184 = vst [vmem:[#allocation25_spill] sm:$0xff] %v8305_v21 }
 0x278   : > { %v3087_v22 = vadd.f32 %v8189_v33, %v3086_v20  ;;  %v3815_v20 = vor.u32 %v3814_v54, %v8344_v52 }
 0x279   : > { %v3088_v24 = vpop.f32.mrf.mxu1  ;;  %4044 = vrot.lane.b32.xlu1 %v3505_v10, %s7305_s28  ;;  %4242 = vrot.lane.b32.xlu0 %v8295_v11, %s7304_s23 }
 0x27a   : > { %v3213_v28 = vmax.f32 %v3087_v22, 0.0  ;;  %v3511_v22 = vor.u32 %v3510_v56, %v8291_v4 }
 0x27c   : > { %v3247_v31 = vpack.c.bf16 %v3213_v28, %v3212_v26  ;;  %v3514_v28 = vrot.slane %v3512_v40, 1 }
 0x27d   : > { %4197 = vrot.lane.b32.xlu1 %v3505_v10, %s7306_s10  ;;  %4157 = vrot.lane.b32.xlu0 %v8283_v58, %s7305_s28  ;;  %v3810_v10 = vor.u32 %v3809_v50, %v3808_v48 }
 0x27e   : > { %v3389_v32 = vrot.slane %v3247_v31, 7  ;;  %v3515_v41 = vsel %vm3465_vm11, %v3511_v22, %v3514_v28 }
 0x27f   : > { %v8370_v35 = vsel %vm3771_vm13, %v3810_v10, %v3815_v20 }
 0x280   : > { %v8325_v39 = vsel %vm2511_vm0, 0, %v3389_v32  ;;  %11192 = vst [vmem:[#allocation33_spill] sm:$0xff] %v8370_v35  ;;  %v8385_v50 = vsel %vm2511_vm0, %v3389_v32, 0 }
 0x281   : > { %4004 = vrot.lane.b32.xlu1 %v8283_v58, %s7304_s23  ;;  %4310 = vrot.lane.b32.xlu0 %v8283_v58, %s7306_s10  ;;  %v8334_v42 = vshrl.u32 %v8325_v39, 16  ;;  %v8351_v61 = vshll.u32 %v8325_v39, 16  ;;  %11194 = vst [vmem:[#allocation35_spill] sm:$0xff] %v8385_v50  ;;  %v3965_v10 = vrot.slane %v8385_v50, 2  ;;  %v3706_v32 = vrot.slane %v8325_v39, 1 }
 0x282   : > { %v8405_v22 = vrot.slane %v8385_v50, 1 }
 0x283   : > { %11188 = vst [vmem:[#allocation29_spill] sm:$0xff] %v8334_v42  ;;  %v3091_v43 = vpop.f32.mrf.mxu1  ;;  %v10889_v1 = vrot.slane %v8334_v42, 7 }
 0x284   : > { %v3092_v51 = vadd.f32 %v8189_v33, %v3091_v43  ;;  %11196 = vst [vmem:[#allocation37_spill] sm:$0xff] %v8405_v22 }
 0x285   : > { %v3093_v60 = vpop.f32.mrf.mxu1  ;;  %3747 = vrot.lane.b32.xlu1 %v8338_v44, %s7305_s28  ;;  %4082 = vrot.lane.b32.xlu0 %v8338_v44, %s7306_s10  ;;  %v8360_v15 = vor.u32 %v10889_v1, %v8351_v61 }
 0x286   : > { %v3214_v16 = vmax.f32 %v3092_v51, 0.0 }
 0x287   : > { %v3094_v2 = vpop.f32.mrf.mxu1  ;;  %11191 = vst [vmem:[#allocation32_spill] sm:$0xff] %v8360_v15 }
 0x288   : > { %v3095_v18 = vadd.f32 %v8189_v33, %v3094_v2  ;;  %v3964_v2 = vrot.slane %v8325_v39, 2 }
 0x289   : > { %4279 = vrot.lane.b32.xlu1 %v8355_v9, %s7305_s28  ;;  %4126 = vrot.lane.b32.xlu0 %v8355_v9, %s7304_s23  ;;  %v3096_v24 = vpop.f32.mrf.mxu1 }
 0x28a   : > { %v3215_v26 = vmax.f32 %v3095_v18, 0.0 }
 0x28c   : > { %v3248_v31 = vpack.c.bf16 %v3215_v26, %v3214_v16  ;;  %v3520_v26 = vrot.slane %v8351_v61, 1 }
 0x28d   : > { %3924 = vrot.lane.b32.xlu1 %v8370_v35, %s7306_s10  ;;  %3634 = vrot.lane.b32.xlu0 %v3515_v41, %s7304_s23 }
 0x28e   : > { %v3390_v43 = vrot.slane %v3248_v31, 7  ;;  %v3521_v17 = vor.u32 %v3520_v26, %v8334_v42  ;;  %v3818_v26 = vrot.slane %v8351_v61, 2 }
 0x290   : > { %v8377_v46 = vsel %vm2511_vm0, 0, %v3390_v43  ;;  %v8464_v55 = vsel %vm2511_vm0, %v3390_v43, 0 }
 0x291   : > { %4046 = vrot.lane.b32.xlu1 %v3515_v41, %s7305_s28  ;;  %4199 = vrot.lane.b32.xlu0 %v3515_v41, %s7306_s10  ;;  %v8382_v48 = vshrl.u32 %v8377_v46, 16  ;;  %v8393_v56 = vshll.u32 %v8377_v46, 16  ;;  %v3522_v41 = vshll.u32 %v8385_v50, 16  ;;  %11202 = vst [vmem:[#allocation43_spill] sm:$0xff] %v8464_v55  ;;  %v3709_v43 = vrot.slane %v8377_v46, 1 }
 0x292   : > { %v8479_v59 = vrot.slane %v8464_v55, 1  ;;  %v3967_v4 = vrot.slane %v8377_v46, 2 }
 0x293   : > { %v3099_v40 = vpop.f32.mrf.mxu1  ;;  %11193 = vst [vmem:[#allocation34_spill] sm:$0xff] %v8382_v48  ;;  %v10890_v60 = vrot.slane %v8382_v48, 7  ;;  %v3823_v1 = vrot.slane %v3522_v41, 2  ;;  %v3530_v8 = vrot.slane %v8393_v56, 1 }
 0x294   : > { %v3100_v51 = vadd.f32 %v8189_v33, %v3099_v40  ;;  %v8415_v40 = vshrl.u32 %v8385_v50, 16  ;;  %11205 = vst [vmem:[#allocation46_spill] sm:$0xff] %v8479_v59 }
 0x295   : > { %4244 = vrot.lane.b32.xlu1 %v8370_v35, %s7304_s23  ;;  %4006 = vrot.lane.b32.xlu0 %v8325_v39, %s7304_s23  ;;  %v3101_v54 = vpop.f32.mrf.mxu1  ;;  %v8402_v18 = vor.u32 %v10890_v60, %v8393_v56 }
 0x296   : > { %v3216_v20 = vmax.f32 %v3100_v51, 0.0  ;;  %11197 = vst [vmem:[#allocation38_spill] sm:$0xff] %v8415_v40  ;;  %v8418_v51 = vsel %vm3948_vm14, %v3964_v2, %v3965_v10  ;;  %v8422_v54 = vsel %vm3690_vm12, %v3706_v32, %v8405_v22  ;;  %v8433_v2 = vrot.slane %v8415_v40, 1 }
 0x297   : > { %v3102_v16 = vpop.f32.mrf.mxu1  ;;  %11195 = vst [vmem:[#allocation36_spill] sm:$0xff] %v8402_v18  ;;  %11198 = vst [vmem:[#allocation39_spill] sm:$0xff] %v8422_v54 }
 0x298   : > { %v3103_v24 = vadd.f32 %v8189_v33, %v3102_v16  ;;  %11199 = vst [vmem:[#allocation40_spill] sm:$0xff] %v8433_v2 }
 0x299   : > { %4312 = vrot.lane.b32.xlu1 %v8325_v39, %s7306_s10  ;;  %4159 = vrot.lane.b32.xlu0 %v8325_v39, %s7305_s28  ;;  %v3104_v28 = vpop.f32.mrf.mxu1 }
 0x29a   : > { %v3217_v31 = vmax.f32 %v3103_v24, 0.0  ;;  %v3524_v28 = vrot.slane %v3522_v41, 1 }
 0x29c   : > { %v8424_v16 = vpack.c.bf16 %v3217_v31, %v3216_v20  ;;  %v3525_v32 = vsel %vm3465_vm11, %v3521_v17, %v3524_v28  ;;  %v3817_v20 = vrot.slane %v8334_v42, 1  ;;  %v3824_v17 = vor.u32 %v3823_v1, %v8433_v2 }
 0x29d   : > { %4281 = vrot.lane.b32.xlu1 %v8418_v51, %s7305_s28  ;;  %3749 = vrot.lane.b32.xlu0 %v8422_v54, %s7305_s28  ;;  %v3827_v42 = vrot.slane %v8393_v56, 2 }
 0x29e   : > { %v10894_v24 = vrot.slane %v8424_v16, 7  ;;  %v3819_v3 = vor.u32 %v3818_v26, %v3817_v20 }
 0x2a0   : > { %v8438_v10 = vsel %vm2511_vm0, 0, %v10894_v24  ;;  %v8467_v20 = vsel %vm3771_vm13, %v3819_v3, %v3824_v17  ;;  %v8481_v3 = vpop.permute.xlu0 %3626 }
 0x2a1   : > { %3636 = vrot.lane.b32.xlu1 %v3525_v32, %s7304_s23  ;;  %4084 = vrot.lane.b32.xlu0 %v8422_v54, %s7306_s10  ;;  %v8447_v31 = vshrl.u32 %v8438_v10, 16  ;;  %v8450_v60 = vshll.u32 %v8438_v10, 16  ;;  %11203 = vst [vmem:[#allocation44_spill] sm:$0xff] %v8467_v20  ;;  %11206 = vst [vmem:[#allocation47_spill] sm:$0xff] %v8481_v3  ;;  %v3970_v23 = vrot.slane %v8438_v10, 2 }
 0x2a3   : > { %11200 = vst [vmem:[#allocation41_spill] sm:$0xff] %v8447_v31  ;;  %v3107_v41 = vpop.f32.mrf.mxu1  ;;  %v10896_v5 = vrot.slane %v8447_v31, 7 }
 0x2a4   : > { %v3108_v28 = vadd.f32 %v8189_v33, %v3107_v41 }
 0x2a5   : > { %4048 = vrot.lane.b32.xlu1 %v3525_v32, %s7305_s28  ;;  %4128 = vrot.lane.b32.xlu0 %v8418_v51, %s7304_s23  ;;  %v3109_v61 = vpop.f32.mrf.mxu1  ;;  %v8461_v7 = vor.u32 %v10896_v5, %v8450_v60  ;;  %v8475_v5 = vshrl.u32 %v8464_v55, 16 }
 0x2a6   : > { %v3218_v1 = vmax.f32 %v3108_v28, 0.0  ;;  %v8489_v28 = vpop.permute.xlu1 %3628 }
 0x2a7   : > { %11201 = vst [vmem:[#allocation42_spill] sm:$0xff] %v8461_v7  ;;  %v3110_v24 = vpop.f32.mrf.mxu1  ;;  %11204 = vst [vmem:[#allocation45_spill] sm:$0xff] %v8475_v5 }
 0x2a8   : > { %v3111_v26 = vadd.f32 %v8189_v33, %v3110_v24  ;;  %v3532_v24 = vshll.u32 %v8464_v55, 16  ;;  %11207 = vst [vmem:[#allocation48_spill] sm:$0xff] %v8489_v28 }
 0x2a9   : > { %4246 = vrot.lane.b32.xlu1 %v8467_v20, %s7304_s23  ;;  %3926 = vrot.lane.b32.xlu0 %v8467_v20, %s7306_s10  ;;  %v3112_v41 = vpop.f32.mrf.mxu1 }
 0x2aa   : > { %v3219_v61 = vmax.f32 %v3111_v26, 0.0  ;;  %v8494_v41 = vsel %vm3690_vm12, %v3709_v43, %v8479_v59  ;;  %v3832_v15 = vrot.slane %v3532_v24, 2  ;;  %v8512_v43 = vpop.permute.xlu0 %6984  ;;  %v8514_v18 = vpop.permute.xlu1 %3916 }
 0x2ab   : > { %11208 = vst [vmem:[#allocation49_spill] sm:$0xff] %v8494_v41  ;;  %11211 = vst [vmem:[#allocation52_spill] sm:$0xff] %v8512_v43  ;;  %v2735_v50 = vpop.f32.mrf.mxu0 }
 0x2ac   : > { %v8483_v17 = vpack.c.bf16 %v3219_v61, %v3218_v1  ;;  %v3968_v1 = vrot.slane %v8464_v55, 2  ;;  %v8499_v61 = vrot.slane %v8475_v5, 1  ;;  %11212 = vst [vmem:[#allocation53_spill] sm:$0xff] %v8514_v18  ;;  %v2736_v22 = vadd.f32 %v2735_v50, %v7960_v49 }
 0x2ad   : > { %4314 = vrot.lane.b32.xlu1 %v8377_v46, %s7306_s10  ;;  %4201 = vrot.lane.b32.xlu0 %v3525_v32, %s7306_s10  ;;  %v3826_v32 = vrot.slane %v8382_v48, 1  ;;  %v2737_v45 = vpop.f32.mrf.mxu0 }
 0x2ae   : > { %v10902_v26 = vrot.slane %v8483_v17, 7  ;;  %11209 = vst [vmem:[#allocation50_spill] sm:$0xff] %v8499_v61  ;;  %v8517_v19 = vsel %vm3948_vm14, %v3967_v4, %v3968_v1  ;;  %v3833_v13 = vor.u32 %v3832_v15, %v8499_v61  ;;  %v8533_v63 = vpop.permute.xlu1 %6989  ;;  %v8545_v52 = vpop.permute.xlu0 %3918  ;;  %v2738_v55 = vadd.f32 %v2737_v45, %v7958_v47 }
 0x2af   : > { %v3828_v14 = vor.u32 %v3827_v42, %v3826_v32  ;;  %11213 = vst [vmem:[#allocation54_spill] sm:$0xff] %v8533_v63  ;;  %v3534_v42 = vrot.slane %v3532_v24, 1  ;;  %v3531_v32 = vor.u32 %v3530_v8, %v8382_v48  ;;  %11215 = vst [vmem:[#allocation56_spill] sm:$0xff] %v8545_v52  ;;  %v2739_v6 = vpop.f32.mrf.mxu0  ;;  %v11245_v52 = vrot.slane %v8483_v17, 7 }
 0x2b0   : > { %v8504_v21 = vsel %vm2511_vm0, 0, %v10902_v26  ;;  %v2740_v44 = vadd.f32 %v2739_v6, %v7960_v49 }
 0x2b1   : > { %11210 = vst [vmem:[#allocation51_spill] sm:$0xff] %v8504_v21  ;;  %3751 = vrot.lane.b32.xlu1 %v8494_v41, %s7305_s28  ;;  %4008 = vrot.lane.b32.xlu0 %v8377_v46, %s7304_s23  ;;  %v8520_v7 = vshrl.u32 %v8504_v21, 16  ;;  %v8530_v4 = vshll.u32 %v8504_v21, 16  ;;  %v2741_v54 = vpop.f32.mrf.mxu0 }
 0x2b2   : > { %v8557_v8 = vpop.permute.xlu0 %6994  ;;  %v2742_v6 = vadd.f32 %v2741_v54, %v7958_v47 }
 0x2b3   : > { %v3115_v26 = vpop.f32.mrf.mxu1  ;;  %v10919_v1 = vrot.slane %v8520_v7, 7  ;;  %11216 = vst [vmem:[#allocation57_spill] sm:$0xff] %v8557_v8 }
 0x2b4   : > { %v3116_v30 = vadd.f32 %v8189_v33, %v3115_v26  ;;  %v8541_v26 = vsel %vm3771_vm13, %v3828_v14, %v3833_v13  ;;  %v8559_v13 = vpop.permute.xlu1 %4040 }
 0x2b5   : > { %4283 = vrot.lane.b32.xlu1 %v8517_v19, %s7305_s28  ;;  %4161 = vrot.lane.b32.xlu0 %v8377_v46, %s7305_s28  ;;  %v3117_v57 = vpop.f32.mrf.mxu1  ;;  %v8538_v56 = vor.u32 %v10919_v1, %v8530_v4  ;;  %11214 = vst [vmem:[#allocation55_spill] sm:$0xff] %v8541_v26  ;;  %v3535_v1 = vsel %vm3465_vm11, %v3531_v32, %v3534_v42  ;;  %11217 = vst [vmem:[#allocation58_spill] sm:$0xff] %v8559_v13  ;;  %v11221_v42 = vrot.slane %v8424_v16, 7 }
 0x2b6   : > { %v3220_v57 = vmax.f32 %v3116_v30, 0.0 }
 0x2b7   : > { %v3118_v15 = vpop.f32.mrf.mxu1 }
 0x2b8   : > { %v3119_v25 = vadd.f32 %v8189_v33, %v3118_v15  ;;  %v8577_v15 = vsel %vm2511_vm0, %v11221_v42, 0 }
 0x2b9   : > { %3928 = vrot.lane.b32.xlu1 %v8541_v26, %s7306_s10  ;;  %4086 = vrot.lane.b32.xlu0 %v8494_v41, %s7306_s10  ;;  %v3120_v24 = vpop.f32.mrf.mxu1  ;;  %11222 = vst [vmem:[#allocation62_spill] sm:$0xff] %v8577_v15  ;;  %v8595_v2 = vshrl.u32 %v8577_v15, 16  ;;  %v3542_v11 = vshll.u32 %v8577_v15, 16 }
 0x2ba   : > { %v3221_v36 = vmax.f32 %v3119_v25, 0.0 }
 0x2bb   : > { %11226 = vst [vmem:[#allocation66_spill] sm:$0xff] %v8595_v2  ;;  %v3544_v20 = vrot.slane %v3542_v11, 1  ;;  %v2745_v5 = vpop.f32.mrf.mxu0 }
 0x2bc   : > { %v8552_v38 = vpack.c.bf16 %v3221_v36, %v3220_v57 }
 0x2bd   : > { %4050 = vrot.lane.b32.xlu1 %v3535_v1, %s7305_s28  ;;  %4130 = vrot.lane.b32.xlu0 %v8517_v19, %s7304_s23 }
 0x2be   : > { %v10922_v14 = vrot.slane %v8552_v38, 7 }
 0x2c0   : > { %v8568_v30 = vsel %vm2511_vm0, 0, %v10922_v14 }
 0x2c1   : > { %4248 = vrot.lane.b32.xlu1 %v8541_v26, %s7304_s23  ;;  %3638 = vrot.lane.b32.xlu0 %v3535_v1, %s7304_s23  ;;  %11218 = vst [vmem:[#allocation59_spill] sm:$0xff] %v8568_v30  ;;  %v8580_v57 = vshrl.u32 %v8568_v30, 16  ;;  %v8587_v48 = vshll.u32 %v8568_v30, 16 }
 0x2c3   : > { %v8570_v25 = vpop.permute.xlu0 %4153  ;;  %v8572_v36 = vpop.permute.xlu1 %4000  ;;  %11223 = vst [vmem:[#allocation63_spill] sm:$0xff] %v8580_v57  ;;  %v10945_v16 = vrot.slane %v8580_v57, 7 }
 0x2c4   : > { %11219 = vst [vmem:[#allocation60_spill] sm:$0xff] %v8570_v25  ;;  %11220 = vst [vmem:[#allocation61_spill] sm:$0xff] %v8572_v36  ;;  %v3123_v32 = vpop.f32.mrf.mxu1 }
 0x2c5   : > { %4316 = vrot.lane.b32.xlu1 %v8438_v10, %s7306_s10  ;;  %4203 = vrot.lane.b32.xlu0 %v3535_v1, %s7306_s10  ;;  %v3124_v24 = vadd.f32 %v8189_v33, %v3123_v32  ;;  %v3971_v1 = vrot.slane %v8577_v15, 2  ;;  %v3540_v32 = vrot.slane %v8450_v60, 1  ;;  %v8604_v12 = vor.u32 %v10945_v16, %v8587_v48 }
 0x2c6   : > { %v3125_v14 = vpop.f32.mrf.mxu1 }
 0x2c7   : > { %v8590_v42 = vpop.permute.xlu0 %4078  ;;  %v8592_v25 = vpop.permute.xlu1 %3743  ;;  %11227 = vst [vmem:[#allocation67_spill] sm:$0xff] %v8604_v12  ;;  %v3222_v34 = vmax.f32 %v3124_v24, 0.0  ;;  %v8619_v59 = vsel %vm3948_vm14, %v3970_v23, %v3971_v1  ;;  %v3541_v24 = vor.u32 %v3540_v32, %v8447_v31  ;;  %v8630_v23 = vrot.slane %v8595_v2, 1 }
 0x2c8   : > { %11224 = vst [vmem:[#allocation64_spill] sm:$0xff] %v8590_v42  ;;  %11225 = vst [vmem:[#allocation65_spill] sm:$0xff] %v8592_v25  ;;  %v3126_v14 = vpop.f32.mrf.mxu1  ;;  %v8633_v1 = vrot.slane %v8577_v15, 1 }
 0x2c9   : > { %4859 = vrot.lane.b32.xlu1 %v8595_v2, %s7304_s23  ;;  %4010 = vrot.lane.b32.xlu0 %v8438_v10, %s7304_s23  ;;  %v3127_v40 = vadd.f32 %v8189_v33, %v3126_v14  ;;  %v2826_v14 = vmax.f32 %v2736_v22, 0.0  ;;  %11230 = vst [vmem:[#allocation70_spill] sm:$0xff] %v8630_v23  ;;  %v3835_v22 = vrot.slane %v8447_v31, 1  ;;  %v8643_v54 = vsel %vm3465_vm11, %v3541_v24, %v3544_v20 }
 0x2ca   : > { %v3128_v50 = vpop.f32.mrf.mxu1  ;;  %11231 = vst [vmem:[#allocation71_spill] sm:$0xff] %v8633_v1 }
 0x2cb   : > { %v8613_v61 = vpop.permute.xlu0 %4275  ;;  %v8615_v35 = vpop.permute.xlu1 %4122  ;;  %v3223_v16 = vmax.f32 %v3127_v40, 0.0  ;;  %v2827_v50 = vmax.f32 %v2738_v55, 0.0  ;;  %v2828_v40 = vmax.f32 %v2740_v44, 0.0  ;;  %v2829_v44 = vmax.f32 %v2742_v6, 0.0 }
 0x2cc   : > { %11228 = vst [vmem:[#allocation68_spill] sm:$0xff] %v8613_v61  ;;  %11229 = vst [vmem:[#allocation69_spill] sm:$0xff] %v8615_v35  ;;  %v3841_v35 = vrot.slane %v3542_v11, 2  ;;  %v2747_v11 = vpop.f32.mrf.mxu0 }
 0x2cd   : > { %4285 = vrot.lane.b32.xlu1 %v8619_v59, %s7305_s28  ;;  %4163 = vrot.lane.b32.xlu0 %v8438_v10, %s7305_s28  ;;  %v8626_v45 = vpack.c.bf16 %v3223_v16, %v3222_v34  ;;  %v3836_v34 = vrot.slane %v8450_v60, 2  ;;  %v3712_v16 = vrot.slane %v8438_v10, 1  ;;  %v2870_v2 = vpack.c.bf16 %v2828_v40, %v2826_v14 }
 0x2ce   : > { %v2871_v31 = vpack.c.bf16 %v2829_v44, %v2827_v50  ;;  %v3842_v20 = vor.u32 %v3841_v35, %v8630_v23  ;;  %v2746_v14 = vadd.f32 %v2745_v5, %v7960_v49  ;;  %v2748_v44 = vadd.f32 %v2747_v11, %v7958_v47  ;;  %v2749_v26 = vpop.f32.mrf.mxu0 }
 0x2cf   : > { %v8636_v32 = vpop.permute.xlu1 %3920  ;;  %v8638_v61 = vpop.permute.xlu0 %3630  ;;  %v10960_v55 = vrot.slane %v8626_v45, 7  ;;  %v3837_v6 = vor.u32 %v3836_v34, %v3835_v22  ;;  %v8663_v40 = vsel %vm3690_vm12, %v3712_v16, %v8633_v1 }
 0x2d0   : > { %11232 = vst [vmem:[#allocation72_spill] sm:$0xff] %v8636_v32  ;;  %11233 = vst [vmem:[#allocation73_spill] sm:$0xff] %v8638_v61  ;;  %3185 = vmatprep.mubr.bf16.mxu1 %v2871_v31  ;;  %v2751_v31 = vpop.f32.mrf.mxu0 }
 0x2d1   : > { %3640 = vrot.lane.b32.xlu1 %v8643_v54, %s7304_s23  ;;  %4901 = vrot.lane.b32.xlu0 %v8633_v1, %s7305_s28  ;;  %v8658_v24 = vsel %vm2511_vm0, 0, %v10960_v55  ;;  %11237 = vst [vmem:[#allocation77_spill] sm:$0xff] %v8663_v40  ;;  %v8679_v11 = vsel %vm3771_vm13, %v3837_v6, %v3842_v20  ;;  %v2750_v55 = vadd.f32 %v2749_v26, %v7960_v49 }
 0x2d2   : > { %11236 = vst [vmem:[#allocation76_spill] sm:$0xff] %v8658_v24  ;;  %3186 = vmatmul.mubr.bf16.gmra.mxu1 %v2870_v2  ;;  %v8672_v5 = vshrl.u32 %v8658_v24, 16  ;;  %11241 = vst [vmem:[#allocation81_spill] sm:$0xff] %v8679_v11  ;;  %v2830_v2 = vmax.f32 %v2746_v14, 0.0  ;;  %v8683_v1 = vshll.u32 %v8658_v24, 16 }
 0x2d3   : > { %v8650_v15 = vpop.permute.xlu1 %4042  ;;  %v8652_v60 = vpop.permute.xlu0 %4195  ;;  %v2832_v14 = vmax.f32 %v2750_v55, 0.0 }
 0x2d4   : > { %11234 = vst [vmem:[#allocation74_spill] sm:$0xff] %v8650_v15  ;;  %11235 = vst [vmem:[#allocation75_spill] sm:$0xff] %v8652_v60  ;;  %v3131_v50 = vpop.f32.mrf.mxu1  ;;  %v10963_v41 = vrot.slane %v8672_v5, 7  ;;  %v3550_v15 = vrot.slane %v8530_v4, 1 }
 0x2d5   : > { %4052 = vrot.lane.b32.xlu1 %v8643_v54, %s7305_s28  ;;  %3753 = vrot.lane.b32.xlu0 %v8663_v40, %s7305_s28  ;;  %v3132_v35 = vadd.f32 %v8189_v33, %v3131_v50  ;;  %11238 = vst [vmem:[#allocation78_spill] sm:$0xff] %v8672_v5  ;;  %v2831_v50 = vmax.f32 %v2748_v44, 0.0  ;;  %v2872_v18 = vpack.c.bf16 %v2832_v14, %v2830_v2 }
 0x2d6   : > { %v3133_v22 = vpop.f32.mrf.mxu1  ;;  %v8695_v44 = vor.u32 %v10963_v41, %v8683_v1 }
 0x2d7   : > { %v8674_v34 = vpop.permute.xlu1 %4240  ;;  %v8676_v16 = vpop.permute.xlu0 %3745  ;;  %v2752_v22 = vadd.f32 %v2751_v31, %v7958_v47  ;;  %v3224_v6 = vmax.f32 %v3132_v35, 0.0  ;;  %v8704_v35 = vsel %vm2511_vm0, %v11245_v52, 0 }
 0x2d8   : > { %11239 = vst [vmem:[#allocation79_spill] sm:$0xff] %v8674_v34  ;;  %11240 = vst [vmem:[#allocation80_spill] sm:$0xff] %v8676_v16  ;;  %v3134_v60 = vpop.f32.mrf.mxu1  ;;  %v8717_v2 = vshrl.u32 %v8704_v35, 16 }
 0x2d9   : > { %4250 = vrot.lane.b32.xlu1 %v8679_v11, %s7304_s23  ;;  %4088 = vrot.lane.b32.xlu0 %v8663_v40, %s7306_s10  ;;  %v3135_v20 = vadd.f32 %v8189_v33, %v3134_v60  ;;  %v2833_v26 = vmax.f32 %v2752_v22, 0.0  ;;  %11242 = vst [vmem:[#allocation82_spill] sm:$0xff] %v8695_v44  ;;  %11246 = vst [vmem:[#allocation85_spill] sm:$0xff] %v8704_v35  ;;  %v3973_v44 = vrot.slane %v8504_v21, 2 }
 0x2da   : > { %v3136_v49 = vpop.f32.mrf.mxu1 }
 0x2db   : > { %v8697_v47 = vpop.permute.xlu1 %4002  ;;  %v8699_v31 = vpop.permute.xlu0 %4080  ;;  %v3225_v34 = vmax.f32 %v3135_v20, 0.0  ;;  %v2873_v60 = vpack.c.bf16 %v2833_v26, %v2831_v50  ;;  %v3715_v20 = vrot.slane %v8504_v21, 1 }
 0x2dc   : > { %11243 = vst [vmem:[#allocation83_spill] sm:$0xff] %v8697_v47  ;;  %11244 = vst [vmem:[#allocation84_spill] sm:$0xff] %v8699_v31 }
 0x2dd   : > { %4318 = vrot.lane.b32.xlu1 %v8504_v21, %s7306_s10  ;;  %4132 = vrot.lane.b32.xlu0 %v8619_v59, %s7304_s23  ;;  %v8710_v55 = vpack.c.bf16 %v3225_v34, %v3224_v6  ;;  %v3716_v6 = vrot.slane %v8704_v35, 1 }
 0x2de   : > { %3193 = vmatprep.mubr.bf16.mxu1 %v2873_v60 }
 0x2df   : > { %v8712_v22 = vpop.permute.xlu1 %4155  ;;  %v8714_v49 = vpop.permute.xlu0 %4124  ;;  %v10964_v52 = vrot.slane %v8710_v55, 7  ;;  %3194 = vmatmul.mubr.bf16.gmra.mxu1 %v2872_v18  ;;  %v3552_v18 = vshll.u32 %v8704_v35, 16 }
 0x2e0   : > { %11247 = vst [vmem:[#allocation86_spill] sm:$0xff] %v8712_v22  ;;  %11248 = vst [vmem:[#allocation87_spill] sm:$0xff] %v8714_v49  ;;  %v8755_v49 = vsel %vm3690_vm12, %v3715_v20, %v3716_v6 }
 0x2e1   : > { %4861 = vrot.lane.b32.xlu1 %v8717_v2, %s7304_s23  ;;  %4946 = vrot.lane.b32.xlu0 %v8630_v23, %s7306_s10  ;;  %v8727_v17 = vsel %vm2511_vm0, 0, %v10964_v52  ;;  %11256 = vst [vmem:[#allocation95_spill] sm:$0xff] %v8755_v49  ;;  %v3850_v40 = vrot.slane %v3552_v18, 2 }
 0x2e2   : > { %11249 = vst [vmem:[#allocation88_spill] sm:$0xff] %v8727_v17  ;;  %v8737_v26 = vshrl.u32 %v8727_v17, 16  ;;  %v8744_v52 = vshll.u32 %v8727_v17, 16 }
 0x2e3   : > { %v8729_v34 = vpop.permute.xlu1 %4308  ;;  %v8731_v50 = vpop.permute.xlu0 %4277 }
 0x2e4   : > { %11250 = vst [vmem:[#allocation89_spill] sm:$0xff] %v8729_v34  ;;  %11251 = vst [vmem:[#allocation90_spill] sm:$0xff] %v8731_v50  ;;  %v3139_v14 = vpop.f32.mrf.mxu1  ;;  %v8748_v34 = vrot.slane %v8717_v2, 1  ;;  %v11257_v3 = vrot.slane %v8737_v26, 7 }
 0x2e5   : > { %11252 = vst [vmem:[#allocation91_spill] sm:$0xff] %v8737_v26  ;;  %5109 = vrot.lane.b32.xlu1 %v3716_v6, %s7306_s10  ;;  %3930 = vrot.lane.b32.xlu0 %v8679_v11, %s7306_s10  ;;  %v3140_v60 = vadd.f32 %v8189_v33, %v3139_v14  ;;  %v3974_v14 = vrot.slane %v8704_v35, 2  ;;  %v3845_v11 = vrot.slane %v8530_v4, 2  ;;  %v3554_v4 = vrot.slane %v3552_v18, 1 }
 0x2e6   : > { %v3141_v41 = vpop.f32.mrf.mxu1  ;;  %11253 = vst [vmem:[#allocation92_spill] sm:$0xff] %v8748_v34  ;;  %v8764_v13 = vor.u32 %v11257_v3, %v8744_v52 }
 0x2e7   : > { %v8750_v22 = vpop.permute.xlu1 %3632  ;;  %v8752_v50 = vpop.permute.xlu0 %3922  ;;  %v3844_v41 = vrot.slane %v8520_v7, 1  ;;  %v3226_v20 = vmax.f32 %v3140_v60, 0.0  ;;  %v8776_v43 = vsel %vm3948_vm14, %v3973_v44, %v3974_v14 }
 0x2e8   : > { %11254 = vst [vmem:[#allocation93_spill] sm:$0xff] %v8750_v22  ;;  %11255 = vst [vmem:[#allocation94_spill] sm:$0xff] %v8752_v50  ;;  %v3142_v23 = vpop.f32.mrf.mxu1 }
 0x2e9   : > { %11258 = vst [vmem:[#allocation96_spill] sm:$0xff] %v8764_v13  ;;  %3755 = vrot.lane.b32.xlu1 %v8755_v49, %s7305_s28  ;;  %4205 = vrot.lane.b32.xlu0 %v8643_v54, %s7306_s10  ;;  %v3143_v8 = vadd.f32 %v8189_v33, %v3142_v23  ;;  %11261 = vst [vmem:[#allocation99_spill] sm:$0xff] %v8776_v43  ;;  %v3846_v3 = vor.u32 %v3845_v11, %v3844_v41 }
 0x2ea   : > { %v3144_v42 = vpop.f32.mrf.mxu1  ;;  %v3851_v13 = vor.u32 %v3850_v40, %v8748_v34  ;;  %v3551_v40 = vor.u32 %v3550_v15, %v8520_v7 }
 0x2eb   : > { %v8771_v53 = vpop.permute.xlu1 %4044  ;;  %v8773_v28 = vpop.permute.xlu0 %4242  ;;  %v3227_v32 = vmax.f32 %v3143_v8, 0.0 }
 0x2ec   : > { %11259 = vst [vmem:[#allocation97_spill] sm:$0xff] %v8771_v53  ;;  %11260 = vst [vmem:[#allocation98_spill] sm:$0xff] %v8773_v28  ;;  %v8792_v11 = vsel %vm3771_vm13, %v3846_v3, %v3851_v13  ;;  %v8809_v13 = vsel %vm3465_vm11, %v3551_v40, %v3554_v4 }
 0x2ed   : > { %4287 = vrot.lane.b32.xlu1 %v8776_v43, %s7305_s28  ;;  %4012 = vrot.lane.b32.xlu0 %v8504_v21, %s7304_s23  ;;  %v8784_v42 = vpack.c.bf16 %v3227_v32, %v3226_v20  ;;  %11264 = vst [vmem:[#allocation102_spill] sm:$0xff] %v8792_v11 }
 0x2ef   : > { %v8786_v23 = vpop.permute.xlu1 %4197  ;;  %v8788_v54 = vpop.permute.xlu0 %4157  ;;  %v10973_v8 = vrot.slane %v8784_v42, 7 }
 0x2f0   : > { %11262 = vst [vmem:[#allocation100_spill] sm:$0xff] %v8786_v23  ;;  %11263 = vst [vmem:[#allocation101_spill] sm:$0xff] %v8788_v54 }
 0x2f1   : > { %3932 = vrot.lane.b32.xlu1 %v8792_v11, %s7306_s10  ;;  %4165 = vrot.lane.b32.xlu0 %v8504_v21, %s7305_s28  ;;  %v8802_v32 = vsel %vm2511_vm0, 0, %v10973_v8 }
 0x2f2   : > { %11265 = vst [vmem:[#allocation103_spill] sm:$0xff] %v8802_v32  ;;  %v8812_v18 = vshrl.u32 %v8802_v32, 16  ;;  %v8820_v20 = vshll.u32 %v8802_v32, 16 }
 0x2f3   : > { %v8804_v44 = vpop.permute.xlu1 %4004  ;;  %v8806_v60 = vpop.permute.xlu0 %4310 }
 0x2f4   : > { %11266 = vst [vmem:[#allocation104_spill] sm:$0xff] %v8804_v44  ;;  %11267 = vst [vmem:[#allocation105_spill] sm:$0xff] %v8806_v60  ;;  %v3147_v15 = vpop.f32.mrf.mxu1  ;;  %v10976_v3 = vrot.slane %v8812_v18, 7  ;;  %v3872_v44 = vrot.slane %v8744_v52, 2 }
 0x2f5   : > { %11268 = vst [vmem:[#allocation106_spill] sm:$0xff] %v8812_v18  ;;  %4054 = vrot.lane.b32.xlu1 %v8809_v13, %s7305_s28  ;;  %5022 = vrot.lane.b32.xlu0 %v8704_v35, %s7304_s23  ;;  %v3148_v14 = vadd.f32 %v8189_v33, %v3147_v15 }
 0x2f6   : > { %v3149_v41 = vpop.f32.mrf.mxu1  ;;  %v8830_v21 = vor.u32 %v10976_v3, %v8820_v20 }
 0x2f7   : > { %v8823_v40 = vpop.permute.xlu1 %3747  ;;  %v8825_v4 = vpop.permute.xlu0 %4082  ;;  %v3228_v15 = vmax.f32 %v3148_v14, 0.0 }
 0x2f8   : > { %11269 = vst [vmem:[#allocation107_spill] sm:$0xff] %v8823_v40  ;;  %11270 = vst [vmem:[#allocation108_spill] sm:$0xff] %v8825_v4  ;;  %v3150_v8 = vpop.f32.mrf.mxu1 }
 0x2f9   : > { %11271 = vst [vmem:[#allocation109_spill] sm:$0xff] %v8830_v21  ;;  %4252 = vrot.lane.b32.xlu1 %v8792_v11, %s7304_s23  ;;  %4903 = vrot.lane.b32.xlu0 %v3716_v6, %s7305_s28  ;;  %v3151_v41 = vadd.f32 %v8189_v33, %v3150_v8  ;;  %v11275_v33 = vrot.slane %v8552_v38, 7  ;;  %v8874_v38 = vld [vmem:[%s10884_s4] ss:$0 sm:$0xff] }
 0x2fa   : > { %v3152_v35 = vpop.f32.mrf.mxu1 }
 0x2fb   : > { %v8836_v23 = vpop.permute.xlu1 %4279  ;;  %v8838_v60 = vpop.permute.xlu0 %4126  ;;  %v3229_v54 = vmax.f32 %v3151_v41, 0.0  ;;  %v8853_v35 = vsel %vm2511_vm0, %v11275_v33, 0 }
 0x2fc   : > { %11272 = vst [vmem:[#allocation110_spill] sm:$0xff] %v8836_v23  ;;  %11273 = vst [vmem:[#allocation111_spill] sm:$0xff] %v8838_v60  ;;  %v8865_v14 = vshrl.u32 %v8853_v35, 16  ;;  %v8887_v60 = vrot.slane %v8853_v35, 1  ;;  %v3977_v11 = vrot.slane %v8853_v35, 2  ;;  %v3562_v25 = vshll.u32 %v8853_v35, 16 }
 0x2fd   : > { %4014 = vrot.lane.b32.xlu1 %v8568_v30, %s7304_s23  ;;  %5068 = vrot.lane.b32.xlu0 %v8717_v2, %s7305_s28  ;;  %v8844_v3 = vpack.c.bf16 %v3229_v54, %v3228_v15  ;;  %11276 = vst [vmem:[#allocation113_spill] sm:$0xff] %v8853_v35 }
 0x2ff   : > { %v8846_v21 = vpop.permute.xlu1 %3924  ;;  %v8848_v6 = vpop.permute.xlu0 %3634  ;;  %v10981_v8 = vrot.slane %v8844_v3, 7 }
 0x300   : > { %11274 = vst [vmem:[#allocation112_spill] sm:$0xff] %v8846_v21 }
 0x301   : > { %4320 = vrot.lane.b32.xlu1 %v8568_v30, %s7306_s10  ;;  %4090 = vrot.lane.b32.xlu0 %v8755_v49, %s7306_s10  ;;  %v8880_v33 = vsel %vm2511_vm0, 0, %v10981_v8  ;;  %v3560_v49 = vrot.slane %v8587_v48, 1 }
 0x302   : > { %v8906_v31 = vshll.u32 %v8880_v33, 16 }
 0x303   : > { %v8860_v2 = vpop.permute.xlu1 %4046  ;;  %v8862_v54 = vpop.permute.xlu0 %4199 }
 0x304   : > { %11277 = vst [vmem:[#allocation114_spill] sm:$0xff] %v8860_v2  ;;  %11278 = vst [vmem:[#allocation115_spill] sm:$0xff] %v8862_v54  ;;  %v3155_v15 = vpop.f32.mrf.mxu1 }
 0x305   : > { %4863 = vrot.lane.b32.xlu1 %v8865_v14, %s7304_s23  ;;  %4134 = vrot.lane.b32.xlu0 %v8776_v43, %s7304_s23  ;;  %v3156_v41 = vadd.f32 %v8874_v38, %v3155_v15  ;;  %v3976_v43 = vrot.slane %v8568_v30, 2 }
 0x306   : > { %v3157_v54 = vpop.f32.mrf.mxu1 }
 0x307   : > { %v8882_v28 = vpop.permute.xlu1 %4244  ;;  %v8884_v23 = vpop.permute.xlu0 %4006  ;;  %v3230_v54 = vmax.f32 %v3156_v41, 0.0  ;;  %v8910_v41 = vsel %vm3948_vm14, %v3976_v43, %v3977_v11 }
 0x308   : > { %11279 = vst [vmem:[#allocation116_spill] sm:$0xff] %v8882_v28  ;;  %11280 = vst [vmem:[#allocation117_spill] sm:$0xff] %v8884_v23  ;;  %v3158_v15 = vpop.f32.mrf.mxu1  ;;  %v8898_v28 = vshrl.u32 %v8880_v33, 16 }
 0x309   : > { %5111 = vrot.lane.b32.xlu1 %v8887_v60, %s7306_s10  ;;  %4948 = vrot.lane.b32.xlu0 %v8748_v34, %s7306_s10  ;;  %v3159_v8 = vadd.f32 %v8874_v38, %v3158_v15  ;;  %11284 = vst [vmem:[#allocation121_spill] sm:$0xff] %v8910_v41  ;;  %v3561_v15 = vor.u32 %v3560_v49, %v8580_v57  ;;  %v3564_v34 = vrot.slane %v3562_v25, 1 }
 0x30a   : > { %11281 = vst [vmem:[#allocation118_spill] sm:$0xff] %v8898_v28  ;;  %v3160_v63 = vpop.f32.mrf.mxu1  ;;  %v10988_v50 = vrot.slane %v8898_v28, 7 }
 0x30b   : > { %v8901_v12 = vpop.permute.xlu1 %4312  ;;  %v8903_v27 = vpop.permute.xlu0 %4159  ;;  %v3231_v36 = vmax.f32 %v3159_v8, 0.0 }
 0x30c   : > { %11282 = vst [vmem:[#allocation119_spill] sm:$0xff] %v8901_v12  ;;  %11283 = vst [vmem:[#allocation120_spill] sm:$0xff] %v8903_v27  ;;  %v8922_v8 = vor.u32 %v10988_v50, %v8906_v31  ;;  %v8925_v12 = vrot.slane %v8865_v14, 1  ;;  %v3859_v27 = vrot.slane %v3562_v25, 2 }
 0x30d   : > { %4289 = vrot.lane.b32.xlu1 %v8910_v41, %s7305_s28  ;;  %3642 = vrot.lane.b32.xlu0 %v8809_v13, %s7304_s23  ;;  %v8917_v63 = vpack.c.bf16 %v3231_v36, %v3230_v54  ;;  %v8933_v41 = vsel %vm3465_vm11, %v3561_v15, %v3564_v34  ;;  %v3853_v36 = vrot.slane %v8580_v57, 1  ;;  %v3854_v54 = vrot.slane %v8587_v48, 2 }
 0x30e   : > { %11285 = vst [vmem:[#allocation122_spill] sm:$0xff] %v8922_v8  ;;  %11286 = vst [vmem:[#allocation123_spill] sm:$0xff] %v8925_v12  ;;  %v3860_v15 = vor.u32 %v3859_v27, %v8925_v12 }
 0x30f   : > { %v8927_v43 = vpop.permute.xlu1 %4281  ;;  %v8929_v49 = vpop.permute.xlu0 %3749  ;;  %v10989_v11 = vrot.slane %v8917_v63, 7  ;;  %v3855_v25 = vor.u32 %v3854_v54, %v3853_v36 }
 0x310   : > { %11287 = vst [vmem:[#allocation124_spill] sm:$0xff] %v8927_v43 }
 0x311   : > { %3644 = vrot.lane.b32.xlu1 %v8933_v41, %s7304_s23  ;;  %4207 = vrot.lane.b32.xlu0 %v8809_v13, %s7306_s10  ;;  %v8944_v50 = vsel %vm2511_vm0, 0, %v10989_v11  ;;  %v8965_v27 = vsel %vm3771_vm13, %v3855_v25, %v3860_v15 }
 0x312   : > { %v8957_v13 = vshrl.u32 %v8944_v50, 16  ;;  %11292 = vst [vmem:[#allocation129_spill] sm:$0xff] %v8965_v27 }
 0x313   : > { %v8946_v8 = vpop.permute.xlu1 %3636  ;;  %v8948_v34 = vpop.permute.xlu0 %4084 }
 0x314   : > { %11288 = vst [vmem:[#allocation125_spill] sm:$0xff] %v8948_v34  ;;  %v3163_v43 = vpop.f32.mrf.mxu1  ;;  %11289 = vst [vmem:[#allocation126_spill] sm:$0xff] %v8957_v13  ;;  %v11294_v15 = vrot.slane %v8957_v13, 7 }
 0x315   : > { %4056 = vrot.lane.b32.xlu1 %v8933_v41, %s7305_s28  ;;  %4167 = vrot.lane.b32.xlu0 %v8568_v30, %s7305_s28  ;;  %v3164_v48 = vadd.f32 %v8874_v38, %v3163_v43 }
 0x316   : > { %v3165_v11 = vpop.f32.mrf.mxu1 }
 0x317   : > { %v8959_v57 = vpop.permute.xlu1 %4048  ;;  %v8961_v0 = vpop.permute.xlu0 %4128  ;;  %v3232_v43 = vmax.f32 %v3164_v48, 0.0  ;;  %v8973_v11 = vshll.u32 %v8944_v50, 16 }
 0x318   : > { %11290 = vst [vmem:[#allocation127_spill] sm:$0xff] %v8959_v57  ;;  %11291 = vst [vmem:[#allocation128_spill] sm:$0xff] %v8961_v0  ;;  %v3166_v54 = vpop.f32.mrf.mxu1 }
 0x319   : > { %4254 = vrot.lane.b32.xlu1 %v8965_v27, %s7304_s23  ;;  %5024 = vrot.lane.b32.xlu0 %v8853_v35, %s7304_s23  ;;  %v3167_v61 = vadd.f32 %v8874_v38, %v3166_v54  ;;  %v8982_v16 = vor.u32 %v11294_v15, %v8973_v11  ;;  %v3718_v15 = vrot.slane %v8568_v30, 1 }
 0x31a   : > { %v3168_v53 = vpop.f32.mrf.mxu1 }
 0x31b   : > { %v8975_v0 = vpop.permute.xlu1 %4246  ;;  %v8977_v36 = vpop.permute.xlu0 %3926  ;;  %v3233_v25 = vmax.f32 %v3167_v61, 0.0  ;;  %11295 = vst [vmem:[#allocation131_spill] sm:$0xff] %v8982_v16  ;;  %v11298_v61 = vrot.slane %v8626_v45, 7 }
 0x31c   : > { %11293 = vst [vmem:[#allocation130_spill] sm:$0xff] %v8975_v0 }
 0x31d   : > { %4322 = vrot.lane.b32.xlu1 %v8658_v24, %s7306_s10  ;;  %4905 = vrot.lane.b32.xlu0 %v8887_v60, %s7305_s28  ;;  %v8988_v48 = vpack.c.bf16 %v3233_v25, %v3232_v43  ;;  %v8998_v0 = vsel %vm2511_vm0, %v11298_v61, 0  ;;  %v9017_v61 = vsel %vm3690_vm12, %v3718_v15, %v8887_v60  ;;  %v3721_v15 = vrot.slane %v8658_v24, 1 }
 0x31e   : > { %11299 = vst [vmem:[#allocation134_spill] sm:$0xff] %v8998_v0  ;;  %v3722_v45 = vrot.slane %v8998_v0, 1  ;;  %11301 = vst [vmem:[#allocation136_spill] sm:$0xff] %v9017_v61 }
 0x31f   : > { %v8990_v54 = vpop.permute.xlu1 %4314  ;;  %v8992_v53 = vpop.permute.xlu0 %4201  ;;  %v10994_v35 = vrot.slane %v8988_v48, 7 }
 0x320   : > { %11296 = vst [vmem:[#allocation132_spill] sm:$0xff] %v8990_v54  ;;  %11297 = vst [vmem:[#allocation133_spill] sm:$0xff] %v8992_v53  ;;  %v9049_v2 = vsel %vm3690_vm12, %v3721_v15, %v3722_v45  ;;  %v3863_v15 = vrot.slane %v8683_v1, 2 }
 0x321   : > { %5026 = vrot.lane.b32.xlu1 %v8998_v0, %s7304_s23  ;;  %5070 = vrot.lane.b32.xlu0 %v8865_v14, %s7305_s28  ;;  %v9008_v43 = vsel %vm2511_vm0, 0, %v10994_v35  ;;  %11307 = vst [vmem:[#allocation142_spill] sm:$0xff] %v9049_v2 }
 0x322   : > { %v9020_v53 = vshrl.u32 %v9008_v43, 16  ;;  %v9027_v54 = vshll.u32 %v9008_v43, 16 }
 0x323   : > { %v9010_v25 = vpop.permute.xlu1 %3751  ;;  %v9012_v16 = vpop.permute.xlu0 %4008 }
 0x324   : > { %11300 = vst [vmem:[#allocation135_spill] sm:$0xff] %v9012_v16  ;;  %v3171_v30 = vpop.f32.mrf.mxu1  ;;  %11302 = vst [vmem:[#allocation137_spill] sm:$0xff] %v9020_v53  ;;  %v10999_v37 = vrot.slane %v9020_v53, 7 }
 0x325   : > { %4907 = vrot.lane.b32.xlu1 %v3722_v45, %s7305_s28  ;;  %3757 = vrot.lane.b32.xlu0 %v9017_v61, %s7305_s28  ;;  %v3172_v14 = vadd.f32 %v8874_v38, %v3171_v30 }
 0x326   : > { %v3173_v35 = vpop.f32.mrf.mxu1  ;;  %v9038_v22 = vor.u32 %v10999_v37, %v9027_v54  ;;  %v3865_v37 = vshrl.u32 %v8998_v0, 16 }
 0x327   : > { %v9030_v47 = vpop.permute.xlu1 %4283  ;;  %v9032_v60 = vpop.permute.xlu0 %4161  ;;  %v3234_v30 = vmax.f32 %v3172_v14, 0.0 }
 0x328   : > { %11303 = vst [vmem:[#allocation138_spill] sm:$0xff] %v9030_v47  ;;  %11304 = vst [vmem:[#allocation139_spill] sm:$0xff] %v9032_v60  ;;  %v3174_v62 = vpop.f32.mrf.mxu1 }
 0x329   : > { %11305 = vst [vmem:[#allocation140_spill] sm:$0xff] %v9038_v22  ;;  %5113 = vrot.lane.b32.xlu1 %v3722_v45, %s7306_s10  ;;  %4092 = vrot.lane.b32.xlu0 %v9017_v61, %s7306_s10  ;;  %v3175_v35 = vadd.f32 %v8874_v38, %v3174_v62  ;;  %v3572_v22 = vshll.u32 %v8998_v0, 16  ;;  %v3862_v45 = vrot.slane %v8672_v5, 1 }
 0x32a   : > { %v3176_v4 = vpop.f32.mrf.mxu1 }
 0x32b   : > { %v9044_v47 = vpop.permute.xlu1 %3928  ;;  %v9046_v60 = vpop.permute.xlu0 %4086  ;;  %v3235_v21 = vmax.f32 %v3175_v35, 0.0  ;;  %v9063_v35 = vrot.slane %v3865_v37, 1  ;;  %v3868_v61 = vrot.slane %v3572_v22, 2  ;;  %v3864_v0 = vor.u32 %v3863_v15, %v3862_v45 }
 0x32c   : > { %11306 = vst [vmem:[#allocation141_spill] sm:$0xff] %v9046_v60 }
 0x32d   : > { %3759 = vrot.lane.b32.xlu1 %v9049_v2, %s7305_s28  ;;  %4950 = vrot.lane.b32.xlu0 %v8925_v12, %s7306_s10  ;;  %v9057_v62 = vpack.c.bf16 %v3235_v21, %v3234_v30  ;;  %11311 = vst [vmem:[#allocation146_spill] sm:$0xff] %v9063_v35 }
 0x32f   : > { %11308 = vst [vmem:[#allocation143_spill] sm:$0xff] %v9057_v62  ;;  %v9059_v4 = vpop.permute.xlu1 %4050  ;;  %v9061_v14 = vpop.permute.xlu0 %4130  ;;  %v11009_v21 = vrot.slane %v9057_v62, 7  ;;  %v3570_v62 = vrot.slane %v8683_v1, 1 }
 0x330   : > { %11309 = vst [vmem:[#allocation144_spill] sm:$0xff] %v9059_v4  ;;  %11310 = vst [vmem:[#allocation145_spill] sm:$0xff] %v9061_v14  ;;  %v3869_v14 = vor.u32 %v3868_v61, %v9063_v35 }
 0x331   : > { %4094 = vrot.lane.b32.xlu1 %v9049_v2, %s7306_s10  ;;  %3934 = vrot.lane.b32.xlu0 %v8965_v27, %s7306_s10  ;;  %v9084_v27 = vsel %vm2511_vm0, 0, %v11009_v21 }
 0x332   : > { %11313 = vst [vmem:[#allocation148_spill] sm:$0xff] %v9084_v27  ;;  %v9092_v61 = vsel %vm3771_vm13, %v3864_v0, %v3869_v14  ;;  %v9103_v21 = vshll.u32 %v9084_v27, 16 }
 0x333   : > { %v9072_v30 = vpop.permute.xlu1 %4248  ;;  %v9074_v12 = vpop.permute.xlu0 %3638  ;;  %11316 = vst [vmem:[#allocation151_spill] sm:$0xff] %v9092_v61 }
 0x334   : > { %11312 = vst [vmem:[#allocation147_spill] sm:$0xff] %v9072_v30  ;;  %v3179_v40 = vpop.f32.mrf.mxu1  ;;  %11318 = vst [vmem:[#allocation153_spill] sm:$0xff] %v9103_v21 }
 0x335   : > { %4952 = vrot.lane.b32.xlu1 %v9063_v35, %s7306_s10  ;;  %4209 = vrot.lane.b32.xlu0 %v8933_v41, %s7306_s10  ;;  %v3180_v2 = vadd.f32 %v8874_v38, %v3179_v40  ;;  %v9095_v35 = vshrl.u32 %v9084_v27, 16  ;;  %v3724_v27 = vrot.slane %v8727_v17, 1 }
 0x336   : > { %v3181_v30 = vpop.f32.mrf.mxu1 }
 0x337   : > { %v9087_v29 = vpop.permute.xlu1 %4316  ;;  %v9089_v45 = vpop.permute.xlu0 %4203  ;;  %11317 = vst [vmem:[#allocation152_spill] sm:$0xff] %v9095_v35  ;;  %v3236_v41 = vmax.f32 %v3180_v2, 0.0  ;;  %v11013_v0 = vrot.slane %v9095_v35, 7 }
 0x338   : > { %11314 = vst [vmem:[#allocation149_spill] sm:$0xff] %v9087_v29  ;;  %11315 = vst [vmem:[#allocation150_spill] sm:$0xff] %v9089_v45  ;;  %v3182_v15 = vpop.f32.mrf.mxu1 }
 0x339   : > { %3936 = vrot.lane.b32.xlu1 %v9092_v61, %s7306_s10  ;;  %4016 = vrot.lane.b32.xlu0 %v8658_v24, %s7304_s23  ;;  %v3183_v40 = vadd.f32 %v8874_v38, %v3182_v15  ;;  %v9114_v61 = vor.u32 %v11013_v0, %v9103_v21  ;;  %v11322_v38 = vrot.slane %v8710_v55, 7  ;;  %v3571_v0 = vor.u32 %v3570_v62, %v8672_v5 }
 0x33a   : > { %v3184_v30 = vpop.f32.mrf.mxu1 }
 0x33b   : > { %v9106_v14 = vpop.permute.xlu1 %4859  ;;  %v9108_v45 = vpop.permute.xlu0 %4010  ;;  %v3237_v29 = vmax.f32 %v3183_v40, 0.0  ;;  %11320 = vst [vmem:[#allocation155_spill] sm:$0xff] %v9114_v61  ;;  %v9124_v15 = vsel %vm2511_vm0, %v11322_v38, 0  ;;  %v3574_v61 = vrot.slane %v3572_v22, 1 }
 0x33c   : > { %11319 = vst [vmem:[#allocation154_spill] sm:$0xff] %v9106_v14  ;;  %11323 = vst [vmem:[#allocation157_spill] sm:$0xff] %v9124_v15  ;;  %v3580_v14 = vrot.slane %v8744_v52, 1  ;;  %v3582_v55 = vshll.u32 %v9124_v15, 16  ;;  %v9147_v22 = vshrl.u32 %v9124_v15, 16 }
 0x33d   : > { %4018 = vrot.lane.b32.xlu1 %v8727_v17, %s7304_s23  ;;  %4865 = vrot.lane.b32.xlu0 %v3865_v37, %s7304_s23  ;;  %v9119_v2 = vpack.c.bf16 %v3237_v29, %v3236_v41  ;;  %v9150_v62 = vsel %vm3465_vm11, %v3571_v0, %v3574_v61 }
 0x33e   : > { %11328 = vst [vmem:[#allocation162_spill] sm:$0xff] %v9147_v22  ;;  %11329 = vst [vmem:[#allocation163_spill] sm:$0xff] %v9150_v62  ;;  %v3581_v24 = vor.u32 %v3580_v14, %v8737_v26 }
 0x33f   : > { %11321 = vst [vmem:[#allocation156_spill] sm:$0xff] %v9119_v2  ;;  %v9126_v40 = vpop.permute.xlu1 %4285  ;;  %v9128_v1 = vpop.permute.xlu0 %4163  ;;  %v11017_v30 = vrot.slane %v9119_v2, 7 }
 0x340   : > { %11324 = vst [vmem:[#allocation158_spill] sm:$0xff] %v9126_v40  ;;  %11325 = vst [vmem:[#allocation159_spill] sm:$0xff] %v9128_v1 }
 0x341   : > { %5028 = vrot.lane.b32.xlu1 %v9124_v15, %s7304_s23  ;;  %5072 = vrot.lane.b32.xlu0 %v3865_v37, %s7305_s28  ;;  %v9139_v29 = vsel %vm2511_vm0, 0, %v11017_v30  ;;  %v3584_v37 = vrot.slane %v3582_v55, 1  ;;  %v11331_v30 = vrot.slane %v8784_v42, 7 }
 0x342   : > { %11326 = vst [vmem:[#allocation160_spill] sm:$0xff] %v9139_v29  ;;  %v9154_v5 = vshrl.u32 %v9139_v29, 16 }
 0x343   : > { %v9142_v41 = vpop.permute.xlu1 %3640  ;;  %v9144_v38 = vpop.permute.xlu0 %4901  ;;  %v9159_v1 = vsel %vm2511_vm0, %v11331_v30, 0  ;;  %v9177_v30 = vsel %vm3465_vm11, %v3581_v24, %v3584_v37  ;;  %v9194_v24 = vrot.slane %v9124_v15, 1  ;;  %v3727_v37 = vrot.slane %v8802_v32, 1 }
 0x344   : > { %11327 = vst [vmem:[#allocation161_spill] sm:$0xff] %v9144_v38  ;;  %11330 = vst [vmem:[#allocation164_spill] sm:$0xff] %v9154_v5  ;;  %v11030_v61 = vrot.slane %v9154_v5, 7  ;;  %v9171_v38 = vshll.u32 %v9139_v29, 16  ;;  %v9174_v42 = vshrl.u32 %v9159_v1, 16  ;;  %v3592_v40 = vshll.u32 %v9159_v1, 16 }
 0x345   : > { %11332 = vst [vmem:[#allocation165_spill] sm:$0xff] %v9159_v1  ;;  %5074 = vrot.lane.b32.xlu1 %v9147_v22, %s7305_s28  ;;  %3646 = vrot.lane.b32.xlu0 %v9150_v62, %s7304_s23  ;;  %11335 = vst [vmem:[#allocation168_spill] sm:$0xff] %v9177_v30  ;;  %v9198_v21 = vrot.slane %v9159_v1, 1  ;;  %v3881_v5 = vrot.slane %v8820_v20, 2  ;;  %v9211_v15 = vrot.slane %v9147_v22, 1  ;;  %v3877_v1 = vrot.slane %v3582_v55, 2 }
 0x346   : > { %11333 = vst [vmem:[#allocation166_spill] sm:$0xff] %v9171_v38  ;;  %11334 = vst [vmem:[#allocation167_spill] sm:$0xff] %v9174_v42  ;;  %v9187_v2 = vor.u32 %v11030_v61, %v9171_v38  ;;  %v9204_v61 = vrot.slane %v9174_v42, 1  ;;  %v9219_v38 = vsel %vm3690_vm12, %v3724_v27, %v9194_v24  ;;  %v3871_v42 = vrot.slane %v8737_v26, 1 }
 0x347   : > { %v9166_v0 = vpop.permute.xlu1 %4052  ;;  %v9168_v14 = vpop.permute.xlu0 %3753  ;;  %11338 = vst [vmem:[#allocation171_spill] sm:$0xff] %v9194_v24  ;;  %11339 = vst [vmem:[#allocation172_spill] sm:$0xff] %v9198_v21  ;;  %v3590_v55 = vrot.slane %v8820_v20, 1  ;;  %v3878_v52 = vor.u32 %v3877_v1, %v9211_v15  ;;  %v11349_v20 = vrot.slane %v8844_v3, 7 }
 0x348   : > { %11336 = vst [vmem:[#allocation169_spill] sm:$0xff] %v9187_v2  ;;  %11340 = vst [vmem:[#allocation173_spill] sm:$0xff] %v9204_v61  ;;  %v3886_v2 = vrot.slane %v3592_v40, 2 }
 0x349   : > { %3648 = vrot.lane.b32.xlu1 %v9177_v30, %s7304_s23  ;;  %4058 = vrot.lane.b32.xlu0 %v9150_v62, %s7305_s28  ;;  %v3880_v62 = vrot.slane %v8812_v18, 1  ;;  %11341 = vst [vmem:[#allocation174_spill] sm:$0xff] %v9211_v15  ;;  %11344 = vst [vmem:[#allocation177_spill] sm:$0xff] %v9219_v38 }
 0x34a   : > { %v3887_v22 = vor.u32 %v3886_v2, %v9204_v61  ;;  %v3594_v2 = vrot.slane %v3592_v40, 1  ;;  %v9249_v61 = vsel %vm2511_vm0, %v11349_v20, 0  ;;  %v3600_v40 = vrot.slane %v8906_v31, 1 }
 0x34b   : > { %v9189_v29 = vpop.permute.xlu1 %4250  ;;  %v9191_v35 = vpop.permute.xlu0 %4088  ;;  %v3882_v58 = vor.u32 %v3881_v5, %v3880_v62  ;;  %v3591_v5 = vor.u32 %v3590_v55, %v8812_v18  ;;  %v3873_v62 = vor.u32 %v3872_v44, %v3871_v42  ;;  %11350 = vst [vmem:[#allocation182_spill] sm:$0xff] %v9249_v61  ;;  %v3602_v3 = vshll.u32 %v9249_v61, 16 }
 0x34c   : > { %11337 = vst [vmem:[#allocation170_spill] sm:$0xff] %v9189_v29  ;;  %v3601_v55 = vor.u32 %v3600_v40, %v8898_v28 }
 0x34d   : > { %4060 = vrot.lane.b32.xlu1 %v9177_v30, %s7305_s28  ;;  %5115 = vrot.lane.b32.xlu0 %v9194_v24, %s7306_s10  ;;  %v9225_v30 = vsel %vm3690_vm12, %v3727_v37, %v9198_v21  ;;  %v9239_v37 = vsel %vm3771_vm13, %v3882_v58, %v3887_v22  ;;  %v9256_v58 = vsel %vm3465_vm11, %v3591_v5, %v3594_v2  ;;  %v3604_v5 = vrot.slane %v3602_v3, 1 }
 0x34e   : > { %11345 = vst [vmem:[#allocation178_spill] sm:$0xff] %v9225_v30  ;;  %11348 = vst [vmem:[#allocation181_spill] sm:$0xff] %v9239_v37  ;;  %v9259_v44 = vsel %vm3771_vm13, %v3873_v62, %v3878_v52  ;;  %v11355_v52 = vrot.slane %v8917_v63, 7 }
 0x34f   : > { %v9213_v29 = vpop.permute.xlu1 %4318  ;;  %v9215_v17 = vpop.permute.xlu0 %4132  ;;  %11351 = vst [vmem:[#allocation183_spill] sm:$0xff] %v9256_v58  ;;  %11352 = vst [vmem:[#allocation184_spill] sm:$0xff] %v9259_v44  ;;  %v9287_v40 = vsel %vm3465_vm11, %v3601_v55, %v3604_v5  ;;  %v3730_v5 = vrot.slane %v8880_v33, 1 }
 0x350   : > { %11342 = vst [vmem:[#allocation175_spill] sm:$0xff] %v9213_v29  ;;  %11343 = vst [vmem:[#allocation176_spill] sm:$0xff] %v9215_v17  ;;  %v9275_v2 = vsel %vm2511_vm0, %v11355_v52, 0  ;;  %v9295_v52 = vshrl.u32 %v9249_v61, 16  ;;  %v3889_v29 = vrot.slane %v8898_v28, 1 }
 0x351   : > { %3763 = vrot.lane.b32.xlu1 %v9225_v30, %s7305_s28  ;;  %3761 = vrot.lane.b32.xlu0 %v9219_v38, %s7305_s28  ;;  %11356 = vst [vmem:[#allocation187_spill] sm:$0xff] %v9275_v2  ;;  %v9284_v18 = vshrl.u32 %v9275_v2, 16  ;;  %11358 = vst [vmem:[#allocation189_spill] sm:$0xff] %v9287_v40  ;;  %v3612_v63 = vshll.u32 %v9275_v2, 16  ;;  %v9303_v55 = vrot.slane %v9275_v2, 1 }
 0x352   : > { %11359 = vst [vmem:[#allocation190_spill] sm:$0xff] %v9295_v52 }
 0x353   : > { %v9233_v27 = vpop.permute.xlu1 %4861  ;;  %v9235_v24 = vpop.permute.xlu0 %4946  ;;  %11357 = vst [vmem:[#allocation188_spill] sm:$0xff] %v9284_v18  ;;  %11362 = vst [vmem:[#allocation193_spill] sm:$0xff] %v9303_v55 }
 0x354   : > { %11346 = vst [vmem:[#allocation179_spill] sm:$0xff] %v9233_v27  ;;  %11347 = vst [vmem:[#allocation180_spill] sm:$0xff] %v9235_v24  ;;  %v3733_v24 = vrot.slane %v8944_v50, 1  ;;  %v9307_v27 = vrot.slane %v9249_v61, 1 }
 0x355   : > { %3940 = vrot.lane.b32.xlu1 %v9239_v37, %s7306_s10  ;;  %4096 = vrot.lane.b32.xlu0 %v9219_v38, %s7306_s10  ;;  %v3895_v37 = vrot.slane %v3602_v3, 2 }
 0x356   : > { %11363 = vst [vmem:[#allocation194_spill] sm:$0xff] %v9307_v27 }
 0x357   : > { %v9251_v21 = vpop.permute.xlu1 %5109  ;;  %v9253_v1 = vpop.permute.xlu0 %3930 }
 0x359   : > { %4062 = vrot.lane.b32.xlu1 %v9256_v58, %s7305_s28  ;;  %3938 = vrot.lane.b32.xlu0 %v9259_v44, %s7306_s10  ;;  %v9312_v44 = vrot.slane %v9284_v18, 1  ;;  %v9325_v18 = vrot.slane %v9295_v52, 1  ;;  %v11400_v52 = vld [vmem:[#allocation93_spill] sm:$0xff] }
 0x35b   : > { %v9267_v22 = vpop.permute.xlu1 %3755  ;;  %v9269_v42 = vpop.permute.xlu0 %4205  ;;  %11364 = vst [vmem:[#allocation195_spill] sm:$0xff] %v9312_v44  ;;  %11366 = vst [vmem:[#allocation197_spill] sm:$0xff] %v9325_v18 }
 0x35c   : > { %11353 = vst [vmem:[#allocation185_spill] sm:$0xff] %v9267_v22  ;;  %11354 = vst [vmem:[#allocation186_spill] sm:$0xff] %v9269_v42  ;;  %v3898_v22 = vrot.slane %v8957_v13, 1  ;;  %v9320_v42 = vsel %vm3690_vm12, %v3730_v5, %v9307_v27 }
 0x35d   : > { %4022 = vrot.lane.b32.xlu1 %v8880_v33, %s7304_s23  ;;  %4020 = vrot.lane.b32.xlu0 %v8802_v32, %s7304_s23  ;;  %11365 = vst [vmem:[#allocation196_spill] sm:$0xff] %v9320_v42 }
 0x35f   : > { %v9281_v62 = vpop.permute.xlu1 %4287  ;;  %v4013_v20 = vpop.permute.xlu0 %4012 }
 0x361   : > { %3652 = vrot.lane.b32.xlu1 %v9287_v40, %s7304_s23  ;;  %4098 = vrot.lane.b32.xlu0 %v9225_v30, %s7306_s10  ;;  %v3899_v30 = vrot.slane %v8973_v11, 2 }
 0x363   : > { %v9297_v15 = vpop.permute.xlu1 %3932  ;;  %v9299_v38 = vpop.permute.xlu0 %4165  ;;  %v3900_v17 = vor.u32 %v3899_v30, %v3898_v22 }
 0x364   : > { %11360 = vst [vmem:[#allocation191_spill] sm:$0xff] %v9297_v15  ;;  %11361 = vst [vmem:[#allocation192_spill] sm:$0xff] %v9299_v38  ;;  %v3904_v15 = vrot.slane %v3612_v63, 2  ;;  %v3890_v38 = vrot.slane %v8906_v31, 2 }
 0x365   : > { %4064 = vrot.lane.b32.xlu1 %v9287_v40, %s7305_s28  ;;  %3650 = vrot.lane.b32.xlu0 %v9256_v58, %s7304_s23  ;;  %v9329_v40 = vsel %vm3690_vm12, %v3733_v24, %v9303_v55  ;;  %v3610_v58 = vrot.slane %v8973_v11, 1  ;;  %v3614_v24 = vrot.slane %v3612_v63, 1  ;;  %v11370_v11 = vrot.slane %v8520_v7, 7 }
 0x366   : > { %11367 = vst [vmem:[#allocation198_spill] sm:$0xff] %v9329_v40  ;;  %v3905_v3 = vor.u32 %v3904_v15, %v9312_v44  ;;  %v3891_v28 = vor.u32 %v3890_v38, %v3889_v29  ;;  %v3896_v15 = vor.u32 %v3895_v37, %v9325_v18  ;;  %v4478_v7 = vsel %vm4340_vm15, %v8619_v59, %v4013_v20  ;;  %v11408_v44 = vld [vmem:[#allocation153_spill] sm:$0xff] }
 0x367   : > { %v4055_v32 = vpop.permute.xlu1 %4054  ;;  %v5023_v26 = vpop.permute.xlu0 %5022  ;;  %v3611_v30 = vor.u32 %v3610_v58, %v8957_v13  ;;  %v4034_v55 = vrot.slane %v11408_v44, 1 }
 0x368   : > { %v9342_v27 = vsel %vm3771_vm13, %v3900_v17, %v3905_v3  ;;  %v5284_v29 = vsel %vm4340_vm15, %v11370_v11, %v5023_v26  ;;  %v9360_v37 = vsel %vm3771_vm13, %v3891_v28, %v3896_v15  ;;  %v5281_v26 = vsel %vm4340_vm15, %v8538_v56, %v4013_v20 }
 0x369   : > { %3767 = vrot.lane.b32.xlu1 %v9329_v40, %s7305_s28  ;;  %3765 = vrot.lane.b32.xlu0 %v9320_v42, %s7305_s28  ;;  %11369 = vst [vmem:[#allocation200_spill] sm:$0xff] %v9342_v27  ;;  %v9357_v22 = vsel %vm3465_vm11, %v3611_v30, %v3614_v24  ;;  %11372 = vst [vmem:[#allocation202_spill] sm:$0xff] %v9360_v37  ;;  %v4518_v3 = vsel %vm4373_vm1, %v4478_v7, %v4055_v32 }
 0x36a   : > { %v5355_v28 = vsel %vm4373_vm1, %v5281_v26, %v4055_v32  ;;  %v4356_v15 = vsel %vm4340_vm15, %v8438_v10, %v9142_v41  ;;  %v4475_v56 = vsel %vm4340_vm15, %v8517_v19, %v9108_v45  ;;  %v3991_v19 = vrot.slane %v8944_v50, 2 }
 0x36b   : > { %v9337_v5 = vpop.permute.xlu1 %4252  ;;  %v9339_v31 = vpop.permute.xlu0 %4903  ;;  %v4516_v10 = vsel %vm4373_vm1, %v4475_v56, %v9166_v0 }
 0x36c   : > { %11368 = vst [vmem:[#allocation199_spill] sm:$0xff] %v9339_v31 }
 0x36d   : > { %3944 = vrot.lane.b32.xlu1 %v9342_v27, %s7306_s10  ;;  %4100 = vrot.lane.b32.xlu0 %v9320_v42, %s7306_s10 }
 0x36f   : > { %v9353_v38 = vpop.permute.xlu1 %4014  ;;  %v5069_v17 = vpop.permute.xlu0 %5068 }
 0x370   : > { %11371 = vst [vmem:[#allocation201_spill] sm:$0xff] %v9353_v38  ;;  %v5357_v58 = vsel %vm4373_vm1, %v5284_v29, %v5069_v17  ;;  %v11374_v29 = vrot.slane %v8988_v48, 7  ;;  %v3994_v48 = vrot.slane %v9008_v43, 2 }
 0x371   : > { %4066 = vrot.lane.b32.xlu1 %v9357_v22, %s7305_s28  ;;  %3942 = vrot.lane.b32.xlu0 %v9360_v37, %s7306_s10  ;;  %v5408_v63 = vsel %vm4406_vm2, %v5357_v58, %v9251_v21  ;;  %v4389_v21 = vsel %vm4373_vm1, %v4356_v15, %v9168_v14  ;;  %v3992_v14 = vrot.slane %v9275_v2, 2 }
 0x372   : > { %v5585_v20 = vshll.u32 %v5408_v63, 16  ;;  %v9394_v41 = vsel %vm4406_vm2, %v4389_v21, %v9253_v1  ;;  %v9401_v17 = vsel %vm2511_vm0, %v11374_v29, 0  ;;  %v4554_v1 = vsel %vm4406_vm2, %v4516_v10, %v9191_v35 }
 0x373   : > { %v9374_v30 = vpop.permute.xlu1 %4320  ;;  %v4091_v24 = vpop.permute.xlu0 %4090  ;;  %11373 = vst [vmem:[#allocation203_spill] sm:$0xff] %v9394_v41  ;;  %11375 = vst [vmem:[#allocation204_spill] sm:$0xff] %v9401_v17  ;;  %v9430_v21 = vshrl.u32 %v9401_v17, 16 }
 0x374   : > { %v5406_v11 = vsel %vm4406_vm2, %v5355_v28, %v4091_v24  ;;  %v4557_v59 = vsel %vm4406_vm2, %v4518_v3, %v4091_v24  ;;  %v4354_v3 = vsel %vm4340_vm15, %v8377_v46, %v9074_v12  ;;  %v3995_v28 = vrot.slane %v9401_v17, 2 }
 0x375   : > { %v5581_v32 = vshll.u32 %v5406_v11, 16  ;;  %4026 = vrot.lane.b32.xlu1 %v9008_v43, %s7304_s23  ;;  %4024 = vrot.lane.b32.xlu0 %v8944_v50, %s7304_s23  ;;  %v5579_v58 = vshrl.u32 %v5406_v11, 16  ;;  %v3620_v24 = vrot.slane %v9027_v54, 1  ;;  %v5587_v15 = vrot.slane %v5585_v20, 1  ;;  %11377 = vst [vmem:[#allocation206_spill] sm:$0xff] %v9430_v21 }
 0x376   : > { %6076 = vmatprep.subr.bf16.mxu0 %v4557_v59  ;;  %v9421_v59 = vsel %vm3948_vm14, %v3991_v19, %v3992_v14  ;;  %v3622_v12 = vshll.u32 %v9401_v17, 16  ;;  %v4472_v46 = vsel %vm4340_vm15, %v8418_v51, %v9012_v16  ;;  %v4387_v56 = vsel %vm4373_vm1, %v4354_v3, %v9010_v25  ;;  %v11537_v16 = vld [vmem:[#allocation68_spill] sm:$0xff] }
 0x377   : > { %v5583_v7 = vrot.slane %v5581_v32, 1  ;;  %6077 = vmatpush1.bf16.xpose.msra.mxu0 %v9394_v41  ;;  %v9404_v26 = vpop.permute.xlu1 %4863  ;;  %v9408_v63 = vpop.permute.xlu0 %4134  ;;  %v4514_v19 = vsel %vm4373_vm1, %v4472_v46, %v9059_v4  ;;  %v9442_v14 = vsel %vm3948_vm14, %v3994_v48, %v3995_v28  ;;  %v3621_v51 = vor.u32 %v3620_v24, %v9020_v53 }
 0x378   : > { %11376 = vst [vmem:[#allocation205_spill] sm:$0xff] %v9404_v26  ;;  %6078 = vmatprep.subr.bf16.mxu0 %v4554_v1  ;;  %v3624_v29 = vrot.slane %v3622_v12, 1  ;;  %v9451_v25 = vsel %vm4406_vm2, %v4387_v56, %v9044_v47  ;;  %v3736_v3 = vrot.slane %v9008_v43, 1  ;;  %v9460_v48 = vrot.slane %v9401_v17, 1 }
 0x379   : > { %4179 = vrot.lane.b32.xlu1 %v9008_v43, %s7305_s28  ;;  %4102 = vrot.lane.b32.xlu0 %v9329_v40, %s7306_s10  ;;  %v5584_v11 = vor.u32 %v5583_v7, %v5579_v58  ;;  %11380 = vst [vmem:[#allocation209_spill] sm:$0xff] %v9451_v25  ;;  %v4551_v7 = vsel %vm4406_vm2, %v4514_v19, %v9046_v60  ;;  %v3907_v28 = vrot.slane %v9020_v53, 1  ;;  %v3913_v47 = vrot.slane %v3622_v12, 2  ;;  %v11451_v60 = vld [vmem:[#allocation102_spill] sm:$0xff] }
 0x37a   : > { %11382 = vst [vmem:[#allocation211_spill] sm:$0xff] %v9460_v48  ;;  %v3625_v24 = vsel %vm3465_vm11, %v3621_v51, %v3624_v29  ;;  %v4352_v46 = vsel %vm4340_vm15, %v8325_v39, %v8946_v8  ;;  %v4469_v56 = vsel %vm4340_vm15, %v8355_v9, %v8884_v23  ;;  %v9485_v51 = vsel %vm3690_vm12, %v3736_v3, %v9460_v48  ;;  %v11425_v48 = vld [vmem:[#allocation65_spill] sm:$0xff] }
 0x37b   : > { %v9432_v20 = vpop.permute.xlu1 %5111  ;;  %v9434_v32 = vpop.permute.xlu0 %4948  ;;  %v9437_v10 = vsel %vm3465_vm11, %v5584_v11, %v5587_v15  ;;  %v3908_v15 = vrot.slane %v9027_v54, 2  ;;  %v9466_v11 = vrot.slane %v9430_v21, 1  ;;  %v4512_v54 = vsel %vm4373_vm1, %v4469_v56, %v8959_v57  ;;  %v11430_v57 = vld [vmem:[#allocation156_spill] sm:$0xff] }
 0x37c   : > { %11378 = vst [vmem:[#allocation207_spill] sm:$0xff] %v9434_v32  ;;  %11379 = vst [vmem:[#allocation208_spill] sm:$0xff] %v9437_v10  ;;  %v4385_v39 = vsel %vm4373_vm1, %v4352_v46, %v8929_v49  ;;  %v4548_v3 = vsel %vm4406_vm2, %v4512_v54, %v8948_v34  ;;  %v11387_v49 = vld [vmem:[#allocation22_spill] sm:$0xff]  ;;  %v11389_v46 = vld [vmem:[#allocation20_spill] sm:$0xff]  ;;  %v11431_v31 = vrot.slane %v11430_v57, 7 }
 0x37d   : > { %4301 = vrot.lane.b32.xlu1 %v9442_v14, %s7305_s28  ;;  %4146 = vrot.lane.b32.xlu0 %v9421_v59, %s7304_s23  ;;  %11383 = vst [vmem:[#allocation212_spill] sm:$0xff] %v9466_v11  ;;  %v3909_v29 = vor.u32 %v3908_v15, %v3907_v28  ;;  %v9495_v9 = vsel %vm4406_vm2, %v4385_v39, %v8977_v36  ;;  %v11388_v36 = vld [vmem:[#allocation104_spill] sm:$0xff]  ;;  %v11390_v54 = vld [vmem:[#allocation107_spill] sm:$0xff] }
 0x37e   : > { %11385 = vst [vmem:[#allocation214_spill] sm:$0xff] %v9495_v9  ;;  %v4466_v56 = vsel %vm4340_vm15, %v11389_v46, %v11388_v36  ;;  %v11395_v46 = vld [vmem:[#allocation143_spill] sm:$0xff] }
 0x37f   : > { %6079 = vmatpush1.bf16.xpose.msra.mxu0 %v9451_v25  ;;  %v4290_v58 = vpop.permute.xlu1 %4289  ;;  %v9456_v1 = vpop.permute.xlu0 %3642  ;;  %v11396_v2 = vrot.slane %v11395_v46, 7  ;;  %v11402_v46 = vld [vmem:[#allocation148_spill] sm:$0xff]  ;;  %v11413_v10 = vld [vmem:[#allocation63_spill] sm:$0xff] }
 0x380   : > { %11381 = vst [vmem:[#allocation210_spill] sm:$0xff] %v9456_v1  ;;  %6080 = vmatprep.subr.bf16.mxu0 %v4551_v7  ;;  %v3914_v7 = vor.u32 %v3913_v47, %v9466_v11  ;;  %v4350_v47 = vsel %vm4340_vm15, %v11387_v49, %v8848_v6  ;;  %v11391_v6 = vld [vmem:[#allocation114_spill] sm:$0xff]  ;;  %v11393_v49 = vld [vmem:[#allocation112_spill] sm:$0xff] }
 0x381   : > { %3656 = vrot.lane.b32.xlu1 %v3625_v24, %s7304_s23  ;;  %3654 = vrot.lane.b32.xlu0 %v9357_v22, %s7304_s23  ;;  %v4383_v39 = vsel %vm4373_vm1, %v4350_v47, %v11390_v54  ;;  %v9533_v47 = vsel %vm2511_vm0, %v11396_v2, 0  ;;  %v11398_v54 = vld [vmem:[#allocation108_spill] sm:$0xff]  ;;  %v4117_v2 = vrot.slane %v11402_v46, 2 }
 0x382   : > { %v9508_v15 = vsel %vm3771_vm13, %v3909_v29, %v3914_v7  ;;  %v11392_v29 = vld [vmem:[#allocation136_spill] sm:$0xff]  ;;  %v9528_v18 = vsel %vm4406_vm2, %v4383_v39, %v11393_v49  ;;  %11397 = vst [vmem:[#allocation20_spill] sm:$0xff] %v9533_v47 }
 0x383   : > { %v9477_v19 = vpop.permute.xlu1 %3644  ;;  %v9479_v12 = vpop.permute.xlu0 %4207  ;;  %11394 = vst [vmem:[#allocation22_spill] sm:$0xff] %v9528_v18  ;;  %v11416_v11 = vld [vmem:[#allocation84_spill] sm:$0xff] }
 0x384   : > { %11384 = vst [vmem:[#allocation213_spill] sm:$0xff] %v9477_v19 }
 0x385   : > { %4068 = vrot.lane.b32.xlu1 %v3625_v24, %s7305_s28  ;;  %3769 = vrot.lane.b32.xlu0 %v9485_v51, %s7305_s28 }
 0x387   : > { %6081 = vmatpush1.bf16.xpose.msra.mxu0 %v9495_v9  ;;  %v9498_v8 = vpop.permute.xlu1 %4056  ;;  %v9502_v28 = vpop.permute.xlu0 %4167  ;;  %v4118_v9 = vrot.slane %v9533_v47, 2 }
 0x388   : > { %11386 = vst [vmem:[#allocation215_spill] sm:$0xff] %v9498_v8  ;;  %6082 = vmatprep.subr.bf16.mxu0 %v4548_v3  ;;  %v4510_v3 = vsel %vm4373_vm1, %v4466_v56, %v11391_v6  ;;  %v11401_v6 = vld [vmem:[#allocation17_spill] sm:$0xff] }
 0x389   : > { %4266 = vrot.lane.b32.xlu1 %v9508_v15, %s7304_s23  ;;  %4104 = vrot.lane.b32.xlu0 %v9485_v51, %s7306_s10  ;;  %v4348_v39 = vsel %vm4340_vm15, %v11401_v6, %v11400_v52  ;;  %v4119_v36 = vsel %vm3948_vm14, %v4117_v2, %v4118_v9 }
 0x38b   : > { %v4255_v13 = vpop.permute.xlu1 %4254  ;;  %v5025_v53 = vpop.permute.xlu0 %5024 }
 0x38c   : > { %v4734_v7 = vsel %vm4340_vm15, %v11392_v29, %v4255_v13  ;;  %v4545_v13 = vsel %vm4406_vm2, %v4510_v3, %v11398_v54  ;;  %v11403_v3 = vld [vmem:[#allocation83_spill] sm:$0xff] }
 0x38d   : > { %4221 = vrot.lane.b32.xlu1 %v3625_v24, %s7306_s10  ;;  %4148 = vrot.lane.b32.xlu0 %v9442_v14, %s7304_s23  ;;  %v4774_v24 = vsel %vm4373_vm1, %v4734_v7, %v4290_v58  ;;  %v11404_v58 = vld [vmem:[#allocation15_spill] sm:$0xff] }
 0x38e   : > { %v4463_v7 = vsel %vm4340_vm15, %v11404_v58, %v11403_v3  ;;  %v11409_v3 = vld [vmem:[#allocation73_spill] sm:$0xff]  ;;  %v11411_v58 = vld [vmem:[#allocation94_spill] sm:$0xff] }
 0x38f   : > { %6083 = vmatpush1.bf16.xpose.msra.mxu0 %v9528_v18  ;;  %v4323_v56 = vpop.permute.xlu1 %4322  ;;  %v9538_v29 = vpop.permute.xlu0 %4905  ;;  %v11405_v18 = vld [vmem:[#allocation80_spill] sm:$0xff] }
 0x390   : > { %11399 = vst [vmem:[#allocation107_spill] sm:$0xff] %v9538_v29  ;;  %6084 = vmatprep.subr.bf16.mxu0 %v4545_v13  ;;  %v4813_v49 = vsel %vm4406_vm2, %v4774_v24, %v4323_v56  ;;  %v4381_v52 = vsel %vm4373_vm1, %v4348_v39, %v11405_v18  ;;  %v4036_v13 = vshll.u32 %v9533_v47, 16  ;;  %v11406_v24 = vld [vmem:[#allocation97_spill] sm:$0xff]  ;;  %v11446_v29 = vld [vmem:[#allocation164_spill] sm:$0xff] }
 0x391   : > { %4181 = vrot.lane.b32.xlu1 %v11402_v46, %s7305_s28  ;;  %6117 = vmatprep.subr.bf16.mxu1 %v4813_v49  ;;  %v4508_v54 = vsel %vm4373_vm1, %v4463_v7, %v11406_v24  ;;  %v9562_v49 = vshrl.u32 %v9533_v47, 16  ;;  %v11410_v18 = vld [vmem:[#allocation13_spill] sm:$0xff]  ;;  %v9572_v17 = vsel %vm4406_vm2, %v4381_v52, %v11411_v58  ;;  %v11414_v7 = vrot.slane %v11413_v10, 7  ;;  %v11418_v10 = vld [vmem:[#allocation152_spill] sm:$0xff] }
 0x392   : > { %3946 = vrot.lane.b32.xlu0 %v9508_v15, %s7306_s10  ;;  %v3187_v25 = vpop.f32.mrf.mxu1  ;;  %v4346_v39 = vsel %vm4340_vm15, %v11410_v18, %v11409_v3  ;;  %11412 = vst [vmem:[#allocation112_spill] sm:$0xff] %v9572_v17  ;;  %v4542_v3 = vsel %vm4406_vm2, %v4508_v54, %v11416_v11  ;;  %v4038_v52 = vrot.slane %v4036_v13, 1  ;;  %v4114_v58 = vrot.slane %v4036_v13, 2  ;;  %v11421_v54 = vld [vmem:[#allocation61_spill] sm:$0xff]  ;;  %v11422_v13 = vld [vmem:[#allocation12_spill] sm:$0xff] }
 0x393   : > { %v9556_v6 = vpop.permute.xlu1 %5026  ;;  %v5071_v56 = vpop.permute.xlu0 %5070  ;;  %11407 = vst [vmem:[#allocation136_spill] sm:$0xff] %v9562_v49  ;;  %v5289_v24 = vsel %vm4340_vm15, %v11414_v7, %v5025_v53  ;;  %v4035_v53 = vor.u32 %v4034_v55, %v11418_v10  ;;  %v4108_v7 = vrot.slane %v11418_v10, 1  ;;  %v9596_v11 = vrot.slane %v9533_v47, 1  ;;  %v11423_v55 = vld [vmem:[#allocation67_spill] sm:$0xff]  ;;  %v11426_v47 = vld [vmem:[#allocation74_spill] sm:$0xff] }
 0x394   : > { %v3189_v9 = vpop.f32.mrf.mxu1  ;;  %v5360_v25 = vsel %vm4373_vm1, %v5289_v24, %v5071_v56  ;;  %v9591_v56 = vrot.slane %v9562_v49, 1  ;;  %v5286_v10 = vsel %vm4340_vm15, %v11423_v55, %v9353_v38  ;;  %v4379_v34 = vsel %vm4373_vm1, %v4346_v39, %v11425_v48  ;;  %v11447_v49 = vld [vmem:[#allocation95_spill] sm:$0xff]  ;;  %v11524_v38 = vld [vmem:[#allocation90_spill] sm:$0xff] }
 0x395   : > { %4150 = vrot.lane.b32.xlu1 %v4119_v36, %s7304_s23  ;;  %v4109_v9 = vrot.slane %v11408_v44, 2  ;;  %11420 = vst [vmem:[#allocation83_spill] sm:$0xff] %v9596_v11  ;;  %v5411_v44 = vsel %vm4406_vm2, %v5360_v25, %v9432_v20  ;;  %v9622_v25 = vsel %vm3465_vm11, %v4035_v53, %v4038_v52  ;;  %v11432_v52 = vld [vmem:[#allocation72_spill] sm:$0xff] }
 0x396   : > { %4028 = vrot.lane.b32.xlu0 %v11402_v46, %s7304_s23  ;;  %11419 = vst [vmem:[#allocation17_spill] sm:$0xff] %v9591_v56  ;;  %v3190_v24 = vpop.f32.mrf.mxu1  ;;  %11428 = vst [vmem:[#allocation80_spill] sm:$0xff] %v9622_v25  ;;  %v5616_v48 = vshll.u32 %v5411_v44, 16  ;;  %v11433_v53 = vld [vmem:[#allocation48_spill] sm:$0xff] }
 0x397   : > { %6085 = vmatpush1.bf16.xpose.msra.mxu0 %v9572_v17  ;;  %v9581_v2 = vpop.permute.xlu1 %4907  ;;  %v9585_v18 = vpop.permute.xlu0 %3757  ;;  %v4073_v17 = vrot.slane %v11402_v46, 1  ;;  %v11424_v24 = vld [vmem:[#allocation54_spill] sm:$0xff] }
 0x398   : > { %11415 = vst [vmem:[#allocation143_spill] sm:$0xff] %v9581_v2  ;;  %11417 = vst [vmem:[#allocation93_spill] sm:$0xff] %v9585_v18  ;;  %6086 = vmatprep.subr.bf16.mxu0 %v4542_v3  ;;  %v4460_v3 = vsel %vm4340_vm15, %v11422_v13, %v11421_v54  ;;  %v6991_v41 = vunpack.i.l.bf16 %v11424_v24  ;;  %v5358_v54 = vsel %vm4373_vm1, %v5286_v10, %v9498_v8  ;;  %v11429_v10 = vld [vmem:[#allocation52_spill] sm:$0xff] }
 0x399   : > { %4303 = vrot.lane.b32.xlu1 %v4119_v36, %s7305_s28  ;;  %v3192_v36 = vpop.f32.mrf.mxu1  ;;  %v4506_v21 = vsel %vm4373_vm1, %v4460_v3, %v11426_v47  ;;  %v9629_v47 = vsel %vm3690_vm12, %v4073_v17, %v9596_v11  ;;  %v6987_v3 = vunpack.i.h.bf16 %v11429_v10  ;;  %v4731_v2 = vsel %vm4340_vm15, %v11447_v49, %v9337_v5 }
 0x39a   : > { %4334 = vrot.lane.b32.xlu0 %v11402_v46, %s7306_s10  ;;  %v4110_v36 = vor.u32 %v4109_v9, %v4108_v7  ;;  %v4115_v46 = vor.u32 %v4114_v58, %v9591_v56  ;;  %v4414_v58 = vsel %vm4406_vm2, %v4379_v34, %v11432_v52  ;;  %v11434_v7 = vld [vmem:[#allocation3_spill] sm:$0xff]  ;;  %v11436_v56 = vld [vmem:[#allocation64_spill] sm:$0xff]  ;;  %v4457_v11 = vsel %vm4340_vm15, %v11422_v13, %v6991_v41  ;;  %v11440_v13 = vld [vmem:[#allocation57_spill] sm:$0xff] }
 0x39b   : > { %v9615_v32 = vpop.permute.xlu1 %5113  ;;  %v9617_v55 = vpop.permute.xlu0 %4092  ;;  %v4344_v9 = vsel %vm4340_vm15, %v11434_v7, %v11433_v53  ;;  %v4539_v57 = vsel %vm4406_vm2, %v4506_v21, %v11436_v56  ;;  %v4606_v5 = vsel %vm4340_vm15, %v11451_v60, %v9408_v63 }
 0x39c   : > { %11427 = vst [vmem:[#allocation15_spill] sm:$0xff] %v9617_v55  ;;  %v5409_v20 = vsel %vm4406_vm2, %v5358_v54, %v9617_v55  ;;  %v9635_v54 = vsel %vm2511_vm0, %v11431_v31, 0  ;;  %v9653_v34 = vsel %vm3771_vm13, %v4110_v36, %v4115_v46  ;;  %v4377_v56 = vsel %vm4373_vm1, %v4344_v9, %v6987_v3  ;;  %v11445_v9 = vld [vmem:[#allocation166_spill] sm:$0xff] }
 0x39d   : > { %v5612_v39 = vshll.u32 %v5409_v20, 16  ;;  %4070 = vrot.lane.b32.xlu1 %v9622_v25, %s7305_s28  ;;  %v5610_v44 = vshrl.u32 %v5409_v20, 16  ;;  %v9656_v53 = vshrl.u32 %v9635_v54, 16  ;;  %v5618_v20 = vrot.slane %v5616_v48, 1 }
 0x39e   : > { %4106 = vrot.lane.b32.xlu0 %v9629_v47, %s7306_s10  ;;  %v6996_v46 = vunpack.i.l.bf16 %v11440_v13  ;;  %v4232_v1 = vrot.slane %v11445_v9, 2  ;;  %v4646_v55 = vsel %vm4373_vm1, %v4606_v5, %v9502_v28 }
 0x39f   : > { %v5614_v17 = vrot.slane %v5612_v39, 1  ;;  %6087 = vmatpush1.bf16.xpose.msra.mxu0 %v4414_v58  ;;  %v9644_v23 = vpop.permute.xlu1 %3759  ;;  %v9648_v31 = vpop.permute.xlu0 %4950  ;;  %11438 = vst [vmem:[#allocation73_spill] sm:$0xff] %v9656_v53  ;;  %v4191_v39 = vshll.u32 %v9635_v54, 16  ;;  %v11439_v58 = vld [vmem:[#allocation160_spill] sm:$0xff] }
 0x3a0   : > { %11435 = vst [vmem:[#allocation97_spill] sm:$0xff] %v9644_v23  ;;  %11437 = vst [vmem:[#allocation153_spill] sm:$0xff] %v9648_v31  ;;  %6088 = vmatprep.subr.bf16.mxu0 %v4539_v57  ;;  %v3195_v52 = vpop.f32.mrf.mxu1  ;;  %v4272_v48 = vrot.slane %v11439_v58, 2 }
 0x3a1   : > { %4268 = vrot.lane.b32.xlu1 %v9653_v34, %s7304_s23  ;;  %v5615_v21 = vor.u32 %v5614_v17, %v5610_v44  ;;  %v4273_v52 = vrot.slane %v9635_v54, 2  ;;  %v11444_v44 = vld [vmem:[#allocation58_spill] sm:$0xff]  ;;  %v4189_v17 = vrot.slane %v11445_v9, 1  ;;  %v6986_v9 = vunpack.i.l.bf16 %v11429_v10 }
 0x3a2   : > { %4183 = vrot.lane.b32.xlu0 %v11439_v58, %s7305_s28  ;;  %v3197_v41 = vpop.f32.mrf.mxu1  ;;  %v4504_v3 = vsel %vm4373_vm1, %v4457_v11, %v11444_v44  ;;  %v11450_v44 = vld [vmem:[#allocation56_spill] sm:$0xff]  ;;  %v4193_v10 = vrot.slane %v4191_v39, 1 }
 0x3a3   : > { %v9665_v36 = vpop.permute.xlu1 %4094  ;;  %v9667_v57 = vpop.permute.xlu0 %3934  ;;  %v9672_v31 = vsel %vm3465_vm11, %v5615_v21, %v5618_v20  ;;  %v4231_v41 = vrot.slane %v11446_v29, 1  ;;  %v9685_v20 = vrot.slane %v9656_v53, 1  ;;  %v4237_v21 = vrot.slane %v4191_v39, 2  ;;  %v11456_v39 = vld [vmem:[#allocation170_spill] sm:$0xff] }
 0x3a4   : > { %11441 = vst [vmem:[#allocation13_spill] sm:$0xff] %v9665_v36  ;;  %11442 = vst [vmem:[#allocation94_spill] sm:$0xff] %v9667_v57  ;;  %v3198_v26 = vpop.f32.mrf.mxu1 }
 0x3a5   : > { %11443 = vst [vmem:[#allocation63_spill] sm:$0xff] %v9672_v31  ;;  %4223 = vrot.lane.b32.xlu1 %v9622_v25, %s7306_s10  ;;  %11448 = vst [vmem:[#allocation84_spill] sm:$0xff] %v9685_v20  ;;  %v11449_v31 = vld [vmem:[#allocation47_spill] sm:$0xff]  ;;  %v4411_v26 = vsel %vm4406_vm2, %v4377_v56, %v11450_v44  ;;  %v4274_v56 = vsel %vm3948_vm14, %v4272_v48, %v4273_v52  ;;  %v4772_v44 = vsel %vm4373_vm1, %v4731_v2, %v9281_v62  ;;  %v11457_v48 = vld [vmem:[#allocation77_spill] sm:$0xff] }
 0x3a6   : > { %v4342_v11 = vsel %vm4340_vm15, %v11434_v7, %v11449_v31  ;;  %4336 = vrot.lane.b32.xlu0 %v11439_v58, %s7306_s10  ;;  %v3200_v49 = vpop.f32.mrf.mxu1  ;;  %v4536_v31 = vsel %vm4406_vm2, %v4504_v3, %v6996_v46  ;;  %v4810_v28 = vsel %vm4406_vm2, %v4772_v44, %v9374_v30  ;;  %v4233_v46 = vor.u32 %v4232_v1, %v4231_v41  ;;  %v11459_v41 = vld [vmem:[#allocation53_spill] sm:$0xff] }
 0x3a7   : > { %6089 = vmatpush1.bf16.xpose.msra.mxu0 %v4411_v26  ;;  %v9700_v42 = vpop.permute.xlu1 %4952  ;;  %v4210_v57 = vpop.permute.xlu0 %4209  ;;  %v4190_v49 = vor.u32 %v4189_v17, %v11446_v29  ;;  %v4238_v3 = vor.u32 %v4237_v21, %v9685_v20  ;;  %v4728_v52 = vsel %vm4340_vm15, %v11457_v48, %v11456_v39  ;;  %v3988_v1 = vrot.slane %v8880_v33, 2  ;;  %v11461_v26 = vld [vmem:[#allocation81_spill] sm:$0xff] }
 0x3a8   : > { %11452 = vst [vmem:[#allocation61_spill] sm:$0xff] %v9700_v42  ;;  %6090 = vmatprep.subr.bf16.mxu0 %v4536_v31  ;;  %v4685_v63 = vsel %vm4406_vm2, %v4646_v55, %v4210_v57  ;;  %v4375_v55 = vsel %vm4373_vm1, %v4342_v11, %v6986_v9  ;;  %v3989_v17 = vrot.slane %v9249_v61, 2  ;;  %v11460_v11 = vld [vmem:[#allocation176_spill] sm:$0xff]  ;;  %v11468_v48 = vld [vmem:[#allocation49_spill] sm:$0xff] }
 0x3a9   : > { %4264 = vrot.lane.b32.xlu1 %v9342_v27, %s7304_s23  ;;  %6118 = vmatpush1.bf16.xpose.msra.mxu1 %v4685_v63  ;;  %v9720_v2 = vsel %vm3465_vm11, %v4190_v49, %v4193_v10  ;;  %v9728_v30 = vsel %vm3771_vm13, %v4233_v46, %v4238_v3  ;;  %v4408_v21 = vsel %vm4406_vm2, %v4375_v55, %v11459_v41  ;;  %v11462_v9 = vld [vmem:[#allocation192_spill] sm:$0xff]  ;;  %v11465_v49 = vld [vmem:[#allocation158_spill] sm:$0xff]  ;;  %v11466_v46 = vld [vmem:[#allocation175_spill] sm:$0xff] }
 0x3aa   : > { %4305 = vrot.lane.b32.xlu0 %v4274_v56, %s7305_s28  ;;  %6119 = vmatprep.subr.bf16.mxu1 %v4810_v28  ;;  %11455 = vst [vmem:[#allocation54_spill] sm:$0xff] %v9720_v2  ;;  %11458 = vst [vmem:[#allocation65_spill] sm:$0xff] %v9728_v30  ;;  %v4603_v5 = vsel %vm4340_vm15, %v11461_v26, %v11460_v11  ;;  %v4770_v10 = vsel %vm4373_vm1, %v4728_v52, %v11465_v49  ;;  %v11469_v41 = vld [vmem:[#allocation145_spill] sm:$0xff]  ;;  %v11472_v11 = vld [vmem:[#allocation159_spill] sm:$0xff] }
 0x3ab   : > { %v9715_v57 = vpop.permute.xlu1 %3936  ;;  %v9717_v62 = vpop.permute.xlu0 %4016  ;;  %v4644_v31 = vsel %vm4373_vm1, %v4603_v5, %v11462_v9  ;;  %v9752_v28 = vsel %vm3948_vm14, %v3988_v1, %v3989_v17  ;;  %v4807_v3 = vsel %vm4406_vm2, %v4770_v10, %v11466_v46  ;;  %v11470_v1 = vld [vmem:[#allocation55_spill] sm:$0xff]  ;;  %v11473_v9 = vld [vmem:[#allocation78_spill] sm:$0xff]  ;;  %v11478_v29 = vld [vmem:[#allocation45_spill] sm:$0xff] }
 0x3ac   : > { %11453 = vst [vmem:[#allocation12_spill] sm:$0xff] %v9715_v57  ;;  %11454 = vst [vmem:[#allocation67_spill] sm:$0xff] %v9717_v62  ;;  %v4682_v44 = vsel %vm4406_vm2, %v4644_v31, %v9479_v12  ;;  %v11467_v12 = vld [vmem:[#allocation147_spill] sm:$0xff]  ;;  %v4600_v17 = vsel %vm4340_vm15, %v11470_v1, %v11469_v41  ;;  %v11474_v31 = vrot.slane %v11473_v9, 7  ;;  %v11476_v46 = vld [vmem:[#allocation186_spill] sm:$0xff] }
 0x3ad   : > { %4225 = vrot.lane.b32.xlu1 %v9720_v2, %s7306_s10  ;;  %v4725_v52 = vsel %vm4340_vm15, %v11468_v48, %v11467_v12  ;;  %v4642_v5 = vsel %vm4373_vm1, %v4600_v17, %v11472_v11  ;;  %v11477_v48 = vld [vmem:[#allocation138_spill] sm:$0xff]  ;;  %v11479_v17 = vld [vmem:[#allocation149_spill] sm:$0xff]  ;;  %v11491_v61 = vld [vmem:[#allocation124_spill] sm:$0xff] }
 0x3ae   : > { %4270 = vrot.lane.b32.xlu0 %v9728_v30, %s7304_s23  ;;  %v4768_v41 = vsel %vm4373_vm1, %v4725_v52, %v11477_v48  ;;  %v11565_v27 = vld [vmem:[#allocation168_spill] sm:$0xff] }
 0x3af   : > { %6091 = vmatpush1.bf16.xpose.msra.mxu0 %v4408_v21  ;;  %v9741_v56 = vpop.permute.xlu1 %4018  ;;  %v9743_v63 = vpop.permute.xlu0 %4865  ;;  %v11471_v21 = vld [vmem:[#allocation62_spill] sm:$0xff]  ;;  %v4804_v11 = vsel %vm4406_vm2, %v4768_v41, %v11479_v17  ;;  %v11485_v41 = vld [vmem:[#allocation128_spill] sm:$0xff] }
 0x3b0   : > { %11463 = vst [vmem:[#allocation74_spill] sm:$0xff] %v9741_v56  ;;  %11464 = vst [vmem:[#allocation52_spill] sm:$0xff] %v9743_v63  ;;  %v11486_v17 = vld [vmem:[#allocation44_spill] sm:$0xff] }
 0x3b1   : > { %4299 = vrot.lane.b32.xlu1 %v9421_v59, %s7305_s28  ;;  %6120 = vmatpush1.bf16.xpose.msra.mxu1 %v4682_v44  ;;  %v5294_v44 = vsel %vm4340_vm15, %v11474_v31, %v9556_v6  ;;  %v11480_v6 = vld [vmem:[#allocation82_spill] sm:$0xff] }
 0x3b2   : > { %4144 = vrot.lane.b32.xlu0 %v9752_v28, %s7304_s23  ;;  %6121 = vmatprep.subr.bf16.mxu1 %v4807_v3  ;;  %v4679_v3 = vsel %vm4406_vm2, %v4642_v5, %v11476_v46  ;;  %v5291_v5 = vsel %vm4340_vm15, %v11480_v6, %v9717_v62  ;;  %v11484_v46 = vld [vmem:[#allocation39_spill] sm:$0xff]  ;;  %v11487_v6 = vld [vmem:[#allocation66_spill] sm:$0xff]  ;;  %v11557_v62 = vld [vmem:[#allocation76_spill] sm:$0xff] }
 0x3b3   : > { %v5029_v55 = vpop.permute.xlu1 %5028  ;;  %v5073_v39 = vpop.permute.xlu0 %5072  ;;  %v3979_v53 = vrot.slane %v11557_v62, 2 }
 0x3b4   : > { %v5363_v12 = vsel %vm4373_vm1, %v5294_v44, %v5073_v39  ;;  %v11483_v44 = vld [vmem:[#allocation130_spill] sm:$0xff] }
 0x3b5   : > { %4177 = vrot.lane.b32.xlu1 %v8944_v50, %s7305_s28  ;;  %v5414_v39 = vsel %vm4406_vm2, %v5363_v12, %v9615_v32  ;;  %v4597_v32 = vsel %vm4340_vm15, %v11486_v17, %v11485_v41  ;;  %v11493_v41 = vld [vmem:[#allocation132_spill] sm:$0xff] }
 0x3b6   : > { %5020 = vrot.lane.b32.xlu0 %v11471_v21, %s7304_s23  ;;  %v5647_v12 = vshll.u32 %v5414_v39, 16  ;;  %v11492_v39 = vld [vmem:[#allocation71_spill] sm:$0xff] }
 0x3b7   : > { %v5075_v49 = vpop.permute.xlu1 %5074  ;;  %v9774_v10 = vpop.permute.xlu0 %3646 }
 0x3b8   : > { %11475 = vst [vmem:[#allocation156_spill] sm:$0xff] %v9774_v10  ;;  %v5649_v17 = vrot.slane %v5647_v12, 1  ;;  %v11558_v10 = vld [vmem:[#allocation134_spill] sm:$0xff] }
 0x3b9   : > { %4857 = vrot.lane.b32.xlu1 %v11478_v29, %s7304_s23  ;;  %6122 = vmatpush1.bf16.xpose.msra.mxu1 %v4679_v3  ;;  %v4722_v3 = vsel %vm4340_vm15, %v11484_v46, %v11483_v44  ;;  %v11490_v46 = vld [vmem:[#allocation150_spill] sm:$0xff] }
 0x3ba   : > { %4332 = vrot.lane.b32.xlu0 %v9008_v43, %s7306_s10  ;;  %6123 = vmatprep.subr.bf16.mxu1 %v4804_v11  ;;  %v4766_v21 = vsel %vm4373_vm1, %v4722_v3, %v11491_v61 }
 0x3bb   : > { %v9792_v9 = vpop.permute.xlu1 %3648  ;;  %v9794_v52 = vpop.permute.xlu0 %4058 }
 0x3bc   : > { %11481 = vst [vmem:[#allocation72_spill] sm:$0xff] %v9792_v9  ;;  %11482 = vst [vmem:[#allocation48_spill] sm:$0xff] %v9794_v52  ;;  %v5361_v31 = vsel %vm4373_vm1, %v5291_v5, %v9794_v52  ;;  %v11488_v5 = vld [vmem:[#allocation139_spill] sm:$0xff] }
 0x3bd   : > { %v5412_v48 = vsel %vm4406_vm2, %v5361_v31, %v9665_v36  ;;  %4219 = vrot.lane.b32.xlu1 %v9357_v22, %s7306_s10  ;;  %v4640_v1 = vsel %vm4373_vm1, %v4597_v32, %v11488_v5  ;;  %v11494_v32 = vld [vmem:[#allocation46_spill] sm:$0xff] }
 0x3be   : > { %v5643_v11 = vshll.u32 %v5412_v48, 16  ;;  %5066 = vrot.lane.b32.xlu0 %v11487_v6, %s7305_s28  ;;  %v4676_v31 = vsel %vm4406_vm2, %v4640_v1, %v11490_v46  ;;  %v5641_v60 = vshrl.u32 %v5412_v48, 16  ;;  %v4801_v6 = vsel %vm4406_vm2, %v4766_v21, %v11493_v41  ;;  %v11496_v48 = vld [vmem:[#allocation91_spill] sm:$0xff]  ;;  %v11499_v46 = vld [vmem:[#allocation116_spill] sm:$0xff] }
 0x3bf   : > { %v9812_v26 = vpop.permute.xlu1 %4060  ;;  %v5116_v44 = vpop.permute.xlu0 %5115 }
 0x3c0   : > { %11489 = vst [vmem:[#allocation64_spill] sm:$0xff] %v9812_v26  ;;  %v5645_v22 = vrot.slane %v5643_v11, 1  ;;  %v11497_v11 = vrot.slane %v11496_v48, 7  ;;  %v11504_v48 = vld [vmem:[#allocation33_spill] sm:$0xff] }
 0x3c1   : > { %5107 = vrot.lane.b32.xlu1 %v11492_v39, %s7306_s10  ;;  %6124 = vmatpush1.bf16.xpose.msra.mxu1 %v4676_v31  ;;  %v11500_v31 = vld [vmem:[#allocation30_spill] sm:$0xff]  ;;  %v11502_v39 = vld [vmem:[#allocation165_spill] sm:$0xff] }
 0x3c2   : > { %4899 = vrot.lane.b32.xlu0 %v11494_v32, %s7305_s28  ;;  %6125 = vmatprep.subr.bf16.mxu1 %v4801_v6  ;;  %v5646_v5 = vor.u32 %v5645_v22, %v5641_v60  ;;  %v5299_v61 = vsel %vm4340_vm15, %v11497_v11, %v5029_v55  ;;  %v4719_v21 = vsel %vm4340_vm15, %v11500_v31, %v11499_v46  ;;  %v11501_v60 = vld [vmem:[#allocation103_spill] sm:$0xff]  ;;  %v3986_v41 = vrot.slane %v11502_v39, 2  ;;  %v11506_v46 = vld [vmem:[#allocation50_spill] sm:$0xff] }
 0x3c3   : > { %v9824_v42 = vpop.permute.xlu1 %3763  ;;  %v9826_v1 = vpop.permute.xlu0 %3761  ;;  %v5366_v12 = vsel %vm4373_vm1, %v5299_v61, %v5075_v49  ;;  %v3985_v22 = vrot.slane %v11501_v60, 2  ;;  %v11503_v6 = vld [vmem:[#allocation111_spill] sm:$0xff]  ;;  %v11507_v49 = vld [vmem:[#allocation120_spill] sm:$0xff] }
 0x3c4   : > { %11495 = vst [vmem:[#allocation160_spill] sm:$0xff] %v9826_v1  ;;  %v9832_v3 = vsel %vm3465_vm11, %v5646_v5, %v5649_v17  ;;  %v4594_v55 = vsel %vm4340_vm15, %v11504_v48, %v11503_v6  ;;  %v11505_v17 = vld [vmem:[#allocation96_spill] sm:$0xff]  ;;  %v5417_v11 = vsel %vm4406_vm2, %v5366_v12, %v5116_v44  ;;  %v11509_v6 = vld [vmem:[#allocation133_spill] sm:$0xff]  ;;  %v11510_v44 = vld [vmem:[#allocation110_spill] sm:$0xff] }
 0x3c5   : > { %11498 = vst [vmem:[#allocation57_spill] sm:$0xff] %v9832_v3  ;;  %4262 = vrot.lane.b32.xlu1 %v9360_v37, %s7304_s23  ;;  %v5296_v5 = vsel %vm4340_vm15, %v11505_v17, %v9741_v56  ;;  %v4638_v61 = vsel %vm4373_vm1, %v4594_v55, %v11507_v49  ;;  %v4764_v12 = vsel %vm4373_vm1, %v4719_v21, %v11510_v44  ;;  %v11515_v44 = vld [vmem:[#allocation19_spill] sm:$0xff] }
 0x3c6   : > { %4944 = vrot.lane.b32.xlu0 %v11506_v46, %s7306_s10  ;;  %v5364_v31 = vsel %vm4373_vm1, %v5296_v5, %v9812_v26  ;;  %v4673_v48 = vsel %vm4406_vm2, %v4638_v61, %v11509_v6  ;;  %v5678_v46 = vshll.u32 %v5417_v11, 16  ;;  %v9868_v55 = vsel %vm3948_vm14, %v3985_v22, %v3986_v41  ;;  %v11511_v5 = vld [vmem:[#allocation119_spill] sm:$0xff]  ;;  %v11514_v11 = vld [vmem:[#allocation98_spill] sm:$0xff] }
 0x3c7   : > { %v9855_v39 = vpop.permute.xlu1 %3940  ;;  %v9857_v3 = vpop.permute.xlu0 %4096  ;;  %v4798_v49 = vsel %vm4406_vm2, %v4764_v12, %v11511_v5  ;;  %v4716_v8 = vsel %vm4340_vm15, %v11515_v44, %v11514_v11  ;;  %v11517_v12 = vld [vmem:[#allocation24_spill] sm:$0xff]  ;;  %v7307_v11 = vmov 1983009808   ;;  %v11556_v37 = vld [vmem:[#allocation27_spill] sm:$0xff] }
 0x3c8   : > { %11508 = vst [vmem:[#allocation58_spill] sm:$0xff] %v9857_v3  ;;  %v5415_v17 = vsel %vm4406_vm2, %v5364_v31, %v9857_v3  ;;  %v5680_v22 = vrot.slane %v5678_v46, 1  ;;  %v5988_v44 = vunpack.c.l.s4 %v7307_v11  ;;  %v3980_v3 = vrot.slane %v11558_v10, 2 }
 0x3c9   : > { %v5674_v63 = vshll.u32 %v5415_v17, 16  ;;  %4297 = vrot.lane.b32.xlu1 %v9752_v28, %s7305_s28  ;;  %6126 = vmatpush1.bf16.xpose.msra.mxu1 %v4673_v48  ;;  %v5672_v61 = vshrl.u32 %v5415_v17, 16  ;;  %v11516_v48 = vld [vmem:[#allocation87_spill] sm:$0xff] }
 0x3ca   : > { %4142 = vrot.lane.b32.xlu0 %v9868_v55, %s7304_s23  ;;  %6127 = vmatprep.subr.bf16.mxu1 %v4798_v49  ;;  %v4591_v5 = vsel %vm4340_vm15, %v11517_v12, %v11516_v48  ;;  %v11518_v17 = vld [vmem:[#allocation43_spill] sm:$0xff]  ;;  %v4762_v48 = vsel %vm4373_vm1, %v4716_v8, %v11524_v38  ;;  %v11525_v12 = vld [vmem:[#allocation38_spill] sm:$0xff] }
 0x3cb   : > { %v5676_v31 = vrot.slane %v5674_v63, 1  ;;  %v9874_v6 = vpop.permute.xlu1 %4062  ;;  %v9876_v21 = vpop.permute.xlu0 %3938  ;;  %v11519_v63 = vld [vmem:[#allocation101_spill] sm:$0xff]  ;;  %v9917_v38 = vld [vmem:[%s10885_s5] sm:$0xff]  ;;  %v11529_v8 = vld [vmem:[#allocation79_spill] sm:$0xff] }
 0x3cc   : > { %11512 = vst [vmem:[#allocation166_spill] sm:$0xff] %v9874_v6  ;;  %11513 = vst [vmem:[#allocation95_spill] sm:$0xff] %v9876_v21  ;;  %v4636_v49 = vsel %vm4373_vm1, %v4591_v5, %v11519_v63  ;;  %v11526_v5 = vld [vmem:[#allocation105_spill] sm:$0xff] }
 0x3cd   : > { %4175 = vrot.lane.b32.xlu1 %v8880_v33, %s7305_s28  ;;  %v5677_v41 = vor.u32 %v5676_v31, %v5672_v61  ;;  %v11523_v61 = vld [vmem:[#allocation115_spill] sm:$0xff]  ;;  %v4795_v63 = vsel %vm4406_vm2, %v4762_v48, %v11526_v5  ;;  %v11533_v5 = vld [vmem:[#allocation69_spill] sm:$0xff] }
 0x3ce   : > { %5018 = vrot.lane.b32.xlu0 %v11518_v17, %s7304_s23  ;;  %v4670_v31 = vsel %vm4406_vm2, %v4636_v49, %v11523_v61  ;;  %v5989_v17 = vunpack.c.0.s8 %v5988_v44  ;;  %v11528_v49 = vld [vmem:[#allocation2_spill] sm:$0xff] }
 0x3cf   : > { %v9890_v25 = vpop.permute.xlu1 %4022  ;;  %v9892_v18 = vpop.permute.xlu0 %4020  ;;  %v9895_v46 = vsel %vm3465_vm11, %v5677_v41, %v5680_v22  ;;  %v11530_v61 = vld [vmem:[#allocation14_spill] sm:$0xff] }
 0x3d0   : > { %11520 = vst [vmem:[#allocation47_spill] sm:$0xff] %v9890_v25  ;;  %11521 = vst [vmem:[#allocation56_spill] sm:$0xff] %v9892_v18  ;;  %v9912_v11 = vsub.s32 %v5989_v17, %v11528_v49  ;;  %v4713_v44 = vsel %vm4340_vm15, %v11530_v61, %v11529_v8  ;;  %v11535_v49 = vld [vmem:[#allocation86_spill] sm:$0xff] }
 0x3d1   : > { %11522 = vst [vmem:[#allocation170_spill] sm:$0xff] %v9895_v46  ;;  %4855 = vrot.lane.b32.xlu1 %v11525_v12, %s7304_s23  ;;  %6128 = vmatpush1.bf16.xpose.msra.mxu1 %v4670_v31  ;;  %v11531_v31 = vld [vmem:[#allocation189_spill] sm:$0xff]  ;;  %v4760_v20 = vsel %vm4373_vm1, %v4713_v44, %v11537_v16 }
 0x3d2   : > { %4330 = vrot.lane.b32.xlu0 %v8944_v50, %s7306_s10  ;;  %6129 = vmatprep.subr.bf16.mxu1 %v4795_v63  ;;  %v9926_v48 = vrot.slane %v9917_v38, %v9912_v11  ;;  %v11534_v63 = vld [vmem:[#allocation16_spill] sm:$0xff]  ;;  %v11541_v44 = vld [vmem:[#allocation157_spill] sm:$0xff] }
 0x3d3   : > { %v9907_v22 = vpop.permute.xlu1 %3652  ;;  %v9909_v41 = vpop.permute.xlu0 %4098  ;;  %v4588_v17 = vsel %vm4340_vm15, %v11534_v63, %v11533_v5  ;;  %v6992_v63 = vunpack.i.h.bf16 %v11424_v24  ;;  %v11544_v24 = vld [vmem:[#allocation40_spill] sm:$0xff] }
 0x3d4   : > { %11527 = vst [vmem:[#allocation77_spill] sm:$0xff] %v9909_v41  ;;  %11532 = vst [vmem:[#allocation53_spill] sm:$0xff] %v9926_v48  ;;  %v4634_v46 = vsel %vm4373_vm1, %v4588_v17, %v11535_v49  ;;  %v6001_v61 = vcombine.high %v9926_v48, %v9926_v48  ;;  %v11539_v17 = vld [vmem:[#allocation37_spill] sm:$0xff] }
 0x3d5   : > { %4217 = vrot.lane.b32.xlu1 %v11531_v31, %s7306_s10  ;;  %v11536_v31 = vld [vmem:[#allocation100_spill] sm:$0xff] }
 0x3d6   : > { %5064 = vrot.lane.b32.xlu0 %v11478_v29, %s7305_s28  ;;  %v4667_v19 = vsel %vm4406_vm2, %v4634_v46, %v11536_v31  ;;  %v11538_v29 = vld [vmem:[#allocation89_spill] sm:$0xff]  ;;  %6108 = vmatprep.mubr.bf16.mxu0 %v6001_v61  ;;  %v11540_v46 = vld [vmem:[#allocation88_spill] sm:$0xff]  ;;  %v3983_v31 = vrot.slane %v11541_v44, 2  ;;  %v11546_v61 = vld [vmem:[#allocation75_spill] sm:$0xff] }
 0x3d7   : > { %v9935_v4 = vpop.permute.xlu1 %4064  ;;  %v9937_v8 = vpop.permute.xlu0 %3650  ;;  %v4792_v5 = vsel %vm4406_vm2, %v4760_v20, %v11538_v29  ;;  %v3982_v16 = vrot.slane %v11540_v46, 2  ;;  %v11545_v29 = vld [vmem:[#allocation60_spill] sm:$0xff] }
 0x3d9   : > { %5105 = vrot.lane.b32.xlu1 %v11494_v32, %s7306_s10  ;;  %6130 = vmatpush1.bf16.xpose.msra.mxu1 %v4667_v19  ;;  %v11542_v19 = vld [vmem:[#allocation181_spill] sm:$0xff]  ;;  %v11543_v32 = vld [vmem:[#allocation11_spill] sm:$0xff]  ;;  %v9973_v44 = vsel %vm3948_vm14, %v3982_v16, %v3983_v31  ;;  %v11550_v31 = vld [vmem:[#allocation28_spill] sm:$0xff] }
 0x3da   : > { %4897 = vrot.lane.b32.xlu0 %v11539_v17, %s7305_s28  ;;  %6131 = vmatprep.subr.bf16.mxu1 %v4792_v5  ;;  %v4585_v20 = vsel %vm4340_vm15, %v11543_v32, %v6992_v63 }
 0x3db   : > { %v9952_v49 = vpop.permute.xlu1 %3767  ;;  %v9954_v48 = vpop.permute.xlu0 %3765  ;;  %v4632_v5 = vsel %vm4373_vm1, %v4585_v20, %v11545_v29  ;;  %v11548_v29 = vld [vmem:[#allocation35_spill] sm:$0xff] }
 0x3dc   : > { %v4664_v30 = vsel %vm4406_vm2, %v4632_v5, %v11546_v61 }
 0x3dd   : > { %4260 = vrot.lane.b32.xlu1 %v11542_v19, %s7304_s23 }
 0x3de   : > { %4942 = vrot.lane.b32.xlu0 %v11544_v24, %s7306_s10  ;;  %v11553_v24 = vld [vmem:[#allocation183_spill] sm:$0xff] }
 0x3df   : > { %v9966_v36 = vpop.permute.xlu1 %3944  ;;  %v9968_v57 = vpop.permute.xlu0 %4100 }
 0x3e1   : > { %4295 = vrot.lane.b32.xlu1 %v9868_v55, %s7305_s28  ;;  %6132 = vmatpush1.bf16.xpose.msra.mxu1 %v4664_v30 }
 0x3e2   : > { %4140 = vrot.lane.b32.xlu0 %v9973_v44, %s7304_s23 }
 0x3e3   : > { %v9979_v63 = vpop.permute.xlu1 %4066  ;;  %v9981_v20 = vpop.permute.xlu0 %3942 }
 0x3e4   : > { %11547 = vst [vmem:[#allocation176_spill] sm:$0xff] %v9979_v63 }
 0x3e5   : > { %4173 = vrot.lane.b32.xlu1 %v11501_v60, %s7305_s28 }
 0x3e6   : > { %5016 = vrot.lane.b32.xlu0 %v11548_v29, %s7304_s23 }
 0x3e7   : > { %v9987_v5 = vpop.permute.xlu1 %4026  ;;  %v9989_v16 = vpop.permute.xlu0 %4024 }
 0x3e8   : > { %11549 = vst [vmem:[#allocation192_spill] sm:$0xff] %v9989_v16 }
 0x3e9   : > { %4853 = vrot.lane.b32.xlu1 %v11550_v31, %s7304_s23 }
 0x3ea   : > { %4328 = vrot.lane.b32.xlu0 %v8880_v33, %s7306_s10 }
 0x3eb   : > { %v9995_v30 = vpop.permute.xlu1 %4179  ;;  %v9997_v61 = vpop.permute.xlu0 %4102 }
 0x3ec   : > { %11551 = vst [vmem:[#allocation158_spill] sm:$0xff] %v9995_v30  ;;  %11552 = vst [vmem:[#allocation175_spill] sm:$0xff] %v9997_v61 }
 0x3ed   : > { %4215 = vrot.lane.b32.xlu1 %v11553_v24, %s7306_s10  ;;  %v11559_v24 = vld [vmem:[#allocation184_spill] sm:$0xff] }
 0x3ee   : > { %5062 = vrot.lane.b32.xlu0 %v11525_v12, %s7305_s28  ;;  %v11560_v12 = vld [vmem:[#allocation31_spill] sm:$0xff] }
 0x3ef   : > { %v10003_v29 = vpop.permute.xlu1 %4301  ;;  %v10005_v19 = vpop.permute.xlu0 %4146 }
 0x3f0   : > { %11554 = vst [vmem:[#allocation147_spill] sm:$0xff] %v10003_v29  ;;  %11555 = vst [vmem:[#allocation49_spill] sm:$0xff] %v10005_v19 }
 0x3f1   : > { %5103 = vrot.lane.b32.xlu1 %v11539_v17, %s7306_s10  ;;  %v10020_v17 = vsel %vm3948_vm14, %v3979_v53, %v3980_v3  ;;  %v11563_v3 = vld [vmem:[#allocation18_spill] sm:$0xff] }
 0x3f2   : > { %4895 = vrot.lane.b32.xlu0 %v11556_v37, %s7305_s28  ;;  %v11564_v26 = vshrl.u32 %v11563_v3, 16  ;;  %v11568_v9 = vrot.slane %v11563_v3, 1 }
 0x3f3   : > { %v3657_v52 = vpop.permute.xlu1 %3656  ;;  %v3655_v23 = vpop.permute.xlu0 %3654 }
 0x3f4   : > { %v4372_v3 = vsel %vm4340_vm15, %v9008_v43, %v3657_v52 }
 0x3f5   : > { %4258 = vrot.lane.b32.xlu1 %v11559_v24, %s7304_s23 }
 0x3f6   : > { %4940 = vrot.lane.b32.xlu0 %v11560_v12, %s7306_s10  ;;  %v11561_v12 = vld [vmem:[#allocation26_spill] sm:$0xff] }
 0x3f7   : > { %v10017_v40 = vpop.permute.xlu1 %4068  ;;  %v3770_v30 = vpop.permute.xlu0 %3769 }
 0x3f9   : > { %4293 = vrot.lane.b32.xlu1 %v9973_v44, %s7305_s28 }
 0x3fa   : > { %4138 = vrot.lane.b32.xlu0 %v10020_v17, %s7304_s23 }
 0x3fb   : > { %v10026_v21 = vpop.permute.xlu1 %4266  ;;  %v10028_v10 = vpop.permute.xlu0 %4104 }
 0x3fd   : > { %4171 = vrot.lane.b32.xlu1 %v11540_v46, %s7305_s28 }
 0x3fe   : > { %5014 = vrot.lane.b32.xlu0 %v11561_v12, %s7304_s23 }
 0x3ff   : > { %v10034_v24 = vpop.permute.xlu1 %4221  ;;  %v10036_v53 = vpop.permute.xlu0 %4148 }
 0x400   : > { %11562 = vst [vmem:[#allocation145_spill] sm:$0xff] %v10034_v24 }
 0x401   : > { %4851 = vrot.lane.b32.xlu1 %v11564_v26, %s7304_s23  ;;  %v11566_v26 = vld [vmem:[#allocation5_spill] sm:$0xff] }
 0x402   : > { %4326 = vrot.lane.b32.xlu0 %v11501_v60, %s7306_s10  ;;  %v10055_v19 = vpack.i.bf16 %v11566_v26, %v11434_v7 }
 0x403   : > { %v10043_v1 = vpop.permute.xlu1 %4181 }
 0x404   : > { %v3947_v56 = vpop.permute.xlu0 %3946  ;;  %11567 = vst [vmem:[#allocation159_spill] sm:$0xff] %v10055_v19 }
 0x405   : > { %4213 = vrot.lane.b32.xlu1 %v11565_v27, %s7306_s10 }
 0x406   : > { %5060 = vrot.lane.b32.xlu0 %v11550_v31, %s7305_s28  ;;  %v11570_v31 = vld [vmem:[#allocation21_spill] sm:$0xff] }
 0x407   : > { %v4151_v12 = vpop.permute.xlu1 %4150 }
 0x408   : > { %v10049_v24 = vpop.permute.xlu0 %4028 }
 0x409   : > { %5101 = vrot.lane.b32.xlu1 %v11556_v37, %s7306_s10  ;;  %v4502_v37 = vsel %vm4340_vm15, %v9442_v14, %v10049_v24 }
 0x40a   : > { %4893 = vrot.lane.b32.xlu0 %v11568_v9, %s7305_s28 }
 0x40b   : > { %v10060_v2 = vpop.permute.xlu1 %4303 }
 0x40c   : > { %v10062_v27 = vpop.permute.xlu0 %4334 }
 0x40d   : > { %11569 = vst [vmem:[#allocation78_spill] sm:$0xff] %v10062_v27  ;;  %6999 = vrot.lane.b32.xlu1 %v10055_v19, %s7304_s23  ;;  %v4499_v19 = vsel %vm4340_vm15, %v9421_v59, %v9987_v5  ;;  %v11572_v27 = vld [vmem:[#allocation7_spill] sm:$0xff] }
 0x40e   : > { %4938 = vrot.lane.b32.xlu0 %v11570_v31, %s7306_s10  ;;  %v4405_v31 = vsel %vm4373_vm1, %v4372_v3, %v3770_v30  ;;  %v4532_v43 = vsel %vm4373_vm1, %v4499_v19, %v10017_v40  ;;  %v4370_v30 = vsel %vm4340_vm15, %v8944_v50, %v3655_v23  ;;  %v11574_v19 = vld [vmem:[#allocation121_spill] sm:$0xff] }
 0x40f   : > { %v10071_v7 = vpop.permute.xlu1 %4070  ;;  %v10090_v52 = vsel %vm4406_vm2, %v4405_v31, %v3947_v56  ;;  %v4578_v59 = vsel %vm4406_vm2, %v4532_v43, %v10028_v10  ;;  %v11575_v56 = vld [vmem:[#allocation8_spill] sm:$0xff]  ;;  %v4403_v50 = vsel %vm4373_vm1, %v4370_v30, %v9952_v49 }
 0x410   : > { %11571 = vst [vmem:[#allocation186_spill] sm:$0xff] %v10071_v7  ;;  %v4534_v9 = vsel %vm4373_vm1, %v4502_v37, %v10071_v7  ;;  %v10077_v29 = vpop.permute.xlu0 %4106  ;;  %v11573_v37 = vld [vmem:[#allocation151_spill] sm:$0xff] }
 0x411   : > { %4885 = vrot.lane.b32.xlu1 %v11572_v27, %s7304_s23  ;;  %v4581_v14 = vsel %vm4406_vm2, %v4534_v9, %v10077_v29  ;;  %v11576_v9 = vrot.slane %v11566_v26, 1 }
 0x412   : > { %4256 = vrot.lane.b32.xlu0 %v11573_v37, %s7304_s23  ;;  %6092 = vmatprep.subr.bf16.mxu0 %v4581_v14  ;;  %v4496_v14 = vsel %vm4340_vm15, %v9752_v28, %v9989_v16  ;;  %v10132_v16 = vrot.slane %v9635_v54, 1 }
 0x413   : > { %v4269_v7 = vpop.permute.xlu1 %4268  ;;  %6093 = vmatpush2.bf16.xpose.msra.mxu0 %v10090_v52  ;;  %v10104_v31 = vpack.i.bf16 %v11576_v9, %v11575_v56  ;;  %v4530_v56 = vsel %vm4373_vm1, %v4496_v14, %v9979_v63  ;;  %v4228_v9 = vrot.slane %v11439_v58, 1  ;;  %v6997_v14 = vunpack.i.h.bf16 %v11440_v13 }
 0x414   : > { %v4184_v3 = vpop.permute.xlu0 %4183  ;;  %6094 = vmatprep.subr.bf16.mxu0 %v4578_v59  ;;  %v10121_v59 = vsel %vm4406_vm2, %v4403_v50, %v9966_v36  ;;  %v4575_v49 = vsel %vm4406_vm2, %v4530_v56, %v9997_v61  ;;  %v4493_v50 = vsel %vm4340_vm15, %v9868_v55, %v9890_v25  ;;  %v4368_v56 = vsel %vm4340_vm15, %v8880_v33, %v9907_v22  ;;  %v11578_v25 = vld [vmem:[#allocation9_spill] sm:$0xff] }
 0x415   : > { %4136 = vrot.lane.b32.xlu1 %v11574_v19, %s7304_s23  ;;  %11577 = vst [vmem:[#allocation138_spill] sm:$0xff] %v10121_v59  ;;  %v4528_v63 = vsel %vm4373_vm1, %v4493_v50, %v9935_v4  ;;  %v4755_v13 = vsel %vm4340_vm15, %v9629_v47, %v4269_v7  ;;  %v4630_v22 = vsel %vm4340_vm15, %v9653_v34, %v4151_v12 }
 0x416   : > { %5094 = vrot.lane.b32.xlu0 %v11572_v27, %s7305_s28  ;;  %v5986_v7 = vcombine.high %v9917_v38, %v9917_v38  ;;  %v4572_v12 = vsel %vm4406_vm2, %v4528_v63, %v9968_v57 }
 0x417   : > { %v10113_v23 = vpop.permute.xlu1 %4223 }
 0x418   : > { %v4337_v43 = vpop.permute.xlu0 %4336  ;;  %v10186_v38 = vrot.slane %v5986_v7, %v9912_v11 }
 0x419   : > { %7004 = vrot.lane.b32.xlu1 %v10104_v31, %s7305_s28 }
 0x41a   : > { %4291 = vrot.lane.b32.xlu0 %v10020_v17, %s7305_s28  ;;  %v6002_v63 = vcombine.high %v10186_v38, %v10186_v38 }
 0x41b   : > { %v10125_v28 = vpop.permute.xlu1 %4264  ;;  %6095 = vmatpush2.bf16.xpose.msra.mxu0 %v10121_v59  ;;  %v4401_v59 = vsel %vm4373_vm1, %v4368_v56, %v9954_v48 }
 0x41c   : > { %v4306_v30 = vpop.permute.xlu0 %4305  ;;  %6096 = vmatprep.subr.bf16.mxu0 %v4575_v49  ;;  %v10147_v49 = vsel %vm3690_vm12, %v4228_v9, %v10132_v16  ;;  %v10161_v33 = vsel %vm4406_vm2, %v4401_v59, %v9981_v20  ;;  %v4662_v9 = vsel %vm4373_vm1, %v4630_v22, %v4184_v3  ;;  %v11579_v3 = vld [vmem:[#allocation42_spill] sm:$0xff]  ;;  %6149 = vmatprep.mubr.bf16.mxu1 %v6002_v63  ;;  %v11588_v63 = vld [vmem:[#allocation49_spill] sm:$0xff] }
 0x41d   : > { %4169 = vrot.lane.b32.xlu1 %v11557_v62, %s7305_s28  ;;  %v11580_v22 = vld [vmem:[#allocation10_spill] sm:$0xff] }
 0x41e   : > { %7009 = vrot.lane.b32.xlu0 %v10104_v31, %s7306_s10 }
 0x41f   : > { %v4226_v36 = vpop.permute.xlu1 %4225 }
 0x420   : > { %v4271_v61 = vpop.permute.xlu0 %4270  ;;  %v4709_v59 = vsel %vm4406_vm2, %v4662_v9, %v4226_v36  ;;  %v4490_v36 = vsel %vm4340_vm15, %v9973_v44, %v9892_v18  ;;  %v11581_v44 = vld [vmem:[#allocation163_spill] sm:$0xff]  ;;  %v11666_v18 = vld [vmem:[#allocation29_spill] sm:$0xff] }
 0x421   : > { %v4758_v55 = vsel %vm4340_vm15, %v10147_v49, %v4271_v61  ;;  %4887 = vrot.lane.b32.xlu1 %v11578_v25, %s7304_s23  ;;  %v4366_v61 = vsel %vm4340_vm15, %v11501_v60, %v9937_v8  ;;  %v4788_v60 = vsel %vm4373_vm1, %v4755_v13, %v10060_v2  ;;  %v5276_v2 = vsel %vm4340_vm15, %v11579_v3, %v9108_v45  ;;  %v11589_v3 = vld [vmem:[#allocation200_spill] sm:$0xff] }
 0x422   : > { %4324 = vrot.lane.b32.xlu0 %v11540_v46, %s7306_s10  ;;  %v4790_v48 = vsel %vm4373_vm1, %v4758_v55, %v4306_v30  ;;  %v4834_v8 = vsel %vm4406_vm2, %v4788_v60, %v4337_v43  ;;  %v5352_v43 = vsel %vm4373_vm1, %v5276_v2, %v9166_v0  ;;  %v4752_v45 = vsel %vm4340_vm15, %v9485_v51, %v10026_v21 }
 0x423   : > { %v10174_v50 = vpop.permute.xlu1 %4299  ;;  %6097 = vmatpush2.bf16.xpose.msra.mxu0 %v10161_v33  ;;  %v4837_v20 = vsel %vm4406_vm2, %v4790_v48, %v6997_v14  ;;  %v4399_v14 = vsel %vm4373_vm1, %v4366_v61, %v9824_v42  ;;  %v5403_v55 = vsel %vm4406_vm2, %v5352_v43, %v9191_v35  ;;  %v4627_v42 = vsel %vm4340_vm15, %v9508_v15, %v10036_v53  ;;  %v11590_v43 = vld [vmem:[#allocation74_spill] sm:$0xff] }
 0x424   : > { %6133 = vmatprep.subr.bf16.mxu1 %v4837_v20  ;;  %v10181_v30 = vpop.permute.xlu0 %4144  ;;  %6098 = vmatprep.subr.bf16.mxu0 %v4572_v12  ;;  %v10221_v0 = vsel %vm4406_vm2, %v4399_v14, %v9855_v39  ;;  %v4526_v35 = vsel %vm4373_vm1, %v4490_v36, %v9874_v6  ;;  %v4660_v51 = vsel %vm4373_vm1, %v4627_v42, %v10043_v1  ;;  %v11583_v39 = vld [vmem:[#allocation147_spill] sm:$0xff]  ;;  %v5550_v9 = vshll.u32 %v5403_v55, 16  ;;  %v11584_v20 = vld [vmem:[#allocation54_spill] sm:$0xff]  ;;  %v11591_v42 = vld [vmem:[#allocation160_spill] sm:$0xff] }
 0x425   : > { %6134 = vmatpush2.bf16.xpose.msra.mxu1 %v4709_v59  ;;  %5096 = vrot.lane.b32.xlu1 %v11578_v25, %s7305_s28  ;;  %11582 = vst [vmem:[#allocation45_spill] sm:$0xff] %v10221_v0  ;;  %v4569_v53 = vsel %vm4406_vm2, %v4526_v35, %v9909_v41  ;;  %v4706_v48 = vsel %vm4406_vm2, %v4660_v51, %v10113_v23  ;;  %v11585_v1 = vld [vmem:[#allocation78_spill] sm:$0xff]  ;;  %v11586_v59 = vld [vmem:[#allocation159_spill] sm:$0xff]  ;;  %v11592_v35 = vld [vmem:[#allocation64_spill] sm:$0xff] }
 0x426   : > { %4972 = vrot.lane.b32.xlu0 %v11543_v32, %s7306_s10  ;;  %6135 = vmatprep.subr.bf16.mxu1 %v4834_v8  ;;  %v4786_v61 = vsel %vm4373_vm1, %v4752_v45, %v11583_v39  ;;  %v11587_v8 = vld [vmem:[#allocation72_spill] sm:$0xff]  ;;  %v4624_v2 = vsel %vm4340_vm15, %v11589_v3, %v11588_v63  ;;  %v5552_v14 = vrot.slane %v5550_v9, 1  ;;  %v4487_v45 = vsel %vm4340_vm15, %v10020_v17, %v11590_v43  ;;  %v11597_v17 = vld [vmem:[#allocation158_spill] sm:$0xff] }
 0x427   : > { %v10203_v56 = vpop.permute.xlu1 %4177  ;;  %v4831_v12 = vsel %vm4406_vm2, %v4786_v61, %v11585_v1  ;;  %v4364_v23 = vsel %vm4340_vm15, %v11540_v46, %v11587_v8  ;;  %v4524_v51 = vsel %vm4373_vm1, %v4487_v45, %v11592_v35  ;;  %v11593_v46 = vld [vmem:[#allocation95_spill] sm:$0xff]  ;;  %v4658_v9 = vsel %vm4373_vm1, %v4624_v2, %v11597_v17  ;;  %v11598_v1 = vld [vmem:[#allocation198_spill] sm:$0xff]  ;;  %v11600_v43 = vld [vmem:[#allocation156_spill] sm:$0xff] }
 0x428   : > { %v5021_v13 = vpop.permute.xlu0 %5020  ;;  %v11602_v35 = vld [vmem:[#allocation73_spill] sm:$0xff]  ;;  %v11605_v17 = vld [vmem:[#allocation48_spill] sm:$0xff] }
 0x429   : > { %4974 = vrot.lane.b32.xlu1 %v11580_v22, %s7306_s10 }
 0x42a   : > { %4211 = vrot.lane.b32.xlu0 %v11581_v44, %s7306_s10  ;;  %v4397_v44 = vsel %vm4373_vm1, %v4364_v23, %v11591_v42  ;;  %v11599_v23 = vld [vmem:[#allocation58_spill] sm:$0xff] }
 0x42b   : > { %v10227_v21 = vpop.permute.xlu1 %4857  ;;  %6099 = vmatpush2.bf16.xpose.msra.mxu0 %v10221_v0  ;;  %v4566_v63 = vsel %vm4406_vm2, %v4524_v51, %v11599_v23 }
 0x42c   : > { %v4333_v7 = vpop.permute.xlu0 %4332  ;;  %6100 = vmatprep.subr.bf16.mxu0 %v4569_v53  ;;  %v10259_v53 = vsel %vm4406_vm2, %v4397_v44, %v11593_v46  ;;  %v11604_v46 = vld [vmem:[#allocation97_spill] sm:$0xff] }
 0x42d   : > { %6136 = vmatpush2.bf16.xpose.msra.mxu1 %v4706_v48  ;;  %4881 = vrot.lane.b32.xlu1 %v11584_v20, %s7304_s23  ;;  %11594 = vst [vmem:[#allocation149_spill] sm:$0xff] %v10259_v53  ;;  %v11595_v48 = vld [vmem:[#allocation41_spill] sm:$0xff] }
 0x42e   : > { %7014 = vrot.lane.b32.xlu0 %v11586_v59, %s7304_s23  ;;  %6137 = vmatprep.subr.bf16.mxu1 %v4831_v12  ;;  %v11596_v39 = vrot.slane %v11595_v48, 7  ;;  %v4749_v12 = vsel %vm4340_vm15, %v11598_v1, %v10125_v28 }
 0x42f   : > { %v4220_v60 = vpop.permute.xlu1 %4219  ;;  %v4784_v2 = vsel %vm4373_vm1, %v4749_v12, %v10174_v50  ;;  %v11607_v12 = vld [vmem:[#allocation65_spill] sm:$0xff] }
 0x430   : > { %v5067_v36 = vpop.permute.xlu0 %5066  ;;  %v5279_v61 = vsel %vm4340_vm15, %v11596_v39, %v5021_v13  ;;  %v4362_v13 = vsel %vm4340_vm15, %v11557_v62, %v11600_v43  ;;  %v4828_v51 = vsel %vm4406_vm2, %v4784_v2, %v4333_v7  ;;  %v11603_v62 = vld [vmem:[#allocation67_spill] sm:$0xff]  ;;  %v11606_v7 = vld [vmem:[#allocation202_spill] sm:$0xff] }
 0x431   : > { %4923 = vrot.lane.b32.xlu1 %v10147_v49, %s7305_s28  ;;  %v5354_v59 = vsel %vm4373_vm1, %v5279_v61, %v5067_v36  ;;  %v5548_v36 = vshrl.u32 %v5403_v55, 16  ;;  %v4484_v50 = vsel %vm4340_vm15, %v11574_v19, %v11603_v62  ;;  %v4395_v48 = vsel %vm4373_vm1, %v4362_v13, %v11604_v46  ;;  %v11617_v46 = vld [vmem:[#allocation99_spill] sm:$0xff] }
 0x432   : > { %5090 = vrot.lane.b32.xlu0 %v11572_v27, %s7305_s28  ;;  %v11601_v27 = vld [vmem:[#allocation145_spill] sm:$0xff]  ;;  %v4621_v19 = vsel %vm4340_vm15, %v11606_v7, %v10181_v30  ;;  %v11610_v30 = vld [vmem:[#allocation84_spill] sm:$0xff] }
 0x433   : > { %v5108_v8 = vpop.permute.xlu1 %5107  ;;  %6101 = vmatpush2.bf16.xpose.msra.mxu0 %v10259_v53  ;;  %v4703_v45 = vsel %vm4406_vm2, %v4658_v9, %v11601_v27  ;;  %v5553_v61 = vor.u32 %v5552_v14, %v5548_v36  ;;  %v4522_v9 = vsel %vm4373_vm1, %v4484_v50, %v11605_v17  ;;  %v11614_v36 = vld [vmem:[#allocation59_spill] sm:$0xff]  ;;  %v11616_v50 = vld [vmem:[#allocation201_spill] sm:$0xff]  ;;  %v11619_v17 = vld [vmem:[#allocation80_spill] sm:$0xff] }
 0x434   : > { %v5405_v28 = vsel %vm4406_vm2, %v5354_v59, %v5108_v8  ;;  %v10283_v42 = vpop.permute.xlu0 %4899  ;;  %6102 = vmatprep.subr.bf16.mxu0 %v4566_v63  ;;  %v11608_v59 = vld [vmem:[#allocation12_spill] sm:$0xff]  ;;  %v4656_v8 = vsel %vm4373_vm1, %v4621_v19, %v10203_v56  ;;  %v11658_v53 = vld [vmem:[#allocation211_spill] sm:$0xff] }
 0x435   : > { %v5554_v44 = vshll.u32 %v5405_v28, 16  ;;  %6138 = vmatpush2.bf16.xpose.msra.mxu1 %v4703_v45  ;;  %4883 = vrot.lane.b32.xlu1 %v11602_v35, %s7304_s23  ;;  %v10311_v14 = vsel %vm4406_vm2, %v4395_v48, %v11608_v59  ;;  %v4700_v43 = vsel %vm4406_vm2, %v4656_v8, %v4220_v60  ;;  %v11611_v45 = vld [vmem:[#allocation135_spill] sm:$0xff]  ;;  %v11612_v56 = vld [vmem:[#allocation36_spill] sm:$0xff]  ;;  %v11613_v28 = vld [vmem:[#allocation213_spill] sm:$0xff]  ;;  %v4481_v48 = vsel %vm4340_vm15, %v11617_v46, %v11616_v50 }
 0x436   : > { %7019 = vrot.lane.b32.xlu0 %v10104_v31, %s7306_s10  ;;  %6139 = vmatprep.subr.bf16.mxu1 %v4828_v51  ;;  %v5271_v2 = vsel %vm4340_vm15, %v11612_v56, %v11611_v45  ;;  %v11615_v60 = vld [vmem:[#allocation144_spill] sm:$0xff]  ;;  %v11621_v59 = vld [vmem:[#allocation94_spill] sm:$0xff]  ;;  %v11628_v46 = vld [vmem:[#allocation51_spill] sm:$0xff] }
 0x437   : > { %v5556_v39 = vrot.slane %v5554_v44, 1  ;;  %v4263_v55 = vpop.permute.xlu1 %4262  ;;  %v4360_v44 = vsel %vm4340_vm15, %v11614_v36, %v11613_v28  ;;  %v5349_v62 = vsel %vm4373_vm1, %v5271_v2, %v11615_v60  ;;  %v11624_v45 = vld [vmem:[#allocation196_spill] sm:$0xff]  ;;  %v11625_v28 = vld [vmem:[#allocation15_spill] sm:$0xff]  ;;  %v11627_v50 = vld [vmem:[#allocation210_spill] sm:$0xff] }
 0x438   : > { %v10297_v1 = vpop.permute.xlu0 %4944  ;;  %v4746_v56 = vsel %vm4340_vm15, %v11624_v45, %v4263_v55 }
 0x439   : > { %5092 = vrot.lane.b32.xlu1 %v11578_v25, %s7305_s28  ;;  %v10302_v31 = vsel %vm3465_vm11, %v5553_v61, %v5556_v39  ;;  %v11609_v25 = vld [vmem:[#allocation13_spill] sm:$0xff] }
 0x43a   : > { %4968 = vrot.lane.b32.xlu0 %v11607_v12, %s7306_s10  ;;  %v4563_v63 = vsel %vm4406_vm2, %v4522_v9, %v11609_v25  ;;  %v11618_v39 = vld [vmem:[#allocation93_spill] sm:$0xff]  ;;  %v11620_v9 = vld [vmem:[#allocation215_spill] sm:$0xff]  ;;  %v11622_v25 = vld [vmem:[#allocation52_spill] sm:$0xff] }
 0x43b   : > { %v4298_v23 = vpop.permute.xlu1 %4297  ;;  %6103 = vmatpush2.bf16.xpose.msra.mxu0 %v10311_v14  ;;  %v4393_v61 = vsel %vm4373_vm1, %v4360_v44, %v11618_v39  ;;  %v4520_v19 = vsel %vm4373_vm1, %v4481_v48, %v11620_v9  ;;  %v11626_v44 = vld [vmem:[#allocation141_spill] sm:$0xff]  ;;  %v4358_v48 = vsel %vm4340_vm15, %v11628_v46, %v11627_v50 }
 0x43c   : > { %v4143_v13 = vpop.permute.xlu0 %4142  ;;  %6104 = vmatprep.subr.bf16.mxu0 %v4563_v63  ;;  %v10342_v8 = vsel %vm4406_vm2, %v4393_v61, %v11621_v59  ;;  %v11623_v63 = vld [vmem:[#allocation134_spill] sm:$0xff]  ;;  %v4560_v36 = vsel %vm4406_vm2, %v4520_v19, %v11625_v28  ;;  %v5400_v60 = vsel %vm4406_vm2, %v5349_v62, %v11626_v44  ;;  %v4782_v39 = vsel %vm4373_vm1, %v4746_v56, %v4298_v23  ;;  %v11630_v59 = vld [vmem:[#allocation181_spill] sm:$0xff] }
 0x43d   : > { %6140 = vmatpush2.bf16.xpose.msra.mxu1 %v4700_v43  ;;  %4970 = vrot.lane.b32.xlu1 %v11610_v30, %s7306_s10  ;;  %v5161_v43 = vsel %vm4340_vm15, %v11623_v63, %v11622_v25  ;;  %v5664_v19 = vshll.u32 %v10311_v14, 16  ;;  %v4618_v62 = vsel %vm4340_vm15, %v11630_v59, %v4143_v13  ;;  %v5519_v23 = vshll.u32 %v5400_v60, 16  ;;  %v11631_v25 = vld [vmem:[#allocation185_spill] sm:$0xff] }
 0x43e   : > { %4925 = vrot.lane.b32.xlu0 %v10132_v16, %s7305_s28  ;;  %v4391_v63 = vsel %vm4373_vm1, %v4358_v48, %v11631_v25 }
 0x43f   : > { %v4176_v27 = vpop.permute.xlu1 %4175  ;;  %v5666_v13 = vrot.slane %v5664_v19, 1  ;;  %v5521_v48 = vrot.slane %v5519_v23, 1  ;;  %v5517_v19 = vshrl.u32 %v5400_v60, 16  ;;  %v5633_v23 = vshll.u32 %v10342_v8, 16 }
 0x440   : > { %v5019_v51 = vpop.permute.xlu0 %5018 }
 0x441   : > { %4877 = vrot.lane.b32.xlu1 %v11619_v17, %s7304_s23  ;;  %v11629_v17 = vld [vmem:[#allocation143_spill] sm:$0xff] }
 0x442   : > { %5040 = vrot.lane.b32.xlu0 %v11439_v58, %s7304_s23  ;;  %v5199_v9 = vsel %vm4373_vm1, %v5161_v43, %v11629_v17  ;;  %v11632_v43 = vld [vmem:[#allocation61_spill] sm:$0xff] }
 0x443   : > { %v10351_v2 = vpop.permute.xlu1 %4855  ;;  %6105 = vmatpush2.bf16.xpose.msra.mxu0 %v10342_v8 }
 0x444   : > { %v4331_v61 = vpop.permute.xlu0 %4330  ;;  %6106 = vmatprep.subr.bf16.mxu0 %v4560_v36  ;;  %v5237_v36 = vsel %vm4406_vm2, %v5199_v9, %v11632_v43  ;;  %v5522_v43 = vor.u32 %v5521_v48, %v5517_v19  ;;  %v11643_v48 = vld [vmem:[#allocation53_spill] sm:$0xff] }
 0x445   : > { %4919 = vrot.lane.b32.xlu1 %v9629_v47, %s7305_s28  ;;  %v4825_v55 = vsel %vm4406_vm2, %v4782_v39, %v4331_v61  ;;  %v4654_v47 = vsel %vm4373_vm1, %v4618_v62, %v4176_v27  ;;  %v11635_v27 = vld [vmem:[#allocation191_spill] sm:$0xff] }
 0x446   : > { %5086 = vrot.lane.b32.xlu0 %v11584_v20, %s7305_s28  ;;  %6141 = vmatprep.subr.bf16.mxu1 %v4825_v55  ;;  %v11633_v20 = vld [vmem:[#allocation34_spill] sm:$0xff]  ;;  %v10387_v46 = vsel %vm4406_vm2, %v4391_v63, %v11635_v27  ;;  %v5662_v55 = vshrl.u32 %v10311_v14, 16  ;;  %v11637_v63 = vld [vmem:[#allocation136_spill] sm:$0xff] }
 0x447   : > { %v4218_v45 = vpop.permute.xlu1 %4217  ;;  %v11634_v44 = vrot.slane %v11633_v20, 7 }
 0x448   : > { %v4697_v56 = vsel %vm4406_vm2, %v4654_v47, %v4218_v45  ;;  %v5065_v28 = vpop.permute.xlu0 %5064  ;;  %v5667_v25 = vor.u32 %v5666_v13, %v5662_v55  ;;  %v11638_v47 = vld [vmem:[#allocation205_spill] sm:$0xff]  ;;  %v11642_v13 = vld [vmem:[#allocation83_spill] sm:$0xff] }
 0x449   : > { %5127 = vrot.lane.b32.xlu1 %v10147_v49, %s7306_s10  ;;  %6142 = vmatpush2.bf16.xpose.msra.mxu1 %v4697_v56  ;;  %v5274_v50 = vsel %vm4340_vm15, %v11634_v44, %v5019_v51  ;;  %v5668_v49 = vshll.u32 %v5237_v36, 16  ;;  %v11636_v51 = vld [vmem:[#allocation170_spill] sm:$0xff]  ;;  %v11639_v45 = vld [vmem:[#allocation113_spill] sm:$0xff]  ;;  %v11640_v36 = vld [vmem:[#allocation107_spill] sm:$0xff] }
 0x44a   : > { %5042 = vrot.lane.b32.xlu0 %v9635_v54, %s7304_s23  ;;  %v5351_v39 = vsel %vm4373_vm1, %v5274_v50, %v5065_v28  ;;  %v5159_v14 = vsel %vm4340_vm15, %v11639_v45, %v11638_v47  ;;  %v11641_v50 = vld [vmem:[#allocation153_spill] sm:$0xff] }
 0x44b   : > { %v5106_v61 = vpop.permute.xlu1 %5105  ;;  %6107 = vmatpush2.bf16.xpose.msra.mxu0 %v10387_v46  ;;  %v5197_v60 = vsel %vm4373_vm1, %v5159_v14, %v11640_v36  ;;  %v5670_v20 = vrot.slane %v5668_v49, 1  ;;  %v11645_v47 = vld [vmem:[#allocation17_spill] sm:$0xff]  ;;  %v11649_v36 = vld [vmem:[#allocation32_spill] sm:$0xff] }
 0x44c   : > { %v5402_v17 = vsel %vm4406_vm2, %v5351_v39, %v5106_v61  ;;  %v10393_v9 = vpop.permute.xlu0 %4897  ;;  %6158 = vmatprep.subr.bf16.mxu0 %v11636_v51  ;;  %v5235_v27 = vsel %vm4406_vm2, %v5197_v60, %v11641_v50  ;;  %v5635_v61 = vrot.slane %v5633_v23, 1  ;;  %v5631_v51 = vshrl.u32 %v10342_v8, 16  ;;  %v11647_v14 = vld [vmem:[#allocation85_spill] sm:$0xff]  ;;  %v11650_v60 = vld [vmem:[#allocation199_spill] sm:$0xff] }
 0x44d   : > { %v5523_v62 = vshll.u32 %v5402_v17, 16  ;;  %4964 = vrot.lane.b32.xlu1 %v9653_v34, %s7306_s10  ;;  %v5671_v55 = vsel %vm3465_vm11, %v5667_v25, %v5670_v20  ;;  %v5637_v17 = vshll.u32 %v5235_v27, 16  ;;  %v5602_v23 = vshll.u32 %v10387_v46, 16 }
 0x44e   : > { %4879 = vrot.lane.b32.xlu0 %v11637_v63, %s7304_s23  ;;  %v5636_v45 = vor.u32 %v5635_v61, %v5631_v51  ;;  %v11651_v61 = vld [vmem:[#allocation127_spill] sm:$0xff]  ;;  %v11653_v51 = vld [vmem:[#allocation206_spill] sm:$0xff] }
 0x44f   : > { %v5525_v56 = vrot.slane %v5523_v62, 1  ;;  %v4261_v28 = vpop.permute.xlu1 %4260  ;;  %v11644_v62 = vld [vmem:[#allocation57_spill] sm:$0xff]  ;;  %v5639_v50 = vrot.slane %v5637_v17, 1 }
 0x450   : > { %v10406_v44 = vpop.permute.xlu0 %4942 }
 0x451   : > { %4921 = vrot.lane.b32.xlu1 %v11642_v13, %s7305_s28  ;;  %v10413_v39 = vsel %vm3465_vm11, %v5522_v43, %v5525_v56  ;;  %v11648_v43 = vld [vmem:[#allocation117_spill] sm:$0xff] }
 0x452   : > { %5088 = vrot.lane.b32.xlu0 %v11602_v35, %s7305_s28  ;;  %6109 = vmatmul.mubr.bf16.vlgmr.msra.gmra.mxu0 %v11643_v48  ;;  %v11646_v35 = vld [vmem:[#allocation179_spill] sm:$0xff]  ;;  %v5266_v8 = vsel %vm4340_vm15, %v11649_v36, %v11648_v43  ;;  %v11655_v43 = vld [vmem:[#allocation178_spill] sm:$0xff]  ;;  %v11656_v36 = vld [vmem:[#allocation125_spill] sm:$0xff] }
 0x453   : > { %v4296_v49 = vpop.permute.xlu1 %4295  ;;  %6159 = vmatpush1.bf16.xpose.msra.mxu0 %v5671_v55  ;;  %v5157_v25 = vsel %vm4340_vm15, %v11647_v14, %v11646_v35  ;;  %v5346_v48 = vsel %vm4373_vm1, %v5266_v8, %v11651_v61  ;;  %v11652_v55 = vld [vmem:[#allocation207_spill] sm:$0xff]  ;;  %v11654_v35 = vld [vmem:[#allocation20_spill] sm:$0xff]  ;;  %v5640_v14 = vsel %vm3465_vm11, %v5636_v45, %v5639_v50 }
 0x454   : > { %v4141_v19 = vpop.permute.xlu0 %4140  ;;  %6160 = vmatprep.subr.bf16.mxu0 %v11644_v62  ;;  %v5195_v20 = vsel %vm4373_vm1, %v5157_v25, %v11650_v60  ;;  %v5604_v62 = vrot.slane %v5602_v23, 1  ;;  %v4743_v25 = vsel %vm4340_vm15, %v11655_v43, %v4261_v28  ;;  %v5397_v8 = vsel %vm4406_vm2, %v5346_v48, %v11656_v36  ;;  %v11659_v28 = vld [vmem:[#allocation203_spill] sm:$0xff]  ;;  %v11662_v48 = vld [vmem:[#allocation62_spill] sm:$0xff] }
 0x455   : > { %4966 = vrot.lane.b32.xlu1 %v11645_v47, %s7306_s10  ;;  %v4780_v61 = vsel %vm4373_vm1, %v4743_v25, %v4296_v49  ;;  %v5571_v50 = vshll.u32 %v11659_v28, 16  ;;  %v11661_v49 = vld [vmem:[#allocation154_spill] sm:$0xff] }
 0x456   : > { %5129 = vrot.lane.b32.xlu0 %v10132_v16, %s7306_s10  ;;  %v5233_v16 = vsel %vm4406_vm2, %v5195_v20, %v11652_v55  ;;  %v5600_v20 = vshrl.u32 %v10387_v46, 16  ;;  %v11657_v55 = vld [vmem:[#allocation63_spill] sm:$0xff]  ;;  %v5488_v46 = vshll.u32 %v5397_v8, 16 }
 0x457   : > { %v4174_v56 = vpop.permute.xlu1 %4173  ;;  %v5606_v60 = vshll.u32 %v5233_v16, 16  ;;  %v5155_v16 = vsel %vm4340_vm15, %v11662_v48, %v11661_v49  ;;  %v11667_v49 = vrot.slane %v11666_v18, 7  ;;  %v5486_v18 = vshrl.u32 %v5397_v8, 16 }
 0x458   : > { %v5017_v27 = vpop.permute.xlu0 %5016  ;;  %v5605_v43 = vor.u32 %v5604_v62, %v5600_v20 }
 0x459   : > { %4875 = vrot.lane.b32.xlu1 %v11653_v51, %s7304_s23 }
 0x45a   : > { %5038 = vrot.lane.b32.xlu0 %v11654_v35, %s7304_s23 }
 0x45b   : > { %v10445_v17 = vpop.permute.xlu1 %4853  ;;  %6161 = vmatpush1.bf16.xpose.msra.mxu0 %v5640_v14  ;;  %v11660_v14 = vld [vmem:[#allocation184_spill] sm:$0xff] }
 0x45c   : > { %v4329_v23 = vpop.permute.xlu0 %4328  ;;  %6162 = vmatprep.subr.bf16.mxu0 %v11657_v55  ;;  %v4615_v41 = vsel %vm4340_vm15, %v11660_v14, %v4141_v19  ;;  %v11663_v55 = vld [vmem:[#allocation161_spill] sm:$0xff]  ;;  %v11664_v19 = vld [vmem:[#allocation180_spill] sm:$0xff] }
 0x45d   : > { %4917 = vrot.lane.b32.xlu1 %v11658_v53, %s7305_s28  ;;  %v4822_v45 = vsel %vm4406_vm2, %v4780_v61, %v4329_v23  ;;  %v4652_v25 = vsel %vm4373_vm1, %v4615_v41, %v4174_v56  ;;  %v5193_v61 = vsel %vm4373_vm1, %v5155_v16, %v11663_v55  ;;  %v5608_v23 = vrot.slane %v5606_v60, 1 }
 0x45e   : > { %5084 = vrot.lane.b32.xlu0 %v11637_v63, %s7305_s28  ;;  %6143 = vmatprep.subr.bf16.mxu1 %v4822_v45  ;;  %v5231_v6 = vsel %vm4406_vm2, %v5193_v61, %v11664_v19  ;;  %v11665_v63 = vld [vmem:[#allocation212_spill] sm:$0xff]  ;;  %v5573_v45 = vrot.slane %v5571_v50, 1  ;;  %v5269_v41 = vsel %vm4340_vm15, %v11667_v49, %v5017_v27  ;;  %v5490_v60 = vrot.slane %v5488_v46, 1  ;;  %v11669_v27 = vld [vmem:[#allocation43_spill] sm:$0xff] }
 0x45f   : > { %v4216_v36 = vpop.permute.xlu1 %4215  ;;  %v5609_v56 = vsel %vm3465_vm11, %v5605_v43, %v5608_v23  ;;  %v11668_v61 = vld [vmem:[#allocation208_spill] sm:$0xff] }
 0x460   : > { %v4694_v62 = vsel %vm4406_vm2, %v4652_v25, %v4216_v36  ;;  %v5063_v20 = vpop.permute.xlu0 %5062  ;;  %v5575_v25 = vshll.u32 %v5231_v6, 16  ;;  %v5569_v36 = vshrl.u32 %v11659_v28, 16  ;;  %v11670_v43 = vld [vmem:[#allocation188_spill] sm:$0xff]  ;;  %v5491_v19 = vor.u32 %v5490_v60, %v5486_v18 }
 0x461   : > { %4962 = vrot.lane.b32.xlu1 %v11665_v63, %s7306_s10  ;;  %6144 = vmatpush2.bf16.xpose.msra.mxu1 %v4694_v62  ;;  %v5348_v48 = vsel %vm4373_vm1, %v5269_v41, %v5063_v20  ;;  %v11671_v28 = vld [vmem:[#allocation204_spill] sm:$0xff]  ;;  %v11672_v41 = vld [vmem:[#allocation209_spill] sm:$0xff] }
 0x462   : > { %5125 = vrot.lane.b32.xlu0 %v11642_v13, %s7306_s10  ;;  %v5153_v13 = vsel %vm4340_vm15, %v11669_v27, %v10227_v21  ;;  %v5574_v46 = vor.u32 %v5573_v45, %v5569_v36  ;;  %v5577_v49 = vrot.slane %v5575_v25, 1  ;;  %v5540_v21 = vshll.u32 %v11672_v41, 16  ;;  %v11674_v25 = vld [vmem:[#allocation35_spill] sm:$0xff] }
 0x463   : > { %v5104_v16 = vpop.permute.xlu1 %5103  ;;  %6163 = vmatpush1.bf16.xpose.msra.mxu0 %v5609_v56  ;;  %v5191_v6 = vsel %vm4373_vm1, %v5153_v13, %v10283_v42  ;;  %v5538_v18 = vshrl.u32 %v11672_v41, 16 }
 0x464   : > { %v5399_v55 = vsel %vm4406_vm2, %v5348_v48, %v5104_v16  ;;  %v4896_v50 = vpop.permute.xlu0 %4895  ;;  %6164 = vmatprep.subr.bf16.mxu0 %v11668_v61  ;;  %v5229_v23 = vsel %vm4406_vm2, %v5191_v6, %v10297_v1  ;;  %v11673_v48 = vld [vmem:[#allocation193_spill] sm:$0xff]  ;;  %v5578_v16 = vsel %vm3465_vm11, %v5574_v46, %v5577_v49  ;;  %v5542_v36 = vrot.slane %v5540_v21, 1  ;;  %v11675_v61 = vld [vmem:[#allocation195_spill] sm:$0xff]  ;;  %v11678_v6 = vld [vmem:[#allocation214_spill] sm:$0xff] }
 0x465   : > { %v5492_v62 = vshll.u32 %v5399_v55, 16  ;;  %4873 = vrot.lane.b32.xlu1 %v11670_v43, %s7304_s23  ;;  %v5544_v42 = vshll.u32 %v5229_v23, 16  ;;  %v5151_v55 = vsel %vm4340_vm15, %v11674_v25, %v10351_v2  ;;  %v11677_v46 = vld [vmem:[#allocation25_spill] sm:$0xff]  ;;  %v5509_v23 = vshll.u32 %v11678_v6, 16  ;;  %v11679_v49 = vld [vmem:[#allocation114_spill] sm:$0xff] }
 0x466   : > { %5036 = vrot.lane.b32.xlu0 %v11671_v28, %s7304_s23 }
 0x467   : > { %v5494_v20 = vrot.slane %v5492_v62, 1  ;;  %v4259_v8 = vpop.permute.xlu1 %4258  ;;  %v5546_v27 = vrot.slane %v5544_v42, 1  ;;  %v11676_v62 = vld [vmem:[#allocation104_spill] sm:$0xff]  ;;  %v11682_v42 = vld [vmem:[#allocation177_spill] sm:$0xff] }
 0x468   : > { %v4941_v56 = vpop.permute.xlu0 %4940  ;;  %v5261_v2 = vsel %vm4340_vm15, %v11677_v46, %v11676_v62 }
 0x469   : > { %4915 = vrot.lane.b32.xlu1 %v11673_v48, %s7305_s28  ;;  %v10496_v45 = vsel %vm3465_vm11, %v5491_v19, %v5494_v20  ;;  %v5543_v20 = vor.u32 %v5542_v36, %v5538_v18  ;;  %v5343_v41 = vsel %vm4373_vm1, %v5261_v2, %v11679_v49  ;;  %v5511_v18 = vrot.slane %v5509_v23, 1 }
 0x46a   : > { %5082 = vrot.lane.b32.xlu0 %v11653_v51, %s7305_s28  ;;  %v5189_v51 = vsel %vm4373_vm1, %v5151_v55, %v10393_v9  ;;  %v11680_v9 = vld [vmem:[#allocation190_spill] sm:$0xff]  ;;  %v11683_v55 = vld [vmem:[#allocation108_spill] sm:$0xff]  ;;  %v5507_v2 = vshrl.u32 %v11678_v6, 16 }
 0x46b   : > { %v4294_v1 = vpop.permute.xlu1 %4293  ;;  %6165 = vmatpush1.bf16.xpose.msra.mxu0 %v5578_v16  ;;  %v5227_v13 = vsel %vm4406_vm2, %v5189_v51, %v10406_v44  ;;  %v5547_v44 = vsel %vm3465_vm11, %v5543_v20, %v5546_v27  ;;  %v4740_v16 = vsel %vm4340_vm15, %v11682_v42, %v4259_v8  ;;  %v5394_v36 = vsel %vm4406_vm2, %v5343_v41, %v11683_v55  ;;  %v11685_v27 = vld [vmem:[#allocation194_spill] sm:$0xff]  ;;  %v11688_v55 = vld [vmem:[#allocation23_spill] sm:$0xff] }
 0x46c   : > { %v4139_v60 = vpop.permute.xlu0 %4138  ;;  %6166 = vmatprep.subr.bf16.mxu0 %v10302_v31  ;;  %v5513_v21 = vshll.u32 %v5227_v13, 16  ;;  %v4778_v51 = vsel %vm4373_vm1, %v4740_v16, %v4294_v1  ;;  %v11684_v13 = vld [vmem:[#allocation26_spill] sm:$0xff] }
 0x46d   : > { %4960 = vrot.lane.b32.xlu1 %v11675_v61, %s7306_s10  ;;  %v5149_v46 = vsel %vm4340_vm15, %v11684_v13, %v10445_v17  ;;  %v4612_v1 = vsel %vm4340_vm15, %v11573_v37, %v4139_v60  ;;  %v11686_v42 = vld [vmem:[#allocation22_spill] sm:$0xff] }
 0x46e   : > { %5123 = vrot.lane.b32.xlu0 %v11658_v53, %s7306_s10  ;;  %v11681_v53 = vld [vmem:[#allocation187_spill] sm:$0xff]  ;;  %v5515_v20 = vrot.slane %v5513_v21, 1  ;;  %v5187_v49 = vsel %vm4373_vm1, %v5149_v46, %v4896_v50  ;;  %v5478_v16 = vshll.u32 %v11686_v42, 16  ;;  %v11687_v50 = vld [vmem:[#allocation197_spill] sm:$0xff] }
 0x46f   : > { %v4172_v31 = vpop.permute.xlu1 %4171  ;;  %v5225_v17 = vsel %vm4406_vm2, %v5187_v49, %v4941_v56 }
 0x470   : > { %v5015_v19 = vpop.permute.xlu0 %5014  ;;  %v4650_v23 = vsel %vm4373_vm1, %v4612_v1, %v4172_v31  ;;  %v5482_v60 = vshll.u32 %v5225_v17, 16  ;;  %v5480_v13 = vrot.slane %v5478_v16, 1  ;;  %v11693_v16 = vld [vmem:[#allocation112_spill] sm:$0xff] }
 0x471   : > { %4871 = vrot.lane.b32.xlu1 %v11680_v9, %s7304_s23 }
 0x472   : > { %5034 = vrot.lane.b32.xlu0 %v11681_v53, %s7304_s23  ;;  %v5484_v1 = vrot.slane %v5482_v60, 1 }
 0x473   : > { %v4852_v25 = vpop.permute.xlu1 %4851  ;;  %6167 = vmatpush1.bf16.xpose.msra.mxu0 %v5547_v44  ;;  %v5512_v44 = vor.u32 %v5511_v18, %v5507_v2  ;;  %v5455_v2 = vshrl.u32 %v5394_v36, 16 }
 0x474   : > { %v4327_v62 = vpop.permute.xlu0 %4326  ;;  %6168 = vmatprep.subr.bf16.mxu0 %v10413_v39  ;;  %v5457_v39 = vshll.u32 %v5394_v36, 16 }
 0x475   : > { %4913 = vrot.lane.b32.xlu1 %v11685_v27, %s7305_s28  ;;  %v4819_v8 = vsel %vm4406_vm2, %v4778_v51, %v4327_v62  ;;  %v5516_v56 = vsel %vm3465_vm11, %v5512_v44, %v5515_v20  ;;  %v11691_v20 = vld [vmem:[#allocation182_spill] sm:$0xff] }
 0x476   : > { %5080 = vrot.lane.b32.xlu0 %v11670_v43, %s7305_s28  ;;  %6145 = vmatprep.subr.bf16.mxu1 %v4819_v8  ;;  %v11689_v43 = vrot.slane %v11688_v55, 7  ;;  %v5459_v31 = vrot.slane %v5457_v39, 1  ;;  %v11692_v39 = vld [vmem:[#allocation18_spill] sm:$0xff] }
 0x477   : > { %v4214_v41 = vpop.permute.xlu1 %4213  ;;  %v5147_v17 = vsel %vm4340_vm15, %v11692_v39, %v4852_v25 }
 0x478   : > { %v4691_v6 = vsel %vm4406_vm2, %v4650_v23, %v4214_v41  ;;  %v5061_v21 = vpop.permute.xlu0 %5060  ;;  %v5264_v51 = vsel %vm4340_vm15, %v11689_v43, %v5015_v19  ;;  %v11690_v19 = vld [vmem:[#allocation167_spill] sm:$0xff]  ;;  %v5460_v44 = vor.u32 %v5459_v31, %v5455_v2 }
 0x479   : > { %4958 = vrot.lane.b32.xlu1 %v11687_v50, %s7306_s10  ;;  %6146 = vmatpush2.bf16.xpose.msra.mxu1 %v4691_v6  ;;  %v5345_v18 = vsel %vm4373_vm1, %v5264_v51, %v5061_v21 }
 0x47a   : > { %5121 = vrot.lane.b32.xlu0 %v11673_v48, %s7306_s10  ;;  %v5476_v48 = vshrl.u32 %v11686_v42, 16  ;;  %v11694_v42 = vld [vmem:[#allocation172_spill] sm:$0xff] }
 0x47b   : > { %v5102_v62 = vpop.permute.xlu1 %5101  ;;  %6169 = vmatpush1.bf16.xpose.msra.mxu0 %v5516_v56 }
 0x47c   : > { %v5396_v46 = vsel %vm4406_vm2, %v5345_v18, %v5102_v62  ;;  %v4894_v8 = vpop.permute.xlu0 %4893  ;;  %6170 = vmatprep.subr.bf16.mxu0 %v10496_v45  ;;  %v5447_v45 = vshll.u32 %v11693_v16, 16  ;;  %v5481_v36 = vor.u32 %v5480_v13, %v5476_v48  ;;  %v11695_v18 = vld [vmem:[#allocation173_spill] sm:$0xff]  ;;  %v5445_v62 = vshrl.u32 %v11693_v16, 16  ;;  %v11697_v48 = vld [vmem:[#allocation162_spill] sm:$0xff]  ;;  %v11699_v16 = vld [vmem:[#allocation4_spill] sm:$0xff] }
 0x47d   : > { %v5461_v49 = vshll.u32 %v5396_v46, 16  ;;  %4869 = vrot.lane.b32.xlu1 %v11690_v19, %s7304_s23  ;;  %v5185_v6 = vsel %vm4373_vm1, %v5147_v17, %v4894_v8 }
 0x47e   : > { %5032 = vrot.lane.b32.xlu0 %v11691_v20, %s7304_s23  ;;  %v5485_v25 = vsel %vm3465_vm11, %v5481_v36, %v5484_v1  ;;  %v5449_v56 = vrot.slane %v5447_v45, 1  ;;  %v11698_v1 = vld [vmem:[#allocation165_spill] sm:$0xff]  ;;  %v11700_v36 = vld [vmem:[#allocation171_spill] sm:$0xff] }
 0x47f   : > { %v5463_v23 = vrot.slane %v5461_v49, 1  ;;  %v10565_v41 = vpop.permute.xlu1 %6999 }
 0x480   : > { %v4939_v21 = vpop.permute.xlu0 %4938  ;;  %v5450_v8 = vor.u32 %v5449_v56, %v5445_v62  ;;  %v11702_v62 = vld [vmem:[#allocation174_spill] sm:$0xff] }
 0x481   : > { %v5223_v55 = vsel %vm4406_vm2, %v5185_v6, %v4939_v21  ;;  %4911 = vrot.lane.b32.xlu1 %v11694_v42, %s7305_s28  ;;  %v5464_v60 = vsel %vm3465_vm11, %v5460_v44, %v5463_v23  ;;  %v7001_v44 = vunpack.i.l.bf16 %v10565_v41 }
 0x482   : > { %v5451_v43 = vshll.u32 %v5223_v55, 16  ;;  %5078 = vrot.lane.b32.xlu0 %v11680_v9, %s7305_s28  ;;  %v11696_v9 = vld [vmem:[#allocation6_spill] sm:$0xff]  ;;  %v5903_v55 = vshll.u32 %v11543_v32, 16 }
 0x483   : > { %v4886_v51 = vpop.permute.xlu1 %4885  ;;  %6171 = vmatpush1.bf16.xpose.msra.mxu0 %v5485_v25  ;;  %v10582_v49 = vrot.slane %v11696_v9, 7  ;;  %v7002_v9 = vunpack.i.h.bf16 %v10565_v41  ;;  %v5684_v41 = vshll.u32 %v11660_v14, 16 }
 0x484   : > { %v4257_v31 = vpop.permute.xlu0 %4256  ;;  %6172 = vmatprep.subr.bf16.mxu0 %v5464_v60  ;;  %v5453_v13 = vrot.slane %v5451_v43, 1 }
 0x485   : > { %4956 = vrot.lane.b32.xlu1 %v11695_v18, %s7306_s10  ;;  %v10597_v45 = vor.u32 %v10582_v49, %v11699_v16 }
 0x486   : > { %5119 = vrot.lane.b32.xlu0 %v11685_v27, %s7306_s10  ;;  %v5454_v39 = vsel %vm3465_vm11, %v5450_v8, %v5453_v13  ;;  %v10592_v27 = vld [vmem:[%s10885_s5 + $0x8] sm:$0x3f]  ;;  %v5908_v8 = vshll.u32 %v11580_v22, 16 }
 0x487   : > { %v4137_v46 = vpop.permute.xlu1 %4136  ;;  %v10603_v6 = vrot.slane %v10592_v27, %v9912_v11  ;;  %v5339_v25 = vsel %vm4340_vm15, %v10597_v45, %v7001_v44 }
 0x488   : > { %v5095_v2 = vpop.permute.xlu0 %5094 }
 0x489   : > { %4867 = vrot.lane.b32.xlu1 %v11697_v48, %s7304_s23  ;;  %11701 = vst [vmem:[#allocation82_spill] sm:$0xff] %v10603_v6  ;;  %v6018_v60 = vcombine.high %v10603_v6, %v10603_v6  ;;  %v5391_v13 = vsel %vm4373_vm1, %v5339_v25, %v5095_v2  ;;  %v11703_v48 = vld [vmem:[#allocation142_spill] sm:$0xff]  ;;  %v5910_v6 = vrot.slane %v5908_v8, 1 }
 0x48a   : > { %5030 = vrot.lane.b32.xlu0 %v11698_v1, %s7304_s23  ;;  %v5978_v2 = vld [vmem:[%s10886_s6] sm:$0x7] }
 0x48b   : > { %v7005_v17 = vpop.permute.xlu1 %7004  ;;  %6173 = vmatpush1.bf16.xpose.msra.mxu0 %v5454_v39  ;;  %6190 = vmatprep.mubr.bf16.mxu0 %v6018_v60  ;;  %v4737_v39 = vsel %vm4340_vm15, %v11703_v48, %v4257_v31  ;;  %v5682_v31 = vshrl.u32 %v11660_v14, 16 }
 0x48c   : > { %v4292_v23 = vpop.permute.xlu0 %4291  ;;  %v7006_v60 = vunpack.i.l.bf16 %v7005_v17 }
 0x48d   : > { %4909 = vrot.lane.b32.xlu1 %v11700_v36, %s7305_s28  ;;  %v5905_v36 = vrot.slane %v5903_v55, 1  ;;  %v11704_v55 = vld [vmem:[#allocation3_spill] sm:$0xff] }
 0x48e   : > { %5076 = vrot.lane.b32.xlu0 %v11690_v19, %s7305_s28  ;;  %v5901_v19 = vshrl.u32 %v11543_v32, 16 }
 0x48f   : > { %v4170_v21 = vpop.permute.xlu1 %4169 }
 0x490   : > { %v7010_v43 = vpop.permute.xlu0 %7009 }
 0x491   : > { %v7011_v56 = vunpack.i.l.bf16 %v7010_v43  ;;  %4954 = vrot.lane.b32.xlu1 %v11702_v62, %s7306_s10  ;;  %v7012_v48 = vunpack.i.h.bf16 %v7010_v43  ;;  %v5686_v43 = vrot.slane %v5684_v41, 1 }
 0x492   : > { %5117 = vrot.lane.b32.xlu0 %v11694_v42, %s7306_s10  ;;  %v4776_v42 = vsel %vm4373_vm1, %v4737_v39, %v4292_v23  ;;  %v5342_v23 = vsel %vm4340_vm15, %v10582_v49, %v7002_v9  ;;  %v5906_v39 = vor.u32 %v5905_v36, %v5901_v19 }
 0x493   : > { %v5442_v44 = vsel %vm4406_vm2, %v5391_v13, %v7011_v56  ;;  %v4888_v16 = vpop.permute.xlu1 %4887  ;;  %v5689_v56 = vshll.u32 %v11702_v62, 16  ;;  %v5181_v13 = vsel %vm4340_vm15, %v11704_v55, %v4886_v51  ;;  %v7007_v62 = vunpack.i.h.bf16 %v7005_v17 }
 0x494   : > { %v5924_v25 = vshll.u32 %v5442_v44, 16  ;;  %v4325_v32 = vpop.permute.xlu0 %4324  ;;  %v5219_v14 = vsel %vm4373_vm1, %v5181_v13, %v7006_v60  ;;  %v5922_v9 = vshrl.u32 %v5442_v44, 16  ;;  %v5653_v17 = vshll.u32 %v11573_v37, 16 }
 0x495   : > { %v4816_v22 = vsel %vm4406_vm2, %v4776_v42, %v4325_v32  ;;  %v5183_v42 = vsel %vm4340_vm15, %v11566_v26, %v4888_v16  ;;  %v5911_v16 = vsel %vm3465_vm11, %v5906_v39, %v5910_v6  ;;  %v6003_v6 = vcombine.high %v10592_v27, %v10592_v27 }
 0x496   : > { %6147 = vmatprep.subr.bf16.mxu1 %v4816_v22  ;;  %5981 = vperm.xlu0 %7023, %v5978_v2   ;;  %v5926_v0 = vrot.slane %v5924_v25, 1  ;;  %v11705_v22 = vld [vmem:[#allocation129_spill] sm:$0xff] }
 0x497   : > { %v5097_v1 = vpop.permute.xlu1 %5096  ;;  %v4609_v55 = vsel %vm4340_vm15, %v11705_v22, %v4137_v46  ;;  %v10660_v27 = vrot.slane %v6003_v6, %v9912_v11  ;;  %v5620_v11 = vshrl.u32 %v11705_v22, 16 }
 0x498   : > { %v5393_v8 = vsel %vm4373_vm1, %v5342_v23, %v5097_v1  ;;  %v4973_v32 = vpop.permute.xlu0 %4972  ;;  %v4648_v25 = vsel %vm4373_vm1, %v4609_v55, %v4170_v21  ;;  %v5221_v1 = vsel %vm4373_vm1, %v5183_v42, %v7007_v62  ;;  %v5927_v23 = vor.u32 %v5926_v0, %v5922_v9 }
 0x499   : > { %v5444_v2 = vsel %vm4406_vm2, %v5393_v8, %v7012_v48  ;;  %v5257_v51 = vsel %vm4406_vm2, %v5219_v14, %v4973_v32  ;;  %v5651_v14 = vshrl.u32 %v11573_v37, 16  ;;  %v5687_v42 = vor.u32 %v5686_v43, %v5682_v31 }
 0x49a   : > { %v5928_v19 = vshll.u32 %v5444_v2, 16  ;;  %v5914_v36 = vshll.u32 %v5257_v51, 16  ;;  %v5912_v8 = vshrl.u32 %v5257_v51, 16  ;;  %v5691_v32 = vrot.slane %v5689_v56, 1  ;;  %v11706_v51 = vld [vmem:[#allocation146_spill] sm:$0xff] }
 0x49b   : > { %v4975_v26 = vpop.permute.xlu1 %4974  ;;  %v5655_v0 = vrot.slane %v5653_v17, 1  ;;  %v5658_v55 = vshll.u32 %v11706_v51, 16  ;;  %v5871_v37 = vshll.u32 %v11607_v12, 16  ;;  %v5622_v56 = vshll.u32 %v11705_v22, 16  ;;  %v11707_v17 = vld [vmem:[#allocation123_spill] sm:$0xff] }
 0x49c   : > { %v5930_v60 = vrot.slane %v5928_v19, 1  ;;  %v5916_v13 = vrot.slane %v5914_v36, 1  ;;  %v5259_v48 = vsel %vm4406_vm2, %v5221_v1, %v4975_v26  ;;  %v4212_v41 = vpop.permute.xlu0 %4211  ;;  %v5692_v31 = vsel %vm3465_vm11, %v5687_v42, %v5691_v32  ;;  %v11708_v42 = vld [vmem:[#allocation102_spill] sm:$0xff] }
 0x49d   : > { %v5918_v46 = vshll.u32 %v5259_v48, 16  ;;  %v4688_v44 = vsel %vm4406_vm2, %v4648_v25, %v4212_v41  ;;  %v5656_v25 = vor.u32 %v5655_v0, %v5651_v14  ;;  %v5660_v26 = vrot.slane %v5658_v55, 1 }
 0x49e   : > { %6148 = vmatpush2.bf16.xpose.msra.mxu1 %v4688_v44  ;;  %v5931_v21 = vsel %vm3465_vm11, %v5927_v23, %v5930_v60  ;;  %v5917_v39 = vor.u32 %v5916_v13, %v5912_v8  ;;  %v5627_v60 = vshll.u32 %v11707_v17, 16  ;;  %v5869_v13 = vshrl.u32 %v11607_v12, 16 }
 0x49f   : > { %v5920_v62 = vrot.slane %v5918_v46, 1  ;;  %v4882_v2 = vpop.permute.xlu1 %4881  ;;  %6174 = vmatprep.subr.bf16.mxu0 %v5931_v21  ;;  %6936 = vmatprep.subr.msk.bf16.mxu1 %vm4340_vm15, %v5911_v16  ;;  %v5873_v48 = vrot.slane %v5871_v37, 1  ;;  %v6050_v41 = vsel %vm4340_vm15, %v5692_v31, 0  ;;  %v5876_v23 = vshll.u32 %v11610_v30, 16 }
 0x4a0   : > { %v7015_v9 = vpop.permute.xlu0 %7014  ;;  %v5624_v8 = vrot.slane %v5622_v56, 1  ;;  %v5629_v21 = vrot.slane %v5627_v60, 1  ;;  %v5591_v30 = vshll.u32 %v11708_v42, 16 }
 0x4a1   : > { %v5921_v19 = vsel %vm3465_vm11, %v5917_v39, %v5920_v62  ;;  %v7016_v43 = vunpack.i.l.bf16 %v7015_v9  ;;  %v7017_v46 = vunpack.i.h.bf16 %v7015_v9  ;;  %v5874_v6 = vor.u32 %v5873_v48, %v5869_v13 }
 0x4a2   : > { %6175 = vmatpush2.bf16.xpose.msra.mxu0 %v5921_v19  ;;  %v5878_v22 = vrot.slane %v5876_v23, 1  ;;  %v5839_v39 = vshll.u32 %v9653_v34, 16  ;;  %v5625_v51 = vor.u32 %v5624_v8, %v5620_v11 }
 0x4a3   : > { %v4924_v36 = vpop.permute.xlu1 %4923  ;;  %v5333_v44 = vsel %vm4340_vm15, %v10597_v45, %v7016_v43  ;;  %v5844_v45 = vshll.u32 %v11645_v47, 16  ;;  %v5336_v19 = vsel %vm4340_vm15, %v10582_v49, %v7017_v46 }
 0x4a4   : > { %v5091_v1 = vpop.permute.xlu0 %5090 }
 0x4a5   : > { %6150 = vmatmul.mubr.bf16.vlgmr.msra.gmra.mxu1 %v10186_v38  ;;  %v5661_v38 = vsel %vm3465_vm11, %v5656_v25, %v5660_v26  ;;  %v5387_v62 = vsel %vm4373_vm1, %v5333_v44, %v5091_v1  ;;  %v5837_v26 = vshrl.u32 %v9653_v34, 16  ;;  %v5593_v44 = vrot.slane %v5591_v30, 1  ;;  %v11710_v30 = vld [vmem:[#allocation81_spill] sm:$0xff] }
 0x4a6   : > { %6919 = vmatpush3.bf16.xpose.msra.mxu1 %v6050_v41  ;;  %6934 = vmatprep.mubr.msk.bf16.mxu1 %vm4340_vm15, %v10660_v27  ;;  %v6047_v0 = vsel %vm4340_vm15, %v5661_v38, 0  ;;  %v11709_v41 = vld [vmem:[#allocation92_spill] sm:$0xff] }
 0x4a7   : > { %v4884_v14 = vpop.permute.xlu1 %4883  ;;  %6937 = vmatprep.subr.msk.bf16.mxu1 %vm4340_vm15, %v5911_v16  ;;  %v5177_v16 = vsel %vm4340_vm15, %v11439_v58, %v4882_v2  ;;  %v5879_v58 = vsel %vm3465_vm11, %v5874_v6, %v5878_v22  ;;  %v5841_v2 = vrot.slane %v5839_v39, 1  ;;  %v5596_v23 = vshll.u32 %v11709_v41, 16 }
 0x4a8   : > { %v7020_v12 = vpop.permute.xlu0 %7019  ;;  %v5215_v31 = vsel %vm4373_vm1, %v5177_v16, %v4924_v36  ;;  %v5589_v36 = vshrl.u32 %v11708_v42, 16  ;;  %v5179_v34 = vsel %vm4340_vm15, %v9635_v54, %v4884_v14  ;;  %v5808_v6 = vshll.u32 %v9508_v15, 16 }
 0x4a9   : > { %v7021_v32 = vunpack.i.l.bf16 %v7020_v12  ;;  %v7022_v55 = vunpack.i.h.bf16 %v7020_v12  ;;  %v5842_v39 = vor.u32 %v5841_v2, %v5837_v26  ;;  %v5558_v2 = vshrl.u32 %v11710_v30, 16 }
 0x4ab   : > { %v5438_v9 = vsel %vm4406_vm2, %v5387_v62, %v7021_v32  ;;  %v5093_v37 = vpop.permute.xlu1 %5092  ;;  %v5630_v32 = vsel %vm3465_vm11, %v5625_v51, %v5629_v21  ;;  %v5846_v62 = vrot.slane %v5844_v45, 1  ;;  %v5594_v51 = vor.u32 %v5593_v44, %v5589_v36 }
 0x4ac   : > { %v5892_v56 = vshll.u32 %v5438_v9, 16  ;;  %v5389_v43 = vsel %vm4373_vm1, %v5336_v19, %v5093_v37  ;;  %v4969_v25 = vpop.permute.xlu0 %4968  ;;  %v5890_v17 = vshrl.u32 %v5438_v9, 16  ;;  %v5560_v9 = vshll.u32 %v11710_v30, 16 }
 0x4ad   : > { %v5440_v47 = vsel %vm4406_vm2, %v5389_v43, %v7022_v55  ;;  %v5253_v1 = vsel %vm4406_vm2, %v5215_v31, %v4969_v25  ;;  %v5598_v55 = vrot.slane %v5596_v23, 1  ;;  %v6044_v21 = vsel %vm4340_vm15, %v5630_v32, 0  ;;  %v11714_v32 = vld [vmem:[#allocation148_spill] sm:$0xff] }
 0x4ae   : > { %v5894_v60 = vrot.slane %v5892_v56, 1  ;;  %v5896_v13 = vshll.u32 %v5440_v47, 16  ;;  %v5882_v48 = vshll.u32 %v5253_v1, 16  ;;  %6921 = vmatpush3.bf16.xpose.msra.mxu1 %v6047_v0  ;;  %v5880_v0 = vshrl.u32 %v5253_v1, 16  ;;  %v11711_v1 = vld [vmem:[#allocation55_spill] sm:$0xff] }
 0x4af   : > { %6938 = vmatprep.subr.msk.bf16.mxu1 %vm4340_vm15, %v5879_v58  ;;  %v4971_v49 = vpop.permute.xlu1 %4970  ;;  %v5847_v31 = vsel %vm3465_vm11, %v5842_v39, %v5846_v62  ;;  %v5806_v56 = vshrl.u32 %v9508_v15, 16  ;;  %v5810_v43 = vrot.slane %v5808_v6, 1  ;;  %v5813_v45 = vshll.u32 %v11665_v63, 16  ;;  %v11715_v62 = vld [vmem:[#allocation169_spill] sm:$0xff] }
 0x4b0   : > { %v5898_v11 = vrot.slane %v5896_v13, 1  ;;  %v4926_v8 = vpop.permute.xlu0 %4925  ;;  %v5895_v46 = vor.u32 %v5894_v60, %v5890_v17  ;;  %v5884_v38 = vrot.slane %v5882_v48, 1  ;;  %v5529_v58 = vshll.u32 %v11711_v1, 16  ;;  %v11712_v60 = vld [vmem:[#allocation70_spill] sm:$0xff] }
 0x4b1   : > { %v5217_v12 = vsel %vm4373_vm1, %v5179_v34, %v4926_v8  ;;  %v5562_v17 = vrot.slane %v5560_v9, 1  ;;  %v5565_v13 = vshll.u32 %v11712_v60, 16  ;;  %v5599_v48 = vsel %vm3465_vm11, %v5594_v51, %v5598_v55 }
 0x4b2   : > { %v5255_v22 = vsel %vm4406_vm2, %v5217_v12, %v4971_v49  ;;  %v5899_v42 = vsel %vm3465_vm11, %v5895_v46, %v5898_v11  ;;  %v5885_v37 = vor.u32 %v5884_v38, %v5880_v0  ;;  %v5811_v15 = vor.u32 %v5810_v43, %v5806_v56  ;;  %v11713_v11 = vld [vmem:[#allocation50_spill] sm:$0xff] }
 0x4b3   : > { %v5886_v16 = vshll.u32 %v5255_v22, 16  ;;  %v4878_v54 = vpop.permute.xlu1 %4877  ;;  %6176 = vmatprep.subr.bf16.mxu0 %v5899_v42  ;;  %v5815_v49 = vrot.slane %v5813_v45, 1  ;;  %v5777_v63 = vshll.u32 %v11589_v3, 16  ;;  %v5527_v23 = vshrl.u32 %v11711_v1, 16 }
 0x4b4   : > { %v5041_v14 = vpop.permute.xlu0 %5040  ;;  %v5531_v34 = vrot.slane %v5529_v58, 1  ;;  %v5534_v8 = vshll.u32 %v11713_v11, 16  ;;  %v6041_v46 = vsel %vm4340_vm15, %v5599_v48, 0  ;;  %v5563_v44 = vor.u32 %v5562_v17, %v5558_v2 }
 0x4b5   : > { %v5888_v19 = vrot.slane %v5886_v16, 1  ;;  %v5567_v38 = vrot.slane %v5565_v13, 1  ;;  %v5782_v12 = vshll.u32 %v11675_v61, 16  ;;  %v5173_v6 = vsel %vm4340_vm15, %v11714_v32, %v4878_v54 }
 0x4b6   : > { %6923 = vmatpush3.bf16.xpose.msra.mxu1 %v6044_v21  ;;  %v5816_v22 = vsel %vm3465_vm11, %v5811_v15, %v5815_v49  ;;  %v5775_v42 = vshrl.u32 %v11589_v3, 16  ;;  %v5779_v39 = vrot.slane %v5777_v63, 1  ;;  %v5327_v0 = vsel %vm4340_vm15, %v11715_v62, %v5041_v14  ;;  %v11716_v21 = vld [vmem:[#allocation44_spill] sm:$0xff] }
 0x4b7   : > { %6939 = vmatprep.subr.msk.bf16.mxu1 %vm4340_vm15, %v5847_v31  ;;  %v4920_v25 = vpop.permute.xlu1 %4919  ;;  %v5889_v26 = vsel %vm3465_vm11, %v5885_v37, %v5888_v19  ;;  %v5532_v37 = vor.u32 %v5531_v34, %v5527_v23  ;;  %v5536_v19 = vrot.slane %v5534_v8, 1  ;;  %v5498_v3 = vshll.u32 %v11716_v21, 16  ;;  %v11717_v49 = vld [vmem:[#allocation164_spill] sm:$0xff] }
 0x4b8   : > { %v5087_v47 = vpop.permute.xlu0 %5086  ;;  %6177 = vmatpush2.bf16.xpose.msra.mxu0 %v5889_v26  ;;  %v5211_v16 = vsel %vm4373_vm1, %v5173_v6, %v4920_v25  ;;  %v5568_v51 = vsel %vm3465_vm11, %v5563_v44, %v5567_v38  ;;  %v5780_v31 = vor.u32 %v5779_v39, %v5775_v42  ;;  %v5784_v14 = vrot.slane %v5782_v12, 1  ;;  %v11719_v38 = vld [vmem:[#allocation155_spill] sm:$0xff] }
 0x4b9   : > { %v5383_v30 = vsel %vm4373_vm1, %v5327_v0, %v5087_v47  ;;  %v5746_v56 = vshll.u32 %v11606_v7, 16  ;;  %v5751_v47 = vshll.u32 %v11687_v50, 16  ;;  %v6038_v1 = vsel %vm4340_vm15, %v5568_v51, 0 }
 0x4ba   : > { %v5537_v58 = vsel %vm3465_vm11, %v5532_v37, %v5536_v19  ;;  %v5496_v2 = vshrl.u32 %v11716_v21, 16  ;;  %v5500_v17 = vrot.slane %v5498_v3, 1  ;;  %v5785_v13 = vsel %vm3465_vm11, %v5780_v31, %v5784_v14 }
 0x4bb   : > { %v5128_v36 = vpop.permute.xlu1 %5127  ;;  %v5744_v48 = vshrl.u32 %v11606_v7, 16  ;;  %v5748_v15 = vrot.slane %v5746_v56, 1  ;;  %v11718_v63 = vrot.slane %v11717_v49, 7  ;;  %v5715_v11 = vshll.u32 %v11630_v59, 16 }
 0x4bc   : > { %v5043_v41 = vpop.permute.xlu0 %5042  ;;  %v5434_v54 = vsel %vm4406_vm2, %v5383_v30, %v5128_v36  ;;  %v5753_v7 = vrot.slane %v5751_v47, 1  ;;  %v5321_v12 = vsel %vm4340_vm15, %v11719_v38, %v10049_v24  ;;  %v5501_v51 = vor.u32 %v5500_v17, %v5496_v2  ;;  %v11722_v24 = vld [vmem:[#allocation40_spill] sm:$0xff] }
 0x4bd   : > { %v5860_v25 = vshll.u32 %v5434_v54, 16  ;;  %v5330_v50 = vsel %vm4340_vm15, %v11718_v63, %v5043_v41  ;;  %v5858_v39 = vshrl.u32 %v5434_v54, 16  ;;  %v5749_v0 = vor.u32 %v5748_v15, %v5744_v48  ;;  %v11723_v15 = vld [vmem:[#allocation152_spill] sm:$0xff] }
 0x4be   : > { %6925 = vmatpush3.bf16.xpose.msra.mxu1 %v6041_v46  ;;  %v6035_v14 = vsel %vm4340_vm15, %v5537_v58, 0  ;;  %v5720_v56 = vshll.u32 %v11695_v18, 16  ;;  %v5819_v47 = vshll.u32 %v10090_v52, 16  ;;  %v11724_v49 = vrot.slane %v11723_v15, 7 }
 0x4bf   : > { %6940 = vmatprep.subr.msk.bf16.mxu1 %vm4340_vm15, %v5816_v22  ;;  %v4965_v55 = vpop.permute.xlu1 %4964  ;;  %v5862_v8 = vrot.slane %v5860_v25, 1  ;;  %v11720_v22 = vld [vmem:[#allocation186_spill] sm:$0xff]  ;;  %v5713_v25 = vshrl.u32 %v11630_v59, 16 }
 0x4c0   : > { %v5249_v61 = vsel %vm4406_vm2, %v5211_v16, %v4965_v55  ;;  %v4880_v9 = vpop.permute.xlu0 %4879  ;;  %v5379_v42 = vsel %vm4373_vm1, %v5321_v12, %v11720_v22  ;;  %v5722_v48 = vrot.slane %v5720_v56, 1  ;;  %v5821_v59 = vrot.slane %v5819_v47, 1  ;;  %v11728_v56 = vld [vmem:[#allocation137_spill] sm:$0xff] }
 0x4c1   : > { %v5850_v43 = vshll.u32 %v5249_v61, 16  ;;  %v5175_v60 = vsel %vm4340_vm15, %v11654_v35, %v4880_v9  ;;  %v5848_v41 = vshrl.u32 %v5249_v61, 16  ;;  %v11721_v9 = vld [vmem:[#allocation33_spill] sm:$0xff]  ;;  %v5863_v19 = vor.u32 %v5862_v8, %v5858_v39 }
 0x4c2   : > { %v5467_v37 = vshll.u32 %v11721_v9, 16  ;;  %v5503_v61 = vshll.u32 %v11722_v24, 16  ;;  %v5430_v31 = vsel %vm4406_vm2, %v5379_v42, %v10077_v29  ;;  %v11726_v42 = vld [vmem:[#allocation140_spill] sm:$0xff] }
 0x4c3   : > { %v4922_v45 = vpop.permute.xlu1 %4921  ;;  %v5852_v36 = vrot.slane %v5850_v43, 1  ;;  %v5316_v39 = vsel %vm4340_vm15, %v11726_v42, %v9987_v5 }
 0x4c4   : > { %v5089_v26 = vpop.permute.xlu0 %5088  ;;  %v5213_v23 = vsel %vm4373_vm1, %v5175_v60, %v4922_v45  ;;  %v5754_v45 = vsel %vm3465_vm11, %v5749_v0, %v5753_v7  ;;  %v5505_v2 = vrot.slane %v5503_v61, 1  ;;  %v5469_v17 = vrot.slane %v5467_v37, 1 }
 0x4c5   : > { %v5385_v35 = vsel %vm4373_vm1, %v5330_v50, %v5089_v26  ;;  %v5853_v16 = vor.u32 %v5852_v36, %v5848_v41  ;;  %v5717_v26 = vrot.slane %v5715_v11, 1  ;;  %v5827_v41 = vshrl.u32 %v5430_v31, 16 }
 0x4c6   : > { %6927 = vmatpush3.bf16.xpose.msra.mxu1 %v6038_v1  ;;  %v5829_v1 = vshll.u32 %v5430_v31, 16  ;;  %v5506_v60 = vsel %vm3465_vm11, %v5501_v51, %v5505_v2  ;;  %v11727_v51 = vld [vmem:[#allocation138_spill] sm:$0xff]  ;;  %v11730_v2 = vld [vmem:[#allocation192_spill] sm:$0xff] }
 0x4c7   : > { %6941 = vmatprep.subr.msk.bf16.mxu1 %vm4340_vm15, %v5785_v13  ;;  %v4967_v34 = vpop.permute.xlu1 %4966  ;;  %v5718_v13 = vor.u32 %v5717_v26, %v5713_v25  ;;  %v6032_v12 = vsel %vm4340_vm15, %v5506_v60, 0  ;;  %v5788_v24 = vshll.u32 %v11727_v51, 16 }
 0x4c8   : > { %v5251_v46 = vsel %vm4406_vm2, %v5213_v23, %v4967_v34  ;;  %v5130_v44 = vpop.permute.xlu0 %5129  ;;  %v11725_v23 = vld [vmem:[#allocation31_spill] sm:$0xff]  ;;  %v5831_v11 = vrot.slane %v5829_v1, 1 }
 0x4c9   : > { %v5854_v32 = vshll.u32 %v5251_v46, 16  ;;  %v5436_v6 = vsel %vm4406_vm2, %v5385_v35, %v5130_v44  ;;  %v5472_v34 = vshll.u32 %v11725_v23, 16  ;;  %v5465_v46 = vshrl.u32 %v11721_v9, 16 }
 0x4ca   : > { %v5864_v62 = vshll.u32 %v5436_v6, 16  ;;  %v5817_v44 = vshrl.u32 %v10090_v52, 16  ;;  %v5723_v6 = vsel %vm3465_vm11, %v5718_v13, %v5722_v48  ;;  %v5832_v9 = vor.u32 %v5831_v11, %v5827_v41 }
 0x4cb   : > { %v5856_v55 = vrot.slane %v5854_v32, 1  ;;  %v4876_v30 = vpop.permute.xlu1 %4875  ;;  %v5470_v22 = vor.u32 %v5469_v17, %v5465_v46  ;;  %v5474_v37 = vrot.slane %v5472_v34, 1  ;;  %v11731_v17 = vld [vmem:[#allocation131_spill] sm:$0xff] }
 0x4cc   : > { %v5866_v21 = vrot.slane %v5864_v62, 1  ;;  %v5039_v3 = vpop.permute.xlu0 %5038  ;;  %v5171_v18 = vsel %vm4340_vm15, %v11671_v28, %v4876_v30  ;;  %v5822_v62 = vor.u32 %v5821_v59, %v5817_v44  ;;  %v5757_v44 = vshll.u32 %v10161_v33, 16 }
 0x4cd   : > { %v5857_v54 = vsel %vm3465_vm11, %v5853_v16, %v5856_v55  ;;  %v5324_v63 = vsel %vm4340_vm15, %v11724_v49, %v5039_v3  ;;  %v5376_v16 = vsel %vm4373_vm1, %v5316_v39, %v10017_v40  ;;  %v5475_v5 = vsel %vm3465_vm11, %v5470_v22, %v5474_v37 }
 0x4ce   : > { %6929 = vmatpush3.bf16.xpose.msra.mxu1 %v6035_v14  ;;  %v5867_v43 = vsel %vm3465_vm11, %v5863_v19, %v5866_v21  ;;  %v5427_v19 = vsel %vm4406_vm2, %v5376_v16, %v10028_v10  ;;  %v6029_v40 = vsel %vm4340_vm15, %v5475_v5, 0  ;;  %v5790_v10 = vrot.slane %v5788_v24, 1 }
 0x4cf   : > { %6178 = vmatprep.subr.bf16.mxu0 %v5867_v43  ;;  %6942 = vmatprep.subr.msk.bf16.mxu1 %vm4340_vm15, %v5754_v45  ;;  %v4918_v29 = vpop.permute.xlu1 %4917  ;;  %v5798_v31 = vshll.u32 %v5427_v19, 16  ;;  %v11729_v43 = vrot.slane %v11728_v56, 7  ;;  %v5796_v48 = vshrl.u32 %v5427_v19, 16  ;;  %v11736_v19 = vld [vmem:[#allocation47_spill] sm:$0xff]  ;;  %v11738_v56 = vld [vmem:[#allocation45_spill] sm:$0xff] }
 0x4d0   : > { %v5085_v58 = vpop.permute.xlu0 %5084  ;;  %6179 = vmatpush2.bf16.xpose.msra.mxu0 %v5857_v54  ;;  %v5209_v50 = vsel %vm4373_vm1, %v5171_v18, %v4918_v29  ;;  %v5311_v18 = vsel %vm4340_vm15, %v11731_v17, %v11730_v2 }
 0x4d1   : > { %v5381_v8 = vsel %vm4373_vm1, %v5324_v63, %v5085_v58  ;;  %v5800_v47 = vrot.slane %v5798_v31, 1 }
 0x4d3   : > { %v4963_v36 = vpop.permute.xlu1 %4962  ;;  %v5801_v11 = vor.u32 %v5800_v47, %v5796_v48  ;;  %v11739_v47 = vld [vmem:[#allocation165_spill] sm:$0xff]  ;;  %v11742_v48 = vld [vmem:[#allocation56_spill] sm:$0xff] }
 0x4d4   : > { %v5247_v35 = vsel %vm4406_vm2, %v5209_v50, %v4963_v36  ;;  %v5126_v28 = vpop.permute.xlu0 %5125  ;;  %v11732_v50 = vld [vmem:[#allocation176_spill] sm:$0xff] }
 0x4d5   : > { %v5823_v7 = vshll.u32 %v5247_v35, 16  ;;  %v5432_v38 = vsel %vm4406_vm2, %v5381_v8, %v5126_v28  ;;  %v5373_v36 = vsel %vm4373_vm1, %v5311_v18, %v11732_v50  ;;  %v11733_v8 = vld [vmem:[#allocation175_spill] sm:$0xff] }
 0x4d6   : > { %v5833_v32 = vshll.u32 %v5432_v38, 16  ;;  %6931 = vmatpush3.bf16.xpose.msra.mxu1 %v6032_v12  ;;  %v5424_v35 = vsel %vm4406_vm2, %v5373_v36, %v11733_v8 }
 0x4d7   : > { %v5825_v0 = vrot.slane %v5823_v7, 1  ;;  %6943 = vmatprep.subr.msk.bf16.mxu1 %vm4340_vm15, %v5723_v6  ;;  %v4874_v52 = vpop.permute.xlu1 %4873  ;;  %v5767_v38 = vshll.u32 %v5424_v35, 16  ;;  %v11734_v6 = vld [vmem:[#allocation126_spill] sm:$0xff] }
 0x4d8   : > { %v5835_v55 = vrot.slane %v5833_v32, 1  ;;  %v5037_v30 = vpop.permute.xlu0 %5036  ;;  %v5169_v54 = vsel %vm4340_vm15, %v11681_v53, %v4874_v52  ;;  %v5786_v53 = vshrl.u32 %v11727_v51, 16  ;;  %v5759_v32 = vrot.slane %v5757_v44, 1 }
 0x4d9   : > { %v5826_v21 = vsel %vm3465_vm11, %v5822_v62, %v5825_v0  ;;  %v5319_v45 = vsel %vm4340_vm15, %v11729_v43, %v5037_v30  ;;  %v11735_v22 = vrot.slane %v11734_v6, 7  ;;  %v5769_v62 = vrot.slane %v5767_v38, 1  ;;  %v11745_v38 = vld [vmem:[#allocation77_spill] sm:$0xff] }
 0x4da   : > { %v5836_v3 = vsel %vm3465_vm11, %v5832_v9, %v5835_v55  ;;  %v5791_v15 = vor.u32 %v5790_v10, %v5786_v53  ;;  %v5755_v55 = vshrl.u32 %v10161_v33, 16  ;;  %v5726_v43 = vshll.u32 %v11738_v56, 16  ;;  %v11746_v6 = vld [vmem:[#allocation149_spill] sm:$0xff] }
 0x4db   : > { %6180 = vmatprep.subr.bf16.mxu0 %v5836_v3  ;;  %v4916_v61 = vpop.permute.xlu1 %4915 }
 0x4dc   : > { %v5083_v14 = vpop.permute.xlu0 %5082  ;;  %6181 = vmatpush2.bf16.xpose.msra.mxu0 %v5826_v21  ;;  %v5207_v25 = vsel %vm4373_vm1, %v5169_v54, %v4916_v61  ;;  %v11737_v21 = vld [vmem:[#allocation122_spill] sm:$0xff]  ;;  %v5760_v5 = vor.u32 %v5759_v32, %v5755_v55 }
 0x4dd   : > { %v5378_v29 = vsel %vm4373_vm1, %v5319_v45, %v5083_v14  ;;  %v5306_v3 = vsel %vm4340_vm15, %v11737_v21, %v11736_v19 }
 0x4de   : > { %6933 = vmatpush3.bf16.xpose.msra.mxu1 %v6029_v40  ;;  %v5370_v61 = vsel %vm4373_vm1, %v5306_v3, %v9935_v4 }
 0x4df   : > { %v4961_v26 = vpop.permute.xlu1 %4960  ;;  %v5421_v33 = vsel %vm4406_vm2, %v5370_v61, %v9968_v57 }
 0x4e0   : > { %v5245_v1 = vsel %vm4406_vm2, %v5207_v25, %v4961_v26  ;;  %v5124_v58 = vpop.permute.xlu0 %5123  ;;  %v5736_v25 = vshll.u32 %v5421_v33, 16  ;;  %v5734_v36 = vshrl.u32 %v5421_v33, 16 }
 0x4e1   : > { %v5792_v60 = vshll.u32 %v5245_v1, 16  ;;  %v5429_v13 = vsel %vm4406_vm2, %v5378_v29, %v5124_v58  ;;  %v5728_v29 = vrot.slane %v5726_v43, 1  ;;  %v11740_v1 = vld [vmem:[#allocation118_spill] sm:$0xff] }
 0x4e2   : > { %v5802_v59 = vshll.u32 %v5429_v13, 16  ;;  %v11741_v58 = vrot.slane %v11740_v1, 7  ;;  %v5738_v18 = vrot.slane %v5736_v25, 1 }
 0x4e3   : > { %v5794_v49 = vrot.slane %v5792_v60, 1  ;;  %v4872_v63 = vpop.permute.xlu1 %4871 }
 0x4e4   : > { %v5804_v23 = vrot.slane %v5802_v59, 1  ;;  %v5035_v34 = vpop.permute.xlu0 %5034  ;;  %v5167_v41 = vsel %vm4340_vm15, %v11691_v20, %v4872_v63  ;;  %v5765_v20 = vshrl.u32 %v5424_v35, 16  ;;  %v11743_v59 = vld [vmem:[#allocation109_spill] sm:$0xff]  ;;  %v11744_v35 = vld [vmem:[#allocation166_spill] sm:$0xff] }
 0x4e5   : > { %v5795_v28 = vsel %vm3465_vm11, %v5791_v15, %v5794_v49  ;;  %6935 = vmatmul.mubr.msk.bf16.vlgmr.msra.gmra.mxu1 %vm4340_vm15, %v10660_v27  ;;  %v5314_v42 = vsel %vm4340_vm15, %v11735_v22, %v5035_v34  ;;  %v5301_v15 = vsel %vm4340_vm15, %v11743_v59, %v11742_v48  ;;  %v5724_v49 = vshrl.u32 %v11738_v56, 16 }
 0x4e6   : > { %v5805_v46 = vsel %vm3465_vm11, %v5801_v11, %v5804_v23  ;;  %v5770_v40 = vor.u32 %v5769_v62, %v5765_v20  ;;  %v5695_v22 = vshll.u32 %v11746_v6, 16  ;;  %v11747_v62 = vld [vmem:[#allocation157_spill] sm:$0xff] }
 0x4e7   : > { %6182 = vmatprep.subr.bf16.mxu0 %v5805_v46  ;;  %v4914_v7 = vpop.permute.xlu1 %4913  ;;  %v5729_v34 = vor.u32 %v5728_v29, %v5724_v49 }
 0x4e8   : > { %v5081_v12 = vpop.permute.xlu0 %5080  ;;  %6183 = vmatpush2.bf16.xpose.msra.mxu0 %v5795_v28  ;;  %v5205_v39 = vsel %vm4373_vm1, %v5167_v41, %v4914_v7  ;;  %v5367_v28 = vsel %vm4373_vm1, %v5301_v15, %v11744_v35  ;;  %v5739_v7 = vor.u32 %v5738_v18, %v5734_v36 }
 0x4e9   : > { %v5375_v0 = vsel %vm4373_vm1, %v5314_v42, %v5081_v12  ;;  %v5418_v12 = vsel %vm4406_vm2, %v5367_v28, %v11745_v38 }
 0x4ea   : > { %v5703_v61 = vshrl.u32 %v5418_v12, 16 }
 0x4eb   : > { %v4959_v27 = vpop.permute.xlu1 %4958 }
 0x4ec   : > { %v5243_v52 = vsel %vm4406_vm2, %v5205_v39, %v4959_v27  ;;  %v5122_v16 = vpop.permute.xlu0 %5121  ;;  %v5705_v39 = vshll.u32 %v5418_v12, 16 }
 0x4ed   : > { %v5761_v30 = vshll.u32 %v5243_v52, 16  ;;  %v5426_v9 = vsel %vm4406_vm2, %v5375_v0, %v5122_v16  ;;  %v5697_v52 = vrot.slane %v5695_v22, 1  ;;  %v11748_v16 = vld [vmem:[#allocation106_spill] sm:$0xff] }
 0x4ee   : > { %v5771_v37 = vshll.u32 %v5426_v9, 16  ;;  %v11749_v55 = vrot.slane %v11748_v16, 7 }
 0x4ef   : > { %v5763_v51 = vrot.slane %v5761_v30, 1  ;;  %v4870_v24 = vpop.permute.xlu1 %4869 }
 0x4f0   : > { %v5773_v31 = vrot.slane %v5771_v37, 1  ;;  %v5033_v14 = vpop.permute.xlu0 %5032  ;;  %v5165_v4 = vsel %vm4340_vm15, %v11739_v47, %v4870_v24  ;;  %v5707_v37 = vrot.slane %v5705_v39, 1 }
 0x4f1   : > { %v5764_v54 = vsel %vm3465_vm11, %v5760_v5, %v5763_v51  ;;  %v5309_v2 = vsel %vm4340_vm15, %v11741_v58, %v5033_v14  ;;  %v5693_v5 = vshrl.u32 %v11746_v6, 16 }
 0x4f2   : > { %v5774_v10 = vsel %vm3465_vm11, %v5770_v40, %v5773_v31 }
 0x4f3   : > { %6184 = vmatprep.subr.bf16.mxu0 %v5774_v10  ;;  %v4912_v45 = vpop.permute.xlu1 %4911  ;;  %v5698_v14 = vor.u32 %v5697_v52, %v5693_v5 }
 0x4f4   : > { %v5079_v26 = vpop.permute.xlu0 %5078  ;;  %6185 = vmatpush2.bf16.xpose.msra.mxu0 %v5764_v54  ;;  %v5203_v57 = vsel %vm4373_vm1, %v5165_v4, %v4912_v45  ;;  %v5708_v54 = vor.u32 %v5707_v37, %v5703_v61  ;;  %v11750_v45 = vld [vmem:[#allocation82_spill] sm:$0xff] }
 0x4f5   : > { %v5372_v53 = vsel %vm4373_vm1, %v5309_v2, %v5079_v26 }
 0x4f7   : > { %v4957_v17 = vpop.permute.xlu1 %4956 }
 0x4f8   : > { %v5241_v60 = vsel %vm4406_vm2, %v5203_v57, %v4957_v17  ;;  %v5120_v13 = vpop.permute.xlu0 %5119 }
 0x4f9   : > { %v5730_v63 = vshll.u32 %v5241_v60, 16  ;;  %v5423_v50 = vsel %vm4406_vm2, %v5372_v53, %v5120_v13 }
 0x4fa   : > { %v5740_v23 = vshll.u32 %v5423_v50, 16 }
 0x4fb   : > { %v5732_v11 = vrot.slane %v5730_v63, 1  ;;  %v4868_v8 = vpop.permute.xlu1 %4867 }
 0x4fc   : > { %v5742_v46 = vrot.slane %v5740_v23, 1  ;;  %v5031_v44 = vpop.permute.xlu0 %5030  ;;  %v5163_v0 = vsel %vm4340_vm15, %v11747_v62, %v4868_v8 }
 0x4fd   : > { %v5733_v41 = vsel %vm3465_vm11, %v5729_v34, %v5732_v11  ;;  %v5304_v30 = vsel %vm4340_vm15, %v11749_v55, %v5031_v44 }
 0x4fe   : > { %v5743_v32 = vsel %vm3465_vm11, %v5739_v7, %v5742_v46 }
 0x4ff   : > { %6186 = vmatprep.subr.bf16.mxu0 %v5743_v32  ;;  %v4910_v42 = vpop.permute.xlu1 %4909 }
 0x500   : > { %v5077_v27 = vpop.permute.xlu0 %5076  ;;  %6187 = vmatpush2.bf16.xpose.msra.mxu0 %v5733_v41  ;;  %v5201_v9 = vsel %vm4373_vm1, %v5163_v0, %v4910_v42 }
 0x501   : > { %v5369_v19 = vsel %vm4373_vm1, %v5304_v30, %v5077_v27 }
 0x503   : > { %v4955_v20 = vpop.permute.xlu1 %4954 }
 0x504   : > { %v5239_v21 = vsel %vm4406_vm2, %v5201_v9, %v4955_v20  ;;  %v5118_v3 = vpop.permute.xlu0 %5117 }
 0x505   : > { %v5699_v51 = vshll.u32 %v5239_v21, 16  ;;  %v5420_v24 = vsel %vm4406_vm2, %v5369_v19, %v5118_v3 }
 0x506   : > { %v5709_v31 = vshll.u32 %v5420_v24, 16 }
 0x507   : > { %v5701_v40 = vrot.slane %v5699_v51, 1 }
 0x508   : > { %v5711_v33 = vrot.slane %v5709_v31, 1 }
 0x509   : > { %v5702_v10 = vsel %vm3465_vm11, %v5698_v14, %v5701_v40 }
 0x50a   : > { %v5712_v56 = vsel %vm3465_vm11, %v5708_v54, %v5711_v33 }
 0x50b   : > { %6188 = vmatprep.subr.bf16.mxu0 %v5712_v56 }
 0x50c   : > { %6189 = vmatpush2.bf16.xpose.msra.mxu0 %v5702_v10 }
 0x511   : > { %v5982_v4 = vpop.permute.xlu0 %5981 }
 0x512   : > { %v6110_v43 = vpop.f32.mrf.mxu0 }
 0x513   : > { %6191 = vmatmul.mubr.bf16.vlgmr.msra.gmra.mxu0 %v11750_v45  ;;  %v6111_v29 = vadd.f32 %v6110_v43, %v5982_v4 }
 0x514   : > { %v6112_v25 = vpop.f32.mrf.mxu0 }
 0x515   : > { %v6113_v58 = vadd.f32 %v6112_v25, %v5982_v4 }
 0x516   : > { %v6114_v26 = vpop.f32.mrf.mxu0 }
 0x518   : > { %v6115_v47 = vpop.f32.mrf.mxu0 }
 0x565   : > { %v6151_v1 = vpop.f32.mrf.mxu1 }
 0x566   : > { %v6152_v2 = vadd.f32 %v6151_v1, %v6111_v29 }
 0x567   : > { %v6153_v57 = vpop.f32.mrf.mxu1 }
 0x568   : > { %v6154_v17 = vadd.f32 %v6153_v57, %v6113_v58 }
 0x569   : > { %v6155_v18 = vpop.f32.mrf.mxu1 }
 0x56b   : > { %v6156_v53 = vpop.f32.mrf.mxu1 }
 0x5a5   : > { %v6233_v60 = vpop.f32.mrf.mxu1 }
 0x5a7   : > { %v6235_v13 = vpop.f32.mrf.mxu1 }
 0x5a9   : > { %v6237_v48 = vpop.f32.mrf.mxu1 }
 0x5ab   : > { %v6238_v59 = vpop.f32.mrf.mxu1 }
 0x5d3   : > { %v6192_v15 = vpop.f32.mrf.mxu0 }
 0x5d4   : > { %v6193_v49 = vadd.f32 %v6192_v15, %v6152_v2 }
 0x5d5   : > { %v6194_v63 = vpop.f32.mrf.mxu0 }
 0x5d6   : > { %v6195_v50 = vadd.f32 %v6194_v63, %v6154_v17  ;;  %v6234_v23 = vadd.f32 %v6233_v60, %v6193_v49 }
 0x5d7   : > { %v6196_v36 = vpop.f32.mrf.mxu0 }
 0x5d8   : > { %v6236_v34 = vadd.f32 %v6235_v13, %v6195_v50 }
 0x5d9   : > { %v6197_v11 = vpop.f32.mrf.mxu0 }
 0x5da   : > { %v6242_v8 = vcombine.low %v6234_v23, %v6236_v34 }
 0x5dc   : > { %6244 = vst [vmem:[%s314_s22] sm:$0x77] %v6242_v8 }
 0x5dd PF: > { %s17_s26 = sadd.s32 1, %s7292_s26   ;;  %s11751_s24 = smov %s7288_s25 }
 0x5de   : > { %p14_p5 = scmp.ge.s32.totalorder %s17_s26, 4   ;;  %s11752_s25 = smov %s11754_s27 }
 0x5e0   :  { %16 = sbr.rel (!%p14_p5) target bundleno = 2 (0x2), region = 86 }

</bundles_post_ra>
